<compile_context>
chip_gen: v6e
topology: v6e:2x2x1
jax: 0.10.0
libtpu: 0.0.40
codegen_flags: <defaults>
</compile_context>

<pallas_src>
import jax
import jax.numpy as jnp
from jax.experimental import pallas as pl
from jax.experimental.pallas import tpu as pltpu

# ---------------- small synthetic config (mirrors PatchTSMixerConfig structure) --------
B = 2            # batch
C = 4            # num_input_channels
T = 64           # context_length (small)
P = 8            # patch_length
STRIDE = 8       # patch_stride (== patch_length -> non-overlapping patches)
N = (T - P) // STRIDE + 1          # num_patches = 8
D = 16           # d_model
EF = 2           # expansion_factor
L = 2            # num_layers
PRED = 16        # prediction_length (small)
NE = N * EF      # 16
DE = D * EF      # 32
BC = B * C       # 8   (fused batch*channel dimension, = sublane count of the activation slab)
ND = N * D       # 128 (lane width of the activation slab)
NW = 2 * ND      # 256 (== NE*D == N*DE == width of the hidden / concatenated slabs)
EPS_LN = 1e-5
EPS_SCALE = 1e-5

# packed-slab row offsets (all multiples of 8 -> sublane-aligned static slices)
LROWS = 2 * ND + 2 * NW          # 768 rows of the [*, 256] weight slab per layer
BROWS = 4 * BC                   # 32 rows of the bias slab per layer
R_MD, R_SP, R_SF = 0, ND, 2 * ND             # LN-mean matrix, patch-sum, feature-sum
R_EMB = 3 * ND                                # embedding kron  (T rows)
R_HEAD = R_EMB + T                            # head weight (padded to 128 lanes)
R_BEMB = L * BROWS                            # embedding bias rows
R_BHEAD = R_BEMB + BC                         # head bias rows


# ----------------------------------- Pallas kernel -------------------------------------
def mixer_kernel(x_ref, w256_ref, w128_ref, bias_ref, o_ref):
    f32 = jnp.float32

    # ---- std scaler (per batch*channel series; lane axis == time) ----
    x = x_ref[...].astype(f32)                                     # [BC, T]
    loc = jnp.mean(x, axis=-1, keepdims=True)                      # [BC, 1]
    var = jnp.mean((x - loc) ** 2, axis=-1, keepdims=True)
    scale = jnp.sqrt(var + EPS_SCALE)
    xs = (x - loc) / scale

    # ---- patch embedding (patchify is free: lane t = n*P + p, stride == P) ----
    h = jnp.dot(xs, w128_ref[R_EMB:R_EMB + T, :], preferred_element_type=f32) \
        + bias_ref[R_BEMB:R_BEMB + BC, :ND]                        # [BC, ND] = [8, 128]

    def mixer_block(h, w1, b1, w2, b2, s_den):
        # LayerNorm over d_model: group mean / mean-of-squares via block-diag ones matmuls.
        m_d = w128_ref[R_MD:R_MD + ND, :]
        mu = jnp.dot(h, m_d, preferred_element_type=f32)
        musq = jnp.dot(h * h, m_d, preferred_element_type=f32)
        hc = (h - mu) * jax.lax.rsqrt(musq - mu * mu + EPS_LN)     # LN affine folded into w1
        u = jax.nn.gelu(jnp.dot(hc, w1, preferred_element_type=f32) + b1)      # [BC, 256]
        # one GEMM -> [mixer output | mean-shifted gate logits]
        zg = jnp.dot(u, w2, preferred_element_type=f32) + b2                    # [BC, 256]
        z, a = zg[:, :ND], zg[:, ND:]
        # gated attention: exact softmax (mean-shift folded into w2's gate half)
        e = jnp.exp(a)
        den = jnp.dot(e, s_den, preferred_element_type=f32)       # group sum in lane space
        return h + z * (e * pl.reciprocal(den, approx=True))

    for l in range(L):                                             # static unrolled layers
        woff = l * LROWS
        boff = l * BROWS
        # patch mixing (mix over num_patches; softmax groups are stride-D lanes)
        h = mixer_block(
            h,
            w256_ref[woff:woff + ND, :],               bias_ref[boff:boff + BC, :],
            w256_ref[woff + ND:woff + ND + NW, :],     bias_ref[boff + BC:boff + 2 * BC, :],
            w128_ref[R_SP:R_SP + ND, :])
        # feature mixing (mix over d_model; softmax groups are contiguous D lanes)
        h = mixer_block(
            h,
            w256_ref[woff + ND + NW:woff + 2 * ND + NW, :],
            bias_ref[boff + 2 * BC:boff + 3 * BC, :],
            w256_ref[woff + 2 * ND + NW:woff + 2 * ND + 2 * NW, :],
            bias_ref[boff + 3 * BC:boff + 4 * BC, :],
            w128_ref[R_SF:R_SF + ND, :])

    # ---- prediction head (flatten is free: h already is [BC, N*D]) + inverse scaling ----
    out = jnp.dot(h, w128_ref[R_HEAD:R_HEAD + ND, :], preferred_element_type=f32)   # [BC,128]
    out = out[:, :PRED] + bias_ref[R_BHEAD:R_BHEAD + BC, :PRED]                      # [BC,PRED]
    o_ref[...] = (out * scale + loc).astype(o_ref.dtype)


# -------------------------- wrapper-side (offline) weight packing ----------------------
def pack_params(p):
    f32 = jnp.float32
    I_N = jnp.eye(N, dtype=f32)
    I_D = jnp.eye(D, dtype=f32)
    J_N = jnp.ones((N, N), f32)
    J_D = jnp.ones((D, D), f32)

    w256_rows, bias_rows = [], []
    for l in range(L):
        # ----- patch mixer weights (lane layout: index n*D + d) -----
        g1, b1 = p["ln1_g"][l, 0], p["ln1_b"][l, 0]
        wp1, bp1 = p["wp1"][l], p["bp1"][l, 0]
        wp2, bp2 = p["wp2"][l], p["bp2"][l, 0]
        gpw, gpb = p["gpw"][l], p["gpb"][l, 0]

        w1p = jnp.kron(wp1, jnp.diag(g1))                                        # [128,256]
        b1p = (bp1[:, None] + wp1.sum(0)[:, None] * b1[None, :]).reshape(-1)     # [256]

        gpw_s = gpw @ (I_N - J_N / N)            # fold mean-shift of the gate softmax
        gpb_s = gpb - jnp.mean(gpb)
        w2p = jnp.concatenate([jnp.kron(wp2, I_D),
                               jnp.kron(wp2 @ gpw_s, I_D)], axis=1)               # [256,256]
        b2p = jnp.concatenate([jnp.repeat(bp2, D),
                               jnp.repeat(bp2 @ gpw_s + gpb_s, D)])               # [256]

        # ----- feature mixer weights -----
        g2, b2 = p["ln2_g"][l, 0], p["ln2_b"][l, 0]
        wf1, bf1 = p["wf1"][l], p["bf1"][l, 0]
        wf2, bf2 = p["wf2"][l], p["bf2"][l, 0]
        gfw, gfb = p["gfw"][l], p["gfb"][l, 0]

        w1f = jnp.kron(I_N, g2[:, None] * wf1)                                    # [128,256]
        b1f = jnp.tile(bf1 + b2 @ wf1, N)                                         # [256]

        gfw_s = gfw @ (I_D - J_D / D)
        gfb_s = gfb - jnp.mean(gfb)
        w2f = jnp.concatenate([jnp.kron(I_N, wf2),
                               jnp.kron(I_N, wf2 @ gfw_s)], axis=1)                # [256,256]
        b2f = jnp.concatenate([jnp.tile(bf2, N),
                               jnp.tile(bf2 @ gfw_s + gfb_s, N)])                  # [256]

        w256_rows += [w1p, w2p, w1f, w2f]
        bias_rows += [b1p, b2p, b1f, b2f]

    w256 = jnp.concatenate(w256_rows, axis=0).astype(f32)          # [L*768, 256]

    # shared / embedding / head slab, 128 lanes wide
    m_d = jnp.kron(I_N, J_D / D)                                   # LN group-mean matrix
    s_p = jnp.kron(J_N, I_D)                                       # patch softmax group-sum
    s_f = jnp.kron(I_N, J_D)                                       # feature softmax group-sum
    w_emb_k = jnp.kron(I_N, p["w_emb"])                            # [T, 128]
    w_head = jnp.pad(p["w_head"], ((0, 0), (0, ND - PRED)))        # [128, 128]
    w128 = jnp.concatenate([m_d, s_p, s_f, w_emb_k, w_head], axis=0).astype(f32)  # [576,128]

    # biases, each replicated over BC sublanes so the in-kernel add is a plain elementwise add
    bias_rows += [jnp.pad(jnp.tile(p["b_emb"][0], N), (0, NW - ND)),
                  jnp.pad(p["b_head"][0], (0, NW - PRED))]
    bias = jnp.concatenate(
        [jnp.broadcast_to(b[None, :], (BC, NW)) for b in bias_rows], axis=0).astype(f32)
    return w256, w128, bias                                        # ~1.9 MiB total (f32)


def patchtsmixer_forward(x_enc, params):
    """x_enc: [B, T, C] float32  ->  forecast [B, PRED, C]."""
    w256, w128, bias = pack_params(params)           # offline / one-time weight repacking
    x_bct = jnp.transpose(x_enc, (0, 2, 1)).reshape(BC, T)

    # advisory cost estimate for the XLA scheduler
    mm = lambda m, k, n: 2 * m * k * n
    flops = mm(BC, T, ND) + mm(BC, ND, ND)                         # embedding + head
    flops += L * 2 * (3 * mm(BC, ND, ND) + mm(BC, ND, NW) + mm(BC, NW, NW))
    transcendentals = BC * T + L * 2 * (BC * NW + 2 * BC * ND)
    bytes_accessed = 4 * (x_bct.size + w256.size + w128.size + bias.size + BC * PRED)

    y = pl.pallas_call(
        mixer_kernel,
        out_shape=jax.ShapeDtypeStruct((BC, PRED), jnp.float32),
        grid_spec=pltpu.PrefetchScalarGridSpec(
            num_scalar_prefetch=0,
            grid=(1,),                     # single fused invocation; <4 MiB VMEM footprint
            in_specs=[pl.BlockSpec((BC, T), lambda i: (0, 0)),
                      pl.BlockSpec(w256.shape, lambda i: (0, 0)),
                      pl.BlockSpec(w128.shape, lambda i: (0, 0)),
                      pl.BlockSpec(bias.shape, lambda i: (0, 0))],
            out_specs=pl.BlockSpec((BC, PRED), lambda i: (0, 0)),
        ),
        compiler_params=pltpu.CompilerParams(dimension_semantics=("arbitrary",)),
        cost_estimate=pl.CostEstimate(flops=flops, transcendentals=transcendentals,
                                      bytes_accessed=bytes_accessed),
    )(x_bct, w256, w128, bias)

    return y.reshape(B, C, PRED).transpose(0, 2, 1)                # [B, PRED, C]


# ------------------------------- pure-JAX reference ------------------------------------
def _ln(h, g, b):
    mu = jnp.mean(h, axis=-1, keepdims=True)
    var = jnp.mean((h - mu) ** 2, axis=-1, keepdims=True)
    return (h - mu) * jax.lax.rsqrt(var + EPS_LN) * g + b


def reference_forward(x_enc, p):
    loc = jnp.mean(x_enc, axis=1, keepdims=True)
    var = jnp.mean((x_enc - loc) ** 2, axis=1, keepdims=True)
    scale = jnp.sqrt(var + EPS_SCALE)
    xs = (x_enc - loc) / scale
    xp = xs.reshape(B, N, P, C).transpose(0, 3, 1, 2)                      # [B, C, N, P]
    h = xp @ p["w_emb"] + p["b_emb"]
    for l in range(L):
        res = h
        hn = _ln(h, p["ln1_g"][l], p["ln1_b"][l])
        ht = jnp.swapaxes(hn, -1, -2)
        z = jax.nn.gelu(ht @ p["wp1"][l] + p["bp1"][l]) @ p["wp2"][l] + p["bp2"][l]
        z = z * jax.nn.softmax(z @ p["gpw"][l] + p["gpb"][l], axis=-1)
        h = jnp.swapaxes(z, -1, -2) + res
        res = h
        hn = _ln(h, p["ln2_g"][l], p["ln2_b"][l])
        z = jax.nn.gelu(hn @ p["wf1"][l] + p["bf1"][l]) @ p["wf2"][l] + p["bf2"][l]
        z = z * jax.nn.softmax(z @ p["gfw"][l] + p["gfb"][l], axis=-1)
        h = z + res
    flat = h.reshape(B, C, N * D)
    y = (flat @ p["w_head"] + p["b_head"]).transpose(0, 2, 1)
    return y * scale + loc


# ------------------------------------ params -------------------------------------------
def init_params(key):
    ks = jax.random.split(key, 16)
    s = 0.02
    return {
        "w_emb": jax.random.normal(ks[0], (P, D), jnp.float32) * s,
        "b_emb": jnp.zeros((1, D), jnp.float32),
        "ln1_g": jnp.ones((L, 1, D), jnp.float32),
        "ln1_b": jnp.zeros((L, 1, D), jnp.float32),
        "wp1":   jax.random.normal(ks[1], (L, N, NE), jnp.float32) * s,
        "bp1":   jnp.zeros((L, 1, NE), jnp.float32),
        "wp2":   jax.random.normal(ks[2], (L, NE, N), jnp.float32) * s,
        "bp2":   jnp.zeros((L, 1, N), jnp.float32),
        "gpw":   jax.random.normal(ks[3], (L, N, N), jnp.float32) * s,
        "gpb":   jnp.zeros((L, 1, N), jnp.float32),
        "ln2_g": jnp.ones((L, 1, D), jnp.float32),
        "ln2_b": jnp.zeros((L, 1, D), jnp.float32),
        "wf1":   jax.random.normal(ks[4], (L, D, DE), jnp.float32) * s,
        "bf1":   jnp.zeros((L, 1, DE), jnp.float32),
        "wf2":   jax.random.normal(ks[5], (L, DE, D), jnp.float32) * s,
        "bf2":   jnp.zeros((L, 1, D), jnp.float32),
        "gfw":   jax.random.normal(ks[6], (L, D, D), jnp.float32) * s,
        "gfb":   jnp.zeros((L, 1, D), jnp.float32),
        "w_head": jax.random.normal(ks[7], (N * D, PRED), jnp.float32) * s,
        "b_head": jnp.zeros((1, PRED), jnp.float32),
    }


if __name__ == "__main__":
    key = jax.random.PRNGKey(0)
    k_x, k_p = jax.random.split(key)
    x_enc = jax.random.normal(k_x, (B, T, C), jnp.float32)
    # unused by PatchTSMixer (only past values are consumed) — kept for signature parity
    x_mark_enc = jnp.zeros((B, T, 4), jnp.float32)
    x_dec = jnp.zeros((B, PRED, C), jnp.float32)
    x_mark_dec = jnp.zeros((B, PRED, 4), jnp.float32)

    params = init_params(k_p)

    out = patchtsmixer_forward(x_enc, params)
    out = jax.block_until_ready(out)

    ref = reference_forward(x_enc, params)
    assert out.shape == (B, PRED, C), out.shape
    assert jnp.allclose(out, ref, rtol=1e-4, atol=1e-4), float(jnp.max(jnp.abs(out - ref)))

    print("KERNEL_OK")
</pallas_src>

<mosaic_0001>
module attributes {stable_mosaic.version = 11 : i64} {
  func.func @mixer_kernel(%arg0: i32, %arg1: memref<8x64xf32, #tpu.memory_space<vmem>>, %arg2: memref<1536x256xf32, #tpu.memory_space<vmem>>, %arg3: memref<576x128xf32, #tpu.memory_space<vmem>>, %arg4: memref<80x256xf32, #tpu.memory_space<vmem>>, %arg5: memref<8x16xf32, #tpu.memory_space<vmem>>) attributes {dimension_semantics = [#tpu.dimension_semantics<arbitrary>], iteration_bounds = array<i64: 1>, scalar_prefetch = 0 : i64, scratch_operands = 0 : i64, tpu.core_type = #tpu.core_type<tc>, window_params = [{pipeline_mode = #tpu.pipeline_mode<synchronous>, transform_indices = @transform_0, window_bounds = array<i64: 8, 64>}, {pipeline_mode = #tpu.pipeline_mode<synchronous>, transform_indices = @transform_1, window_bounds = array<i64: 1536, 256>}, {pipeline_mode = #tpu.pipeline_mode<synchronous>, transform_indices = @transform_2, window_bounds = array<i64: 576, 128>}, {pipeline_mode = #tpu.pipeline_mode<synchronous>, transform_indices = @transform_3, window_bounds = array<i64: 80, 256>}, {pipeline_mode = #tpu.pipeline_mode<synchronous>, transform_indices = @transform_4, window_bounds = array<i64: 8, 16>}]} {
    %c0 = arith.constant 0 : index
    %c0_0 = arith.constant 0 : index
    %0 = vector.load %arg1[%c0, %c0_0] : memref<8x64xf32, #tpu.memory_space<vmem>>, vector<8x64xf32>
    %cst = arith.constant dense<0.000000e+00> : vector<8xf32>
    %1 = vector.multi_reduction <add>, %0, %cst [1] : vector<8x64xf32> to vector<8xf32>
    %2 = vector.shape_cast %1 : vector<8xf32> to vector<8x1xf32>
    %cst_1 = arith.constant 6.400000e+01 : f32
    %3 = vector.broadcast %cst_1 : f32 to vector<8x1xf32>
    %4 = arith.divf %2, %3 : vector<8x1xf32>
    %5 = vector.broadcast %4 : vector<8x1xf32> to vector<8x64xf32>
    %6 = arith.subf %0, %5 : vector<8x64xf32>
    %7 = arith.mulf %6, %6 : vector<8x64xf32>
    %cst_2 = arith.constant dense<0.000000e+00> : vector<8xf32>
    %8 = vector.multi_reduction <add>, %7, %cst_2 [1] : vector<8x64xf32> to vector<8xf32>
    %9 = vector.shape_cast %8 : vector<8xf32> to vector<8x1xf32>
    %cst_3 = arith.constant 6.400000e+01 : f32
    %10 = vector.broadcast %cst_3 : f32 to vector<8x1xf32>
    %11 = arith.divf %9, %10 : vector<8x1xf32>
    %cst_4 = arith.constant 9.99999974E-6 : f32
    %12 = vector.broadcast %cst_4 : f32 to vector<8x1xf32>
    %13 = arith.addf %11, %12 : vector<8x1xf32>
    %14 = math.sqrt %13 : vector<8x1xf32>
    %15 = vector.broadcast %4 : vector<8x1xf32> to vector<8x64xf32>
    %16 = arith.subf %0, %15 : vector<8x64xf32>
    %17 = vector.broadcast %14 : vector<8x1xf32> to vector<8x64xf32>
    %18 = arith.divf %16, %17 : vector<8x64xf32>
    %c384 = arith.constant 384 : index
    %c0_5 = arith.constant 0 : index
    %19 = vector.load %arg3[%c384, %c0_5] : memref<576x128xf32, #tpu.memory_space<vmem>>, vector<64x128xf32>
    %cst_6 = arith.constant dense<0.000000e+00> : vector<8x128xf32>
    %20 = tpu.matmul %18, %19, %cst_6 {dimension_numbers = #tpu.dot_dimension_numbers<[1], [0], [0], [1], [0, 0, 1, 1], [], []>} : vector<8x64xf32>, vector<64x128xf32>, vector<8x128xf32> -> vector<8x128xf32>
    %c64 = arith.constant 64 : index
    %c0_7 = arith.constant 0 : index
    %21 = vector.load %arg4[%c64, %c0_7] : memref<80x256xf32, #tpu.memory_space<vmem>>, vector<8x128xf32>
    %22 = arith.addf %20, %21 : vector<8x128xf32>
    %c0_8 = arith.constant 0 : index
    %c0_9 = arith.constant 0 : index
    %23 = vector.load %arg2[%c0_8, %c0_9] : memref<1536x256xf32, #tpu.memory_space<vmem>>, vector<128x256xf32>
    %c0_10 = arith.constant 0 : index
    %c0_11 = arith.constant 0 : index
    %24 = vector.load %arg4[%c0_10, %c0_11] : memref<80x256xf32, #tpu.memory_space<vmem>>, vector<8x256xf32>
    %c128 = arith.constant 128 : index
    %c0_12 = arith.constant 0 : index
    %25 = vector.load %arg2[%c128, %c0_12] : memref<1536x256xf32, #tpu.memory_space<vmem>>, vector<256x256xf32>
    %c8 = arith.constant 8 : index
    %c0_13 = arith.constant 0 : index
    %26 = vector.load %arg4[%c8, %c0_13] : memref<80x256xf32, #tpu.memory_space<vmem>>, vector<8x256xf32>
    %c128_14 = arith.constant 128 : index
    %c0_15 = arith.constant 0 : index
    %27 = vector.load %arg3[%c128_14, %c0_15] : memref<576x128xf32, #tpu.memory_space<vmem>>, vector<128x128xf32>
    %c0_16 = arith.constant 0 : index
    %c0_17 = arith.constant 0 : index
    %28 = vector.load %arg3[%c0_16, %c0_17] : memref<576x128xf32, #tpu.memory_space<vmem>>, vector<128x128xf32>
    %cst_18 = arith.constant dense<0.000000e+00> : vector<8x128xf32>
    %29 = tpu.matmul %22, %28, %cst_18 {dimension_numbers = #tpu.dot_dimension_numbers<[1], [0], [0], [1], [0, 0, 1, 1], [], []>} : vector<8x128xf32>, vector<128x128xf32>, vector<8x128xf32> -> vector<8x128xf32>
    %30 = arith.mulf %22, %22 : vector<8x128xf32>
    %cst_19 = arith.constant dense<0.000000e+00> : vector<8x128xf32>
    %31 = tpu.matmul %30, %28, %cst_19 {dimension_numbers = #tpu.dot_dimension_numbers<[1], [0], [0], [1], [0, 0, 1, 1], [], []>} : vector<8x128xf32>, vector<128x128xf32>, vector<8x128xf32> -> vector<8x128xf32>
    %32 = arith.subf %22, %29 : vector<8x128xf32>
    %33 = arith.mulf %29, %29 : vector<8x128xf32>
    %34 = arith.subf %31, %33 : vector<8x128xf32>
    %cst_20 = arith.constant 9.99999974E-6 : f32
    %35 = vector.broadcast %cst_20 : f32 to vector<8x128xf32>
    %36 = arith.addf %34, %35 : vector<8x128xf32>
    %37 = math.rsqrt %36 : vector<8x128xf32>
    %38 = arith.mulf %32, %37 : vector<8x128xf32>
    %cst_21 = arith.constant dense<0.000000e+00> : vector<8x256xf32>
    %39 = tpu.matmul %38, %23, %cst_21 {dimension_numbers = #tpu.dot_dimension_numbers<[1], [0], [0], [1], [0, 0, 1, 1], [], []>} : vector<8x128xf32>, vector<128x256xf32>, vector<8x256xf32> -> vector<8x256xf32>
    %40 = arith.addf %39, %24 : vector<8x256xf32>
    %41 = arith.mulf %40, %40 : vector<8x256xf32>
    %42 = arith.mulf %40, %41 : vector<8x256xf32>
    %cst_22 = arith.constant 4.471500e-02 : f32
    %43 = vector.broadcast %cst_22 : f32 to vector<8x256xf32>
    %44 = arith.mulf %43, %42 : vector<8x256xf32>
    %45 = arith.addf %40, %44 : vector<8x256xf32>
    %cst_23 = arith.constant 0.797884583 : f32
    %46 = vector.broadcast %cst_23 : f32 to vector<8x256xf32>
    %47 = arith.mulf %46, %45 : vector<8x256xf32>
    %48 = math.tanh %47 : vector<8x256xf32>
    %cst_24 = arith.constant 1.000000e+00 : f32
    %49 = vector.broadcast %cst_24 : f32 to vector<8x256xf32>
    %50 = arith.addf %49, %48 : vector<8x256xf32>
    %cst_25 = arith.constant 5.000000e-01 : f32
    %51 = vector.broadcast %cst_25 : f32 to vector<8x256xf32>
    %52 = arith.mulf %51, %50 : vector<8x256xf32>
    %53 = arith.mulf %40, %52 : vector<8x256xf32>
    %cst_26 = arith.constant dense<0.000000e+00> : vector<8x256xf32>
    %54 = tpu.matmul %53, %25, %cst_26 {dimension_numbers = #tpu.dot_dimension_numbers<[1], [0], [0], [1], [0, 0, 1, 1], [], []>} : vector<8x256xf32>, vector<256x256xf32>, vector<8x256xf32> -> vector<8x256xf32>
    %55 = arith.addf %54, %26 : vector<8x256xf32>
    %56 = vector.extract_strided_slice %55 {offsets = [0, 0], sizes = [8, 128], strides = [1, 1]} : vector<8x256xf32> to vector<8x128xf32>
    %57 = vector.extract_strided_slice %55 {offsets = [0, 128], sizes = [8, 128], strides = [1, 1]} : vector<8x256xf32> to vector<8x128xf32>
    %58 = math.exp %57 : vector<8x128xf32>
    %cst_27 = arith.constant dense<0.000000e+00> : vector<8x128xf32>
    %59 = tpu.matmul %58, %27, %cst_27 {dimension_numbers = #tpu.dot_dimension_numbers<[1], [0], [0], [1], [0, 0, 1, 1], [], []>} : vector<8x128xf32>, vector<128x128xf32>, vector<8x128xf32> -> vector<8x128xf32>
    %60 = tpu.reciprocal %59 {approx = true} : vector<8x128xf32> -> vector<8x128xf32>
    %61 = arith.mulf %58, %60 : vector<8x128xf32>
    %62 = arith.mulf %56, %61 : vector<8x128xf32>
    %63 = arith.addf %22, %62 : vector<8x128xf32>
    %c384_28 = arith.constant 384 : index
    %c0_29 = arith.constant 0 : index
    %64 = vector.load %arg2[%c384_28, %c0_29] : memref<1536x256xf32, #tpu.memory_space<vmem>>, vector<128x256xf32>
    %c16 = arith.constant 16 : index
    %c0_30 = arith.constant 0 : index
    %65 = vector.load %arg4[%c16, %c0_30] : memref<80x256xf32, #tpu.memory_space<vmem>>, vector<8x256xf32>
    %c512 = arith.constant 512 : index
    %c0_31 = arith.constant 0 : index
    %66 = vector.load %arg2[%c512, %c0_31] : memref<1536x256xf32, #tpu.memory_space<vmem>>, vector<256x256xf32>
    %c24 = arith.constant 24 : index
    %c0_32 = arith.constant 0 : index
    %67 = vector.load %arg4[%c24, %c0_32] : memref<80x256xf32, #tpu.memory_space<vmem>>, vector<8x256xf32>
    %c256 = arith.constant 256 : index
    %c0_33 = arith.constant 0 : index
    %68 = vector.load %arg3[%c256, %c0_33] : memref<576x128xf32, #tpu.memory_space<vmem>>, vector<128x128xf32>
    %c0_34 = arith.constant 0 : index
    %c0_35 = arith.constant 0 : index
    %69 = vector.load %arg3[%c0_34, %c0_35] : memref<576x128xf32, #tpu.memory_space<vmem>>, vector<128x128xf32>
    %cst_36 = arith.constant dense<0.000000e+00> : vector<8x128xf32>
    %70 = tpu.matmul %63, %69, %cst_36 {dimension_numbers = #tpu.dot_dimension_numbers<[1], [0], [0], [1], [0, 0, 1, 1], [], []>} : vector<8x128xf32>, vector<128x128xf32>, vector<8x128xf32> -> vector<8x128xf32>
    %71 = arith.mulf %63, %63 : vector<8x128xf32>
    %cst_37 = arith.constant dense<0.000000e+00> : vector<8x128xf32>
    %72 = tpu.matmul %71, %69, %cst_37 {dimension_numbers = #tpu.dot_dimension_numbers<[1], [0], [0], [1], [0, 0, 1, 1], [], []>} : vector<8x128xf32>, vector<128x128xf32>, vector<8x128xf32> -> vector<8x128xf32>
    %73 = arith.subf %63, %70 : vector<8x128xf32>
    %74 = arith.mulf %70, %70 : vector<8x128xf32>
    %75 = arith.subf %72, %74 : vector<8x128xf32>
    %cst_38 = arith.constant 9.99999974E-6 : f32
    %76 = vector.broadcast %cst_38 : f32 to vector<8x128xf32>
    %77 = arith.addf %75, %76 : vector<8x128xf32>
    %78 = math.rsqrt %77 : vector<8x128xf32>
    %79 = arith.mulf %73, %78 : vector<8x128xf32>
    %cst_39 = arith.constant dense<0.000000e+00> : vector<8x256xf32>
    %80 = tpu.matmul %79, %64, %cst_39 {dimension_numbers = #tpu.dot_dimension_numbers<[1], [0], [0], [1], [0, 0, 1, 1], [], []>} : vector<8x128xf32>, vector<128x256xf32>, vector<8x256xf32> -> vector<8x256xf32>
    %81 = arith.addf %80, %65 : vector<8x256xf32>
    %82 = arith.mulf %81, %81 : vector<8x256xf32>
    %83 = arith.mulf %81, %82 : vector<8x256xf32>
    %cst_40 = arith.constant 4.471500e-02 : f32
    %84 = vector.broadcast %cst_40 : f32 to vector<8x256xf32>
    %85 = arith.mulf %84, %83 : vector<8x256xf32>
    %86 = arith.addf %81, %85 : vector<8x256xf32>
    %cst_41 = arith.constant 0.797884583 : f32
    %87 = vector.broadcast %cst_41 : f32 to vector<8x256xf32>
    %88 = arith.mulf %87, %86 : vector<8x256xf32>
    %89 = math.tanh %88 : vector<8x256xf32>
    %cst_42 = arith.constant 1.000000e+00 : f32
    %90 = vector.broadcast %cst_42 : f32 to vector<8x256xf32>
    %91 = arith.addf %90, %89 : vector<8x256xf32>
    %cst_43 = arith.constant 5.000000e-01 : f32
    %92 = vector.broadcast %cst_43 : f32 to vector<8x256xf32>
    %93 = arith.mulf %92, %91 : vector<8x256xf32>
    %94 = arith.mulf %81, %93 : vector<8x256xf32>
    %cst_44 = arith.constant dense<0.000000e+00> : vector<8x256xf32>
    %95 = tpu.matmul %94, %66, %cst_44 {dimension_numbers = #tpu.dot_dimension_numbers<[1], [0], [0], [1], [0, 0, 1, 1], [], []>} : vector<8x256xf32>, vector<256x256xf32>, vector<8x256xf32> -> vector<8x256xf32>
    %96 = arith.addf %95, %67 : vector<8x256xf32>
    %97 = vector.extract_strided_slice %96 {offsets = [0, 0], sizes = [8, 128], strides = [1, 1]} : vector<8x256xf32> to vector<8x128xf32>
    %98 = vector.extract_strided_slice %96 {offsets = [0, 128], sizes = [8, 128], strides = [1, 1]} : vector<8x256xf32> to vector<8x128xf32>
    %99 = math.exp %98 : vector<8x128xf32>
    %cst_45 = arith.constant dense<0.000000e+00> : vector<8x128xf32>
    %100 = tpu.matmul %99, %68, %cst_45 {dimension_numbers = #tpu.dot_dimension_numbers<[1], [0], [0], [1], [0, 0, 1, 1], [], []>} : vector<8x128xf32>, vector<128x128xf32>, vector<8x128xf32> -> vector<8x128xf32>
    %101 = tpu.reciprocal %100 {approx = true} : vector<8x128xf32> -> vector<8x128xf32>
    %102 = arith.mulf %99, %101 : vector<8x128xf32>
    %103 = arith.mulf %97, %102 : vector<8x128xf32>
    %104 = arith.addf %63, %103 : vector<8x128xf32>
    %c768 = arith.constant 768 : index
    %c0_46 = arith.constant 0 : index
    %105 = vector.load %arg2[%c768, %c0_46] : memref<1536x256xf32, #tpu.memory_space<vmem>>, vector<128x256xf32>
    %c32 = arith.constant 32 : index
    %c0_47 = arith.constant 0 : index
    %106 = vector.load %arg4[%c32, %c0_47] : memref<80x256xf32, #tpu.memory_space<vmem>>, vector<8x256xf32>
    %c896 = arith.constant 896 : index
    %c0_48 = arith.constant 0 : index
    %107 = vector.load %arg2[%c896, %c0_48] : memref<1536x256xf32, #tpu.memory_space<vmem>>, vector<256x256xf32>
    %c40 = arith.constant 40 : index
    %c0_49 = arith.constant 0 : index
    %108 = vector.load %arg4[%c40, %c0_49] : memref<80x256xf32, #tpu.memory_space<vmem>>, vector<8x256xf32>
    %c128_50 = arith.constant 128 : index
    %c0_51 = arith.constant 0 : index
    %109 = vector.load %arg3[%c128_50, %c0_51] : memref<576x128xf32, #tpu.memory_space<vmem>>, vector<128x128xf32>
    %c0_52 = arith.constant 0 : index
    %c0_53 = arith.constant 0 : index
    %110 = vector.load %arg3[%c0_52, %c0_53] : memref<576x128xf32, #tpu.memory_space<vmem>>, vector<128x128xf32>
    %cst_54 = arith.constant dense<0.000000e+00> : vector<8x128xf32>
    %111 = tpu.matmul %104, %110, %cst_54 {dimension_numbers = #tpu.dot_dimension_numbers<[1], [0], [0], [1], [0, 0, 1, 1], [], []>} : vector<8x128xf32>, vector<128x128xf32>, vector<8x128xf32> -> vector<8x128xf32>
    %112 = arith.mulf %104, %104 : vector<8x128xf32>
    %cst_55 = arith.constant dense<0.000000e+00> : vector<8x128xf32>
    %113 = tpu.matmul %112, %110, %cst_55 {dimension_numbers = #tpu.dot_dimension_numbers<[1], [0], [0], [1], [0, 0, 1, 1], [], []>} : vector<8x128xf32>, vector<128x128xf32>, vector<8x128xf32> -> vector<8x128xf32>
    %114 = arith.subf %104, %111 : vector<8x128xf32>
    %115 = arith.mulf %111, %111 : vector<8x128xf32>
    %116 = arith.subf %113, %115 : vector<8x128xf32>
    %cst_56 = arith.constant 9.99999974E-6 : f32
    %117 = vector.broadcast %cst_56 : f32 to vector<8x128xf32>
    %118 = arith.addf %116, %117 : vector<8x128xf32>
    %119 = math.rsqrt %118 : vector<8x128xf32>
    %120 = arith.mulf %114, %119 : vector<8x128xf32>
    %cst_57 = arith.constant dense<0.000000e+00> : vector<8x256xf32>
    %121 = tpu.matmul %120, %105, %cst_57 {dimension_numbers = #tpu.dot_dimension_numbers<[1], [0], [0], [1], [0, 0, 1, 1], [], []>} : vector<8x128xf32>, vector<128x256xf32>, vector<8x256xf32> -> vector<8x256xf32>
    %122 = arith.addf %121, %106 : vector<8x256xf32>
    %123 = arith.mulf %122, %122 : vector<8x256xf32>
    %124 = arith.mulf %122, %123 : vector<8x256xf32>
    %cst_58 = arith.constant 4.471500e-02 : f32
    %125 = vector.broadcast %cst_58 : f32 to vector<8x256xf32>
    %126 = arith.mulf %125, %124 : vector<8x256xf32>
    %127 = arith.addf %122, %126 : vector<8x256xf32>
    %cst_59 = arith.constant 0.797884583 : f32
    %128 = vector.broadcast %cst_59 : f32 to vector<8x256xf32>
    %129 = arith.mulf %128, %127 : vector<8x256xf32>
    %130 = math.tanh %129 : vector<8x256xf32>
    %cst_60 = arith.constant 1.000000e+00 : f32
    %131 = vector.broadcast %cst_60 : f32 to vector<8x256xf32>
    %132 = arith.addf %131, %130 : vector<8x256xf32>
    %cst_61 = arith.constant 5.000000e-01 : f32
    %133 = vector.broadcast %cst_61 : f32 to vector<8x256xf32>
    %134 = arith.mulf %133, %132 : vector<8x256xf32>
    %135 = arith.mulf %122, %134 : vector<8x256xf32>
    %cst_62 = arith.constant dense<0.000000e+00> : vector<8x256xf32>
    %136 = tpu.matmul %135, %107, %cst_62 {dimension_numbers = #tpu.dot_dimension_numbers<[1], [0], [0], [1], [0, 0, 1, 1], [], []>} : vector<8x256xf32>, vector<256x256xf32>, vector<8x256xf32> -> vector<8x256xf32>
    %137 = arith.addf %136, %108 : vector<8x256xf32>
    %138 = vector.extract_strided_slice %137 {offsets = [0, 0], sizes = [8, 128], strides = [1, 1]} : vector<8x256xf32> to vector<8x128xf32>
    %139 = vector.extract_strided_slice %137 {offsets = [0, 128], sizes = [8, 128], strides = [1, 1]} : vector<8x256xf32> to vector<8x128xf32>
    %140 = math.exp %139 : vector<8x128xf32>
    %cst_63 = arith.constant dense<0.000000e+00> : vector<8x128xf32>
    %141 = tpu.matmul %140, %109, %cst_63 {dimension_numbers = #tpu.dot_dimension_numbers<[1], [0], [0], [1], [0, 0, 1, 1], [], []>} : vector<8x128xf32>, vector<128x128xf32>, vector<8x128xf32> -> vector<8x128xf32>
    %142 = tpu.reciprocal %141 {approx = true} : vector<8x128xf32> -> vector<8x128xf32>
    %143 = arith.mulf %140, %142 : vector<8x128xf32>
    %144 = arith.mulf %138, %143 : vector<8x128xf32>
    %145 = arith.addf %104, %144 : vector<8x128xf32>
    %c1152 = arith.constant 1152 : index
    %c0_64 = arith.constant 0 : index
    %146 = vector.load %arg2[%c1152, %c0_64] : memref<1536x256xf32, #tpu.memory_space<vmem>>, vector<128x256xf32>
    %c48 = arith.constant 48 : index
    %c0_65 = arith.constant 0 : index
    %147 = vector.load %arg4[%c48, %c0_65] : memref<80x256xf32, #tpu.memory_space<vmem>>, vector<8x256xf32>
    %c1280 = arith.constant 1280 : index
    %c0_66 = arith.constant 0 : index
    %148 = vector.load %arg2[%c1280, %c0_66] : memref<1536x256xf32, #tpu.memory_space<vmem>>, vector<256x256xf32>
    %c56 = arith.constant 56 : index
    %c0_67 = arith.constant 0 : index
    %149 = vector.load %arg4[%c56, %c0_67] : memref<80x256xf32, #tpu.memory_space<vmem>>, vector<8x256xf32>
    %c256_68 = arith.constant 256 : index
    %c0_69 = arith.constant 0 : index
    %150 = vector.load %arg3[%c256_68, %c0_69] : memref<576x128xf32, #tpu.memory_space<vmem>>, vector<128x128xf32>
    %c0_70 = arith.constant 0 : index
    %c0_71 = arith.constant 0 : index
    %151 = vector.load %arg3[%c0_70, %c0_71] : memref<576x128xf32, #tpu.memory_space<vmem>>, vector<128x128xf32>
    %cst_72 = arith.constant dense<0.000000e+00> : vector<8x128xf32>
    %152 = tpu.matmul %145, %151, %cst_72 {dimension_numbers = #tpu.dot_dimension_numbers<[1], [0], [0], [1], [0, 0, 1, 1], [], []>} : vector<8x128xf32>, vector<128x128xf32>, vector<8x128xf32> -> vector<8x128xf32>
    %153 = arith.mulf %145, %145 : vector<8x128xf32>
    %cst_73 = arith.constant dense<0.000000e+00> : vector<8x128xf32>
    %154 = tpu.matmul %153, %151, %cst_73 {dimension_numbers = #tpu.dot_dimension_numbers<[1], [0], [0], [1], [0, 0, 1, 1], [], []>} : vector<8x128xf32>, vector<128x128xf32>, vector<8x128xf32> -> vector<8x128xf32>
    %155 = arith.subf %145, %152 : vector<8x128xf32>
    %156 = arith.mulf %152, %152 : vector<8x128xf32>
    %157 = arith.subf %154, %156 : vector<8x128xf32>
    %cst_74 = arith.constant 9.99999974E-6 : f32
    %158 = vector.broadcast %cst_74 : f32 to vector<8x128xf32>
    %159 = arith.addf %157, %158 : vector<8x128xf32>
    %160 = math.rsqrt %159 : vector<8x128xf32>
    %161 = arith.mulf %155, %160 : vector<8x128xf32>
    %cst_75 = arith.constant dense<0.000000e+00> : vector<8x256xf32>
    %162 = tpu.matmul %161, %146, %cst_75 {dimension_numbers = #tpu.dot_dimension_numbers<[1], [0], [0], [1], [0, 0, 1, 1], [], []>} : vector<8x128xf32>, vector<128x256xf32>, vector<8x256xf32> -> vector<8x256xf32>
    %163 = arith.addf %162, %147 : vector<8x256xf32>
    %164 = arith.mulf %163, %163 : vector<8x256xf32>
    %165 = arith.mulf %163, %164 : vector<8x256xf32>
    %cst_76 = arith.constant 4.471500e-02 : f32
    %166 = vector.broadcast %cst_76 : f32 to vector<8x256xf32>
    %167 = arith.mulf %166, %165 : vector<8x256xf32>
    %168 = arith.addf %163, %167 : vector<8x256xf32>
    %cst_77 = arith.constant 0.797884583 : f32
    %169 = vector.broadcast %cst_77 : f32 to vector<8x256xf32>
    %170 = arith.mulf %169, %168 : vector<8x256xf32>
    %171 = math.tanh %170 : vector<8x256xf32>
    %cst_78 = arith.constant 1.000000e+00 : f32
    %172 = vector.broadcast %cst_78 : f32 to vector<8x256xf32>
    %173 = arith.addf %172, %171 : vector<8x256xf32>
    %cst_79 = arith.constant 5.000000e-01 : f32
    %174 = vector.broadcast %cst_79 : f32 to vector<8x256xf32>
    %175 = arith.mulf %174, %173 : vector<8x256xf32>
    %176 = arith.mulf %163, %175 : vector<8x256xf32>
    %cst_80 = arith.constant dense<0.000000e+00> : vector<8x256xf32>
    %177 = tpu.matmul %176, %148, %cst_80 {dimension_numbers = #tpu.dot_dimension_numbers<[1], [0], [0], [1], [0, 0, 1, 1], [], []>} : vector<8x256xf32>, vector<256x256xf32>, vector<8x256xf32> -> vector<8x256xf32>
    %178 = arith.addf %177, %149 : vector<8x256xf32>
    %179 = vector.extract_strided_slice %178 {offsets = [0, 0], sizes = [8, 128], strides = [1, 1]} : vector<8x256xf32> to vector<8x128xf32>
    %180 = vector.extract_strided_slice %178 {offsets = [0, 128], sizes = [8, 128], strides = [1, 1]} : vector<8x256xf32> to vector<8x128xf32>
    %181 = math.exp %180 : vector<8x128xf32>
    %cst_81 = arith.constant dense<0.000000e+00> : vector<8x128xf32>
    %182 = tpu.matmul %181, %150, %cst_81 {dimension_numbers = #tpu.dot_dimension_numbers<[1], [0], [0], [1], [0, 0, 1, 1], [], []>} : vector<8x128xf32>, vector<128x128xf32>, vector<8x128xf32> -> vector<8x128xf32>
    %183 = tpu.reciprocal %182 {approx = true} : vector<8x128xf32> -> vector<8x128xf32>
    %184 = arith.mulf %181, %183 : vector<8x128xf32>
    %185 = arith.mulf %179, %184 : vector<8x128xf32>
    %186 = arith.addf %145, %185 : vector<8x128xf32>
    %c448 = arith.constant 448 : index
    %c0_82 = arith.constant 0 : index
    %187 = vector.load %arg3[%c448, %c0_82] : memref<576x128xf32, #tpu.memory_space<vmem>>, vector<128x128xf32>
    %cst_83 = arith.constant dense<0.000000e+00> : vector<8x128xf32>
    %188 = tpu.matmul %186, %187, %cst_83 {dimension_numbers = #tpu.dot_dimension_numbers<[1], [0], [0], [1], [0, 0, 1, 1], [], []>} : vector<8x128xf32>, vector<128x128xf32>, vector<8x128xf32> -> vector<8x128xf32>
    %189 = vector.extract_strided_slice %188 {offsets = [0, 0], sizes = [8, 16], strides = [1, 1]} : vector<8x128xf32> to vector<8x16xf32>
    %c72 = arith.constant 72 : index
    %c0_84 = arith.constant 0 : index
    %190 = vector.load %arg4[%c72, %c0_84] : memref<80x256xf32, #tpu.memory_space<vmem>>, vector<8x16xf32>
    %191 = arith.addf %189, %190 : vector<8x16xf32>
    %192 = vector.broadcast %14 : vector<8x1xf32> to vector<8x16xf32>
    %193 = arith.mulf %191, %192 : vector<8x16xf32>
    %194 = vector.broadcast %4 : vector<8x1xf32> to vector<8x16xf32>
    %195 = arith.addf %193, %194 : vector<8x16xf32>
    %c0_85 = arith.constant 0 : index
    %c0_86 = arith.constant 0 : index
    %196 = vector.load %arg5[%c0_85, %c0_86] : memref<8x16xf32, #tpu.memory_space<vmem>>, vector<8x16xf32>
    tpu.vector_store %arg5[%c0_85, %c0_86], %195 {strides = array<i32>} : memref<8x16xf32, #tpu.memory_space<vmem>>, vector<8x16xf32>,
    return
  }
  func.func @transform_0(%arg0: i32) -> (i32, i32) {
    %c0_i32 = arith.constant 0 : i32
    %c0_i32_0 = arith.constant 0 : i32
    %c0_i32_1 = arith.constant 0 : i32
    return %c0_i32, %c0_i32_0 : i32, i32
  }
  func.func @transform_1(%arg0: i32) -> (i32, i32) {
    %c0_i32 = arith.constant 0 : i32
    %c0_i32_0 = arith.constant 0 : i32
    %c0_i32_1 = arith.constant 0 : i32
    return %c0_i32, %c0_i32_0 : i32, i32
  }
  func.func @transform_2(%arg0: i32) -> (i32, i32) {
    %c0_i32 = arith.constant 0 : i32
    %c0_i32_0 = arith.constant 0 : i32
    %c0_i32_1 = arith.constant 0 : i32
    return %c0_i32, %c0_i32_0 : i32, i32
  }
  func.func @transform_3(%arg0: i32) -> (i32, i32) {
    %c0_i32 = arith.constant 0 : i32
    %c0_i32_0 = arith.constant 0 : i32
    %c0_i32_1 = arith.constant 0 : i32
    return %c0_i32, %c0_i32_0 : i32, i32
  }
  func.func @transform_4(%arg0: i32) -> (i32, i32) {
    %c0_i32 = arith.constant 0 : i32
    %c0_i32_0 = arith.constant 0 : i32
    %c0_i32_1 = arith.constant 0 : i32
    return %c0_i32, %c0_i32_0 : i32, i32
  }
}

</mosaic_0001>

<bundles_post_ra>
// kernel: tpu_custom_call.1
= control target key start
LH: loop header
LB: loop body
LE: loop exit
PB: predicated region body
PF: predicated region fallthrough
CT: control target
= control target key end

     0   :  { %9 = vsyncpa [#allocation3], 0  ;;  %s3722_s0 = inlined_call_operand.hbm [shape: f32[8,64], index: 0, kind: input, shape index: {}]   ;;  %s3723_s1 = inlined_call_operand.hbm [shape: f32[1536,256], index: 1, kind: input, shape index: {}]   ;;  %s3724_s2 = inlined_call_operand.hbm [shape: f32[576,128], index: 2, kind: input, shape index: {}]   ;;  %s3725_s3 = inlined_call_operand.hbm [shape: f32[80,256], index: 3, kind: input, shape index: {}]   ;;  %s3726_s4 = inlined_call_operand.hbm [shape: f32[8,16], index: 4, kind: output, shape index: {}]  }
   0x1   :  { %10 = vsyncpa [#allocation6], 0 }
   0x2   :  { %11 = vsyncpa [#allocation9], 0 }
   0x3   :  { %12 = vsyncpa [#allocation4], 0  ;;  %s3181_s15 = smov [#allocation5]  }
   0x4   :  { %s28_s16 = sshll.u32 %s3181_s15, 4  ;;  %s29_s16 = int_to_ptr.vmem [resolvable:$true] %s28_s16 }
   0x5   :  { %s3081_s17 = scalar_lea.vmem %s29_s16, 49152  ;;  %p3086_p1 = scmp.lt.s32.totalorder %s29_s16, %s29_s16 }
   0x6   :  { %p3082_p0 = scmp.ne.s32.totalorder %s29_s16, %s3081_s17  ;;  %p3087_p2 = scmp.lt.s32.totalorder %s3081_s17, %s3081_s17 }
   0x8   :  { %p3088_p3 = por %p3087_p2, %p3086_p1 }
   0xa   :  { %p3089_p4 = pnand %p3088_p3, %p3082_p0 }
   0xc   :  { %3092 = shalt.err (!%p3089_p4)
}
   0xd   :  { %s3182_s18 = smov 256   ;;  %s3183_s19 = smov 16  }
   0xe   :  { %34 = dma.hbm_to_vmem [thread:$0]  %s3723_s1, 49152, %s29_s16, [#allocation6], %s3182_s18, %s3182_s18, %s3183_s19  }
   0xf   :  { %s3184_s22 = smov [#allocation2]   ;;  %s3185_s24 = smov [#allocation7]  }
  0x10   :  { %s19_s23 = sshll.u32 %s3184_s22, 4  ;;  %s40_s25 = sshll.u32 %s3185_s24, 4  ;;  %s20_s23 = int_to_ptr.vmem [resolvable:$true] %s19_s23  ;;  %s41_s25 = int_to_ptr.vmem [resolvable:$true] %s40_s25 }
  0x11   :  { %s3101_s26 = scalar_lea.vmem %s20_s23, 128  ;;  %p3106_p6 = scmp.lt.s32.totalorder %s20_s23, %s20_s23 }
  0x12   :  { %p3102_p5 = scmp.ne.s32.totalorder %s20_s23, %s3101_s26  ;;  %p3107_p7 = scmp.lt.s32.totalorder %s3101_s26, %s3101_s26 }
  0x14   :  { %p3108_p8 = por %p3107_p7, %p3106_p6 }
  0x16   :  { %p3109_p9 = pnand %p3108_p8, %p3102_p5 }
  0x18   :  { %3112 = shalt.err (!%p3109_p9)
}
  0x19   :  { %22 = dma.hbm_to_vmem [thread:$0]  %s3722_s0, 128, %s20_s23, [#allocation3]  }
  0x1a   :  { %s3121_s29 = scalar_lea.vmem %s41_s25, 9216  ;;  %p3126_p11 = scmp.lt.s32.totalorder %s41_s25, %s41_s25 }
  0x1b   :  { %p3122_p10 = scmp.ne.s32.totalorder %s41_s25, %s3121_s29  ;;  %p3127_p12 = scmp.lt.s32.totalorder %s3121_s29, %s3121_s29 }
  0x1d   :  { %p3128_p13 = por %p3127_p12, %p3126_p11 }
  0x1f   :  { %p3129_p0 = pnand %p3128_p13, %p3122_p10 }
  0x21   :  { %3132 = shalt.err (!%p3129_p0)
}
  0x22   :  { %s3186_s1 = smov 128   ;;  %s3187_s30 = smov 8  }
  0x23   :  { %46 = dma.hbm_to_vmem [thread:$0]  %s3724_s2, 9216, %s41_s25, [#allocation6], %s3186_s1, %s3186_s1, %s3187_s30  }
  0x24   :  { %s3188_s7 = smov [#allocation8]  }
  0x25   :  { %s52_s8 = sshll.u32 %s3188_s7, 4  ;;  %s53_s8 = int_to_ptr.vmem [resolvable:$true] %s52_s8 }
  0x26   :  { %s3141_s9 = scalar_lea.vmem %s53_s8, 2560  ;;  %p3146_p2 = scmp.lt.s32.totalorder %s53_s8, %s53_s8 }
  0x27   :  { %p3142_p1 = scmp.ne.s32.totalorder %s53_s8, %s3141_s9  ;;  %p3147_p3 = scmp.lt.s32.totalorder %s3141_s9, %s3141_s9 }
  0x29   :  { %p3148_p4 = por %p3147_p3, %p3146_p2 }
  0x2b   :  { %p3149_p5 = pnand %p3148_p4, %p3142_p1 }
  0x2d   :  { %3152 = shalt.err (!%p3149_p5)
}
  0x2e   :  { %58 = dma.hbm_to_vmem [thread:$0]  %s3725_s3, 2560, %s53_s8, [#allocation9], %s3182_s18, %s3182_s18, %s3183_s19  }
  0x2f   :  { %3173 = dma.done.wait [#allocation3], 128  }
  0x30   :  { %3174 = vsyncadd [#allocation3], 4294967168 }
  0x31   :  { %3175 = dma.done.wait [#allocation6], 58368  }
  0x32   :  { %3176 = vsyncadd [#allocation6], 4294908928 }
  0x33   :  { %3177 = dma.done.wait [#allocation9], 2560  }
  0x34   :  { %3178 = vsyncadd [#allocation9], 4294964736  ;;  %vm72_vm0 = vcmask 523264   ;;  %v71_v0 = vld [vmem:[#allocation2] sm:$0xff]  ;;  %v3189_v8 = vmov 0.0   ;;  %v100_v9 = vld [vmem:[#allocation7 + $0x1b0] sm:$0xff] }
  0x35   :  { %v73_v1 = vsel %vm72_vm0, %v71_v0, 0.0  ;;  %v101_v7 = vld [vmem:[#allocation7 + $0x1b8] sm:$0xff]  ;;  %2496 = vmatprep.subr.mxu0 %v3189_v8  ;;  %vm3190_vm1 = vmmov 0   ;;  %2515 = vmatprep.subr.mxu1 %v3189_v8  ;;  %v99_v10 = vld [vmem:[#allocation7 + $0x1a8] sm:$0xff]  ;;  %v98_v11 = vld [vmem:[#allocation7 + $0x1a0] sm:$0xff]  ;;  %s3191_s2 = smov [#allocation10]  }
  0x36   :  { %74 = vadd.xlane.f32.xlu0 %v73_v1  ;;  %2512 = vmatprep.mubr.msk.f32.mxu0 %vm3190_vm1, %v3189_v8  ;;  %v97_v12 = vld [vmem:[#allocation7 + $0x198] sm:$0xff]  ;;  %v96_v13 = vld [vmem:[#allocation7 + $0x190] sm:$0xff]  ;;  %v95_v14 = vld [vmem:[#allocation7 + $0x188] sm:$0xff]  ;;  %s2254_s3 = sshll.u32 %s3191_s2, 4  ;;  %vm2246_vm4 = vcmask 130048   ;;  %s2255_s3 = int_to_ptr.vmem [resolvable:$true] %s2254_s3 }
  0x37   :  { %2497 = vmatpush3.msra.mxu0 %v101_v7  ;;  %2547 = vmatprep.mubr.msk.f32.mxu1 %vm3190_vm1, %v3189_v8  ;;  %v94_v15 = vld [vmem:[#allocation7 + $0x180] sm:$0xff]  ;;  %v3257_v16 = vld [vmem:[#allocation7 + $0x78] sm:$0xff]  ;;  %v3260_v17 = vld [vmem:[#allocation7 + $0x70] sm:$0xff]  ;;  %s3153_s11 = scalar_lea.vmem %s2255_s3, 128  ;;  %p3158_p7 = scmp.lt.s32.totalorder %s2255_s3, %s2255_s3 }
  0x38   :  { %2498 = vmatprep.subr.mxu0 %v3189_v8  ;;  %2516 = vmatpush3.msra.mxu1 %v3257_v16  ;;  %v3264_v18 = vld [vmem:[#allocation7 + $0x68] sm:$0xff]  ;;  %v3268_v19 = vld [vmem:[#allocation7 + $0x60] sm:$0xff]  ;;  %v3272_v20 = vld [vmem:[#allocation7 + $0x58] sm:$0xff]  ;;  %p3154_p6 = scmp.ne.s32.totalorder %s2255_s3, %s3153_s11  ;;  %p3159_p8 = scmp.lt.s32.totalorder %s3153_s11, %s3153_s11 }
  0x39   :  { %2499 = vmatpush3.msra.mxu0 %v100_v9  ;;  %2517 = vmatprep.subr.mxu1 %v3189_v8  ;;  %v3276_v21 = vld [vmem:[#allocation7 + $0x50] sm:$0xff]  ;;  %v3280_v22 = vld [vmem:[#allocation7 + $0x48] sm:$0xff]  ;;  %v3284_v23 = vld [vmem:[#allocation7 + $0x40] sm:$0xff] }
  0x3a   :  { %2500 = vmatprep.subr.mxu0 %v3189_v8  ;;  %2518 = vmatpush3.msra.mxu1 %v3260_v17  ;;  %v3288_v24 = vld [vmem:[#allocation7 + $0x38] sm:$0xff]  ;;  %v3292_v25 = vld [vmem:[#allocation7 + $0x30] sm:$0xff]  ;;  %v3296_v26 = vld [vmem:[#allocation7 + $0x28] sm:$0xff]  ;;  %p3160_p9 = por %p3159_p8, %p3158_p7 }
  0x3b   :  { %2501 = vmatpush3.msra.mxu0 %v99_v10  ;;  %2519 = vmatprep.subr.mxu1 %v3189_v8  ;;  %v3300_v27 = vld [vmem:[#allocation7 + $0x20] sm:$0xff]  ;;  %v3304_v28 = vld [vmem:[#allocation7 + $0x18] sm:$0xff]  ;;  %v3308_v29 = vld [vmem:[#allocation7 + $0x10] sm:$0xff] }
  0x3c   :  { %2502 = vmatprep.subr.mxu0 %v3189_v8  ;;  %2520 = vmatpush3.msra.mxu1 %v3264_v18  ;;  %v3349_v40 = vld [vmem:[#allocation7 + $0x8] sm:$0xff]  ;;  %v3354_v41 = vld [vmem:[#allocation7] sm:$0xff]  ;;  %v207_v42 = vld [vmem:[#allocation5 + $0xf8] sm:$0xff]  ;;  %p3161_p10 = pnand %p3160_p9, %p3154_p6 }
  0x3d   :  { %2503 = vmatpush3.msra.mxu0 %v98_v11  ;;  %2521 = vmatprep.subr.mxu1 %v3189_v8  ;;  %v102_v43 = vld [vmem:[#allocation8 + $0x80] sm:$0xff]  ;;  %v206_v46 = vld [vmem:[#allocation5 + $0xf0] sm:$0xff]  ;;  %v205_v48 = vld [vmem:[#allocation5 + $0xe8] sm:$0xff] }
  0x3e   :  { %2504 = vmatprep.subr.mxu0 %v3189_v8  ;;  %2522 = vmatpush3.msra.mxu1 %v3268_v19  ;;  %v204_v50 = vld [vmem:[#allocation5 + $0xe0] sm:$0xff]  ;;  %v203_v51 = vld [vmem:[#allocation5 + $0xd8] sm:$0xff]  ;;  %v202_v52 = vld [vmem:[#allocation5 + $0xd0] sm:$0xff] }
  0x3f   :  { %2505 = vmatpush3.msra.mxu0 %v97_v12  ;;  %2523 = vmatprep.subr.mxu1 %v3189_v8  ;;  %v201_v53 = vld [vmem:[#allocation5 + $0xc8] sm:$0xff]  ;;  %v200_v54 = vld [vmem:[#allocation5 + $0xc0] sm:$0xff]  ;;  %v199_v55 = vld [vmem:[#allocation5 + $0xb8] sm:$0xff] }
  0x40   :  { %2506 = vmatprep.subr.mxu0 %v3189_v8  ;;  %2524 = vmatpush3.msra.mxu1 %v3272_v20  ;;  %v198_v56 = vld [vmem:[#allocation5 + $0xb0] sm:$0xff]  ;;  %v197_v57 = vld [vmem:[#allocation5 + $0xa8] sm:$0xff]  ;;  %v196_v58 = vld [vmem:[#allocation5 + $0xa0] sm:$0xff] }
  0x41   :  { %2507 = vmatpush3.msra.mxu0 %v96_v13  ;;  %2525 = vmatprep.subr.mxu1 %v3189_v8  ;;  %v195_v59 = vld [vmem:[#allocation5 + $0x98] sm:$0xff]  ;;  %v194_v60 = vld [vmem:[#allocation5 + $0x90] sm:$0xff]  ;;  %v193_v61 = vld [vmem:[#allocation5 + $0x88] sm:$0xff] }
  0x42   :  { %2508 = vmatprep.subr.mxu0 %v3189_v8  ;;  %2526 = vmatpush3.msra.mxu1 %v3276_v21  ;;  %v192_v62 = vld [vmem:[#allocation5 + $0x80] sm:$0xff]  ;;  %v191_v63 = vld [vmem:[#allocation5 + $0x78] sm:$0xff]  ;;  %v189_v1 = vld [vmem:[#allocation5 + $0x68] sm:$0xff] }
  0x43   :  { %2509 = vmatpush3.msra.mxu0 %v95_v14  ;;  %2527 = vmatprep.subr.mxu1 %v3189_v8  ;;  %v184_v7 = vld [vmem:[#allocation5 + $0x40] sm:$0xff]  ;;  %v183_v9 = vld [vmem:[#allocation5 + $0x38] sm:$0xff]  ;;  %v182_v10 = vld [vmem:[#allocation5 + $0x30] sm:$0xff] }
  0x44   :  { %2510 = vmatprep.subr.mxu0 %v3189_v8  ;;  %2528 = vmatpush3.msra.mxu1 %v3280_v22  ;;  %v181_v11 = vld [vmem:[#allocation5 + $0x28] sm:$0xff]  ;;  %v180_v12 = vld [vmem:[#allocation5 + $0x20] sm:$0xff]  ;;  %v179_v13 = vld [vmem:[#allocation5 + $0x18] sm:$0xff] }
  0x45   :  { %2511 = vmatpush3.msra.mxu0 %v94_v15  ;;  %2529 = vmatprep.subr.mxu1 %v3189_v8  ;;  %v178_v14 = vld [vmem:[#allocation5 + $0x10] sm:$0xff]  ;;  %v177_v15 = vld [vmem:[#allocation5 + $0x8] sm:$0xff] }
  0x46   :  { %2550 = vmatprep.subr.mxu0 %v3189_v8  ;;  %2530 = vmatpush3.msra.mxu1 %v3284_v23 }
  0x47   :  { %2531 = vmatprep.subr.mxu1 %v3189_v8 }
  0x48   :  { %2532 = vmatpush3.msra.mxu1 %v3288_v24 }
  0x49   :  { %2533 = vmatprep.subr.mxu1 %v3189_v8 }
  0x4a   :  { %2534 = vmatpush3.msra.mxu1 %v3292_v25 }
  0x4b   :  { %2535 = vmatprep.subr.mxu1 %v3189_v8 }
  0x4c   :  { %2536 = vmatpush3.msra.mxu1 %v3296_v26 }
  0x4d   :  { %2537 = vmatprep.subr.mxu1 %v3189_v8 }
  0x4e   :  { %2538 = vmatpush3.msra.mxu1 %v3300_v27 }
  0x4f   :  { %2539 = vmatprep.subr.mxu1 %v3189_v8 }
  0x50   :  { %2540 = vmatpush3.msra.mxu1 %v3304_v28 }
  0x51   :  { %2541 = vmatprep.subr.mxu1 %v3189_v8 }
  0x52   :  { %2542 = vmatpush3.msra.mxu1 %v3308_v29 }
  0x53   :  { %2543 = vmatprep.subr.mxu1 %v3189_v8 }
  0x54   :  { %2544 = vmatpush3.msra.mxu1 %v3349_v40 }
  0x55   :  { %2545 = vmatprep.subr.mxu1 %v3189_v8 }
  0x56   :  { %2546 = vmatpush3.msra.mxu1 %v3354_v41 }
  0x57   :  { %455 = vmatprep.subr.mxu1 %v207_v42  ;;  %v233_v42 = vld [vmem:[#allocation5 + $0x1b8] sm:$0xff] }
  0xbf   :  { %v75_v2 = vpop.xlane.xlu0 %74 }
  0xc0   :  { %v3236_v3 = vmul.f32 0.015625, %v75_v2  ;;  %v188_v2 = vld [vmem:[#allocation5 + $0x60] sm:$0xff] }
  0xc2   :  { %v3239_v4 = vsub.f32 %v71_v0, %v3236_v3  ;;  %v190_v0 = vld [vmem:[#allocation5 + $0x70] sm:$0xff] }
  0xc4   :  { %v79_v5 = vmul.f32 %v3239_v4, %v3239_v4 }
  0xc6   :  { %v80_v6 = vsel %vm72_vm0, %v79_v5, 0.0  ;;  %v186_v5 = vld [vmem:[#allocation5 + $0x50] sm:$0xff] }
  0xc7   :  { %81 = vadd.xlane.f32.xlu0 %v80_v6  ;;  %v185_v6 = vld [vmem:[#allocation5 + $0x48] sm:$0xff] }
 0x150   :  { %v82_v30 = vpop.xlane.xlu0 %81 }
 0x151   :  { %v83_v31 = vmul.f32 0.015625, %v82_v30  ;;  %v176_v30 = vld [vmem:[#allocation5] sm:$0xff] }
 0x153   :  { %v84_v32 = vadd.f32 1e-05, %v83_v31  ;;  %v241_v31 = vld [vmem:[#allocation5 + $0x1f8] sm:$0xff] }
 0x155   :  { %2981 = vrsqrt.f32 %v84_v32  ;;  %vm87_vm2 = vcmp.eq.f32.partialorder %v84_v32, inf  ;;  %v90_v35 = vand.u32 2147483648, %v84_v32  ;;  %vm89_vm3 = vcmp.eq.f32.partialorder %v84_v32, 0.0 }
 0x162   :  { %v2982_v33 = vpop.eup %2981 }
 0x163   :  { %v86_v34 = vmul.f32 %v2982_v33, %v84_v32  ;;  %v239_v33 = vld [vmem:[#allocation5 + $0x1e8] sm:$0xff] }
 0x165   :  { %v88_v36 = vsel %vm87_vm2, %v84_v32, %v86_v34  ;;  %v240_v32 = vld [vmem:[#allocation5 + $0x1f0] sm:$0xff]  ;;  %v238_v34 = vld [vmem:[#allocation5 + $0x1e0] sm:$0xff] }
 0x166   :  { %v3314_v37 = vsel %vm89_vm3, %v90_v35, %v88_v36  ;;  %v237_v35 = vld [vmem:[#allocation5 + $0x1d8] sm:$0xff]  ;;  %v236_v36 = vld [vmem:[#allocation5 + $0x1d0] sm:$0xff] }
 0x167   :  { %2983 = vrcp.f32 %v3314_v37 }
 0x174   :  { %v2984_v38 = vpop.eup %2983 }
 0x175   :  { %v93_v39 = vmul.f32 %v2984_v38, %v3239_v4  ;;  %v187_v4 = vld [vmem:[#allocation5 + $0x58] sm:$0xff]  ;;  %v235_v38 = vld [vmem:[#allocation5 + $0x1c8] sm:$0xff] }
 0x177   :  { %2513 = vmatmul.mubr.msk.f32.vlgmr.msra.gmra.mxu0 %vm72_vm0, %v93_v39  ;;  %v234_v39 = vld [vmem:[#allocation5 + $0x1c0] sm:$0xff] }
 0x178   :  { %2551 = vmatpush3.msra.mxu0 %v3257_v16  ;;  %2582 = vmatprep.mubr.msk.f32.mxu0 %vm3190_vm1, %v3189_v8 }
 0x179   :  { %2552 = vmatprep.subr.mxu0 %v3189_v8 }
 0x17a   :  { %2553 = vmatpush3.msra.mxu0 %v3260_v17 }
 0x17b   :  { %2554 = vmatprep.subr.mxu0 %v3189_v8 }
 0x17c   :  { %2555 = vmatpush3.msra.mxu0 %v3264_v18 }
 0x17d   :  { %2556 = vmatprep.subr.mxu0 %v3189_v8 }
 0x17e   :  { %2557 = vmatpush3.msra.mxu0 %v3268_v19 }
 0x17f   :  { %2558 = vmatprep.subr.mxu0 %v3189_v8 }
 0x180   :  { %2559 = vmatpush3.msra.mxu0 %v3272_v20 }
 0x181   :  { %2560 = vmatprep.subr.mxu0 %v3189_v8 }
 0x182   :  { %2561 = vmatpush3.msra.mxu0 %v3276_v21 }
 0x183   :  { %2562 = vmatprep.subr.mxu0 %v3189_v8 }
 0x184   :  { %2563 = vmatpush3.msra.mxu0 %v3280_v22 }
 0x185   :  { %2564 = vmatprep.subr.mxu0 %v3189_v8 }
 0x186   :  { %2565 = vmatpush3.msra.mxu0 %v3284_v23 }
 0x187   :  { %2566 = vmatprep.subr.mxu0 %v3189_v8 }
 0x188   :  { %2567 = vmatpush3.msra.mxu0 %v3288_v24 }
 0x189   :  { %2568 = vmatprep.subr.mxu0 %v3189_v8 }
 0x18a   :  { %2569 = vmatpush3.msra.mxu0 %v3292_v25 }
 0x18b   :  { %2570 = vmatprep.subr.mxu0 %v3189_v8 }
 0x18c   :  { %2571 = vmatpush3.msra.mxu0 %v3296_v26 }
 0x18d   :  { %2572 = vmatprep.subr.mxu0 %v3189_v8 }
 0x18e   :  { %2573 = vmatpush3.msra.mxu0 %v3300_v27 }
 0x18f   :  { %2574 = vmatprep.subr.mxu0 %v3189_v8 }
 0x190   :  { %2575 = vmatpush3.msra.mxu0 %v3304_v28 }
 0x191   :  { %2576 = vmatprep.subr.mxu0 %v3189_v8 }
 0x192   :  { %2577 = vmatpush3.msra.mxu0 %v3308_v29 }
 0x193   :  { %2578 = vmatprep.subr.mxu0 %v3189_v8 }
 0x194   :  { %2579 = vmatpush3.msra.mxu0 %v3349_v40 }
 0x195   :  { %2580 = vmatprep.subr.mxu0 %v3189_v8 }
 0x196   :  { %2581 = vmatpush3.msra.mxu0 %v3354_v41 }
 0x197   :  { %544 = vmatprep.subr.mxu0 %v241_v31  ;;  %v271_v31 = vld [vmem:[#allocation5 + $0x2e8] sm:$0xff] }
 0x237   :  { %v172_v44 = vpop.f32.mrf.mxu0 }
 0x238   :  { %v3359_v45 = vadd.f32 %v172_v44, %v102_v43  ;;  %v232_v43 = vld [vmem:[#allocation5 + $0x1b0] sm:$0xff]  ;;  %v231_v44 = vld [vmem:[#allocation5 + $0x1a8] sm:$0xff] }
 0x239   :  { %v2514_v47 = vpop.f32.mrf.mxu0 }
 0x23a   :  { %2548 = vmatmul.mubr.f32.vlgmr.msra.gmra.mxu1 %v3359_v45  ;;  %v378_v49 = vmul.f32 %v3359_v45, %v3359_v45  ;;  %v229_v47 = vld [vmem:[#allocation5 + $0x198] sm:$0xff] }
 0x23b   :  { %456 = vmatpush1.msra.mxu1 %v206_v46  ;;  %519 = vmatprep.mubr.f32.mxu1 %v3189_v8  ;;  %v230_v46 = vld [vmem:[#allocation5 + $0x1a0] sm:$0xff] }
 0x23c   :  { %2583 = vmatmul.mubr.f32.vlgmr.msra.gmra.mxu0 %v378_v49  ;;  %457 = vmatprep.subr.mxu1 %v205_v48  ;;  %v228_v48 = vld [vmem:[#allocation5 + $0x190] sm:$0xff]  ;;  %v227_v49 = vld [vmem:[#allocation5 + $0x188] sm:$0xff] }
 0x23d   :  { %458 = vmatpush1.msra.mxu1 %v204_v50  ;;  %545 = vmatpush1.msra.mxu0 %v240_v32  ;;  %v226_v50 = vld [vmem:[#allocation5 + $0x180] sm:$0xff] }
 0x23e   :  { %459 = vmatprep.subr.mxu1 %v203_v51  ;;  %546 = vmatprep.subr.mxu0 %v239_v33  ;;  %v225_v51 = vld [vmem:[#allocation5 + $0x178] sm:$0xff]  ;;  %v270_v32 = vld [vmem:[#allocation5 + $0x2e0] sm:$0xff] }
 0x23f   :  { %460 = vmatpush1.msra.mxu1 %v202_v52  ;;  %547 = vmatpush1.msra.mxu0 %v238_v34  ;;  %v224_v52 = vld [vmem:[#allocation5 + $0x170] sm:$0xff]  ;;  %v269_v33 = vld [vmem:[#allocation5 + $0x2d8] sm:$0xff] }
 0x240   :  { %461 = vmatprep.subr.mxu1 %v201_v53  ;;  %548 = vmatprep.subr.mxu0 %v237_v35  ;;  %v223_v53 = vld [vmem:[#allocation5 + $0x168] sm:$0xff]  ;;  %v268_v34 = vld [vmem:[#allocation5 + $0x2d0] sm:$0xff] }
 0x241   :  { %462 = vmatpush1.msra.mxu1 %v200_v54  ;;  %549 = vmatpush1.msra.mxu0 %v236_v36  ;;  %v222_v54 = vld [vmem:[#allocation5 + $0x160] sm:$0xff]  ;;  %v267_v35 = vld [vmem:[#allocation5 + $0x2c8] sm:$0xff] }
 0x242   :  { %463 = vmatprep.subr.mxu1 %v199_v55  ;;  %550 = vmatprep.subr.mxu0 %v235_v38  ;;  %v221_v55 = vld [vmem:[#allocation5 + $0x158] sm:$0xff]  ;;  %v266_v36 = vld [vmem:[#allocation5 + $0x2c0] sm:$0xff] }
 0x243   :  { %464 = vmatpush1.msra.mxu1 %v198_v56  ;;  %551 = vmatpush1.msra.mxu0 %v234_v39  ;;  %v220_v56 = vld [vmem:[#allocation5 + $0x150] sm:$0xff]  ;;  %v265_v38 = vld [vmem:[#allocation5 + $0x2b8] sm:$0xff] }
 0x244   :  { %465 = vmatprep.subr.mxu1 %v197_v57  ;;  %552 = vmatprep.subr.mxu0 %v233_v42  ;;  %v219_v57 = vld [vmem:[#allocation5 + $0x148] sm:$0xff]  ;;  %v264_v39 = vld [vmem:[#allocation5 + $0x2b0] sm:$0xff] }
 0x245   :  { %466 = vmatpush1.msra.mxu1 %v196_v58  ;;  %553 = vmatpush1.msra.mxu0 %v232_v43  ;;  %v218_v58 = vld [vmem:[#allocation5 + $0x140] sm:$0xff]  ;;  %v263_v42 = vld [vmem:[#allocation5 + $0x2a8] sm:$0xff] }
 0x246   :  { %467 = vmatprep.subr.mxu1 %v195_v59  ;;  %554 = vmatprep.subr.mxu0 %v231_v44  ;;  %v217_v59 = vld [vmem:[#allocation5 + $0x138] sm:$0xff]  ;;  %v262_v43 = vld [vmem:[#allocation5 + $0x2a0] sm:$0xff] }
 0x247   :  { %468 = vmatpush1.msra.mxu1 %v194_v60  ;;  %555 = vmatpush1.msra.mxu0 %v230_v46  ;;  %v216_v60 = vld [vmem:[#allocation5 + $0x130] sm:$0xff]  ;;  %v261_v44 = vld [vmem:[#allocation5 + $0x298] sm:$0xff] }
 0x248   :  { %469 = vmatprep.subr.mxu1 %v193_v61  ;;  %556 = vmatprep.subr.mxu0 %v229_v47  ;;  %v215_v61 = vld [vmem:[#allocation5 + $0x128] sm:$0xff]  ;;  %v260_v46 = vld [vmem:[#allocation5 + $0x290] sm:$0xff] }
 0x249   :  { %470 = vmatpush1.msra.mxu1 %v192_v62  ;;  %557 = vmatpush1.msra.mxu0 %v228_v48  ;;  %v214_v62 = vld [vmem:[#allocation5 + $0x120] sm:$0xff]  ;;  %v259_v47 = vld [vmem:[#allocation5 + $0x288] sm:$0xff] }
 0x24a   :  { %471 = vmatprep.subr.mxu1 %v191_v63  ;;  %558 = vmatprep.subr.mxu0 %v227_v49  ;;  %v258_v48 = vld [vmem:[#allocation5 + $0x280] sm:$0xff]  ;;  %v257_v49 = vld [vmem:[#allocation5 + $0x278] sm:$0xff] }
 0x24b   :  { %472 = vmatpush1.msra.mxu1 %v190_v0  ;;  %559 = vmatpush1.msra.mxu0 %v226_v50  ;;  %v256_v50 = vld [vmem:[#allocation5 + $0x270] sm:$0xff] }
 0x24c   :  { %473 = vmatprep.subr.mxu1 %v189_v1  ;;  %560 = vmatprep.subr.mxu0 %v225_v51  ;;  %v255_v51 = vld [vmem:[#allocation5 + $0x268] sm:$0xff] }
 0x24d   :  { %474 = vmatpush1.msra.mxu1 %v188_v2  ;;  %561 = vmatpush1.msra.mxu0 %v224_v52  ;;  %v254_v52 = vld [vmem:[#allocation5 + $0x260] sm:$0xff] }
 0x24e   :  { %475 = vmatprep.subr.mxu1 %v187_v4  ;;  %562 = vmatprep.subr.mxu0 %v223_v53  ;;  %v253_v53 = vld [vmem:[#allocation5 + $0x258] sm:$0xff] }
 0x24f   :  { %476 = vmatpush1.msra.mxu1 %v186_v5  ;;  %563 = vmatpush1.msra.mxu0 %v222_v54  ;;  %v252_v54 = vld [vmem:[#allocation5 + $0x250] sm:$0xff] }
 0x250   :  { %477 = vmatprep.subr.mxu1 %v185_v6  ;;  %564 = vmatprep.subr.mxu0 %v221_v55  ;;  %v251_v55 = vld [vmem:[#allocation5 + $0x248] sm:$0xff] }
 0x251   :  { %478 = vmatpush1.msra.mxu1 %v184_v7  ;;  %565 = vmatpush1.msra.mxu0 %v220_v56  ;;  %v250_v56 = vld [vmem:[#allocation5 + $0x240] sm:$0xff] }
 0x252   :  { %479 = vmatprep.subr.mxu1 %v183_v9  ;;  %566 = vmatprep.subr.mxu0 %v219_v57  ;;  %v249_v57 = vld [vmem:[#allocation5 + $0x238] sm:$0xff] }
 0x253   :  { %480 = vmatpush1.msra.mxu1 %v182_v10  ;;  %567 = vmatpush1.msra.mxu0 %v218_v58  ;;  %v248_v58 = vld [vmem:[#allocation5 + $0x230] sm:$0xff] }
 0x254   :  { %481 = vmatprep.subr.mxu1 %v181_v11  ;;  %568 = vmatprep.subr.mxu0 %v217_v59  ;;  %v213_v11 = vld [vmem:[#allocation5 + $0x118] sm:$0xff]  ;;  %v247_v59 = vld [vmem:[#allocation5 + $0x228] sm:$0xff] }
 0x255   :  { %482 = vmatpush1.msra.mxu1 %v180_v12  ;;  %569 = vmatpush1.msra.mxu0 %v216_v60  ;;  %v212_v12 = vld [vmem:[#allocation5 + $0x110] sm:$0xff]  ;;  %v246_v60 = vld [vmem:[#allocation5 + $0x220] sm:$0xff] }
 0x256   :  { %483 = vmatprep.subr.mxu1 %v179_v13  ;;  %570 = vmatprep.subr.mxu0 %v215_v61  ;;  %v211_v13 = vld [vmem:[#allocation5 + $0x108] sm:$0xff]  ;;  %v245_v61 = vld [vmem:[#allocation5 + $0x218] sm:$0xff] }
 0x257   :  { %484 = vmatpush1.msra.mxu1 %v178_v14  ;;  %571 = vmatpush1.msra.mxu0 %v214_v62  ;;  %v210_v14 = vld [vmem:[#allocation5 + $0x100] sm:$0xff]  ;;  %v244_v62 = vld [vmem:[#allocation5 + $0x210] sm:$0xff] }
 0x258   :  { %485 = vmatprep.subr.mxu1 %v177_v15  ;;  %572 = vmatprep.subr.mxu0 %v213_v11  ;;  %v273_v15 = vld [vmem:[#allocation5 + $0x2f8] sm:$0xff] }
 0x259   :  { %486 = vmatpush1.msra.mxu1 %v176_v30  ;;  %573 = vmatpush1.msra.mxu0 %v212_v12  ;;  %v272_v30 = vld [vmem:[#allocation5 + $0x2f0] sm:$0xff] }
 0x25a   :  { %2585 = vmatprep.subr.mxu1 %v3189_v8  ;;  %574 = vmatprep.subr.mxu0 %v211_v13 }
 0x25b   :  { %575 = vmatpush1.msra.mxu0 %v210_v14 }
 0x25c   :  { %576 = vmatprep.subr.mxu0 %v273_v15 }
 0x25d   :  { %577 = vmatpush2.msra.mxu0 %v272_v30 }
 0x25e   :  { %578 = vmatprep.subr.mxu0 %v271_v31 }
 0x25f   :  { %579 = vmatpush2.msra.mxu0 %v270_v32 }
 0x260   :  { %580 = vmatprep.subr.mxu0 %v269_v33 }
 0x261   :  { %581 = vmatpush2.msra.mxu0 %v268_v34 }
 0x262   :  { %582 = vmatprep.subr.mxu0 %v267_v35 }
 0x263   :  { %583 = vmatpush2.msra.mxu0 %v266_v36 }
 0x264   :  { %584 = vmatprep.subr.mxu0 %v265_v38 }
 0x265   :  { %585 = vmatpush2.msra.mxu0 %v264_v39 }
 0x266   :  { %586 = vmatprep.subr.mxu0 %v263_v42 }
 0x267   :  { %587 = vmatpush2.msra.mxu0 %v262_v43 }
 0x268   :  { %588 = vmatprep.subr.mxu0 %v261_v44 }
 0x269   :  { %589 = vmatpush2.msra.mxu0 %v260_v46 }
 0x26a   :  { %590 = vmatprep.subr.mxu0 %v259_v47 }
 0x26b   :  { %591 = vmatpush2.msra.mxu0 %v258_v48 }
 0x26c   :  { %592 = vmatprep.subr.mxu0 %v257_v49 }
 0x26d   :  { %593 = vmatpush2.msra.mxu0 %v256_v50  ;;  %v286_v50 = vld [vmem:[#allocation7 + $0xd0] sm:$0xff] }
 0x26e   :  { %594 = vmatprep.subr.mxu0 %v255_v51  ;;  %v285_v51 = vld [vmem:[#allocation7 + $0xc8] sm:$0xff] }
 0x26f   :  { %595 = vmatpush2.msra.mxu0 %v254_v52  ;;  %v284_v52 = vld [vmem:[#allocation7 + $0xc0] sm:$0xff] }
 0x270   :  { %596 = vmatprep.subr.mxu0 %v253_v53  ;;  %v283_v53 = vld [vmem:[#allocation7 + $0xb8] sm:$0xff] }
 0x271   :  { %597 = vmatpush2.msra.mxu0 %v252_v54  ;;  %v282_v54 = vld [vmem:[#allocation7 + $0xb0] sm:$0xff] }
 0x272   :  { %598 = vmatprep.subr.mxu0 %v251_v55  ;;  %v281_v55 = vld [vmem:[#allocation7 + $0xa8] sm:$0xff] }
 0x273   :  { %599 = vmatpush2.msra.mxu0 %v250_v56  ;;  %v280_v56 = vld [vmem:[#allocation7 + $0xa0] sm:$0xff] }
 0x274   :  { %600 = vmatprep.subr.mxu0 %v249_v57  ;;  %v279_v57 = vld [vmem:[#allocation7 + $0x98] sm:$0xff] }
 0x275   :  { %601 = vmatpush2.msra.mxu0 %v248_v58  ;;  %v278_v58 = vld [vmem:[#allocation7 + $0x90] sm:$0xff] }
 0x276   :  { %602 = vmatprep.subr.mxu0 %v247_v59  ;;  %v277_v59 = vld [vmem:[#allocation7 + $0x88] sm:$0xff] }
 0x277   :  { %603 = vmatpush2.msra.mxu0 %v246_v60  ;;  %v276_v60 = vld [vmem:[#allocation7 + $0x80] sm:$0xff] }
 0x278   :  { %604 = vmatprep.subr.mxu0 %v245_v61 }
 0x279   :  { %605 = vmatpush2.msra.mxu0 %v244_v62  ;;  %v275_v62 = vld [vmem:[#allocation8 + $0x18] sm:$0xff] }
 0x2fa   :  { %v374_v63 = vpop.f32.mrf.mxu1 }
 0x2fb   :  { %v450_v0 = vmul.f32 %v374_v63, %v374_v63  ;;  %v449_v7 = vsub.f32 %v3359_v45, %v374_v63  ;;  %v243_v63 = vld [vmem:[#allocation5 + $0x208] sm:$0xff] }
 0x2fc   :  { %v2549_v1 = vpop.f32.mrf.mxu1  ;;  %v445_v2 = vpop.f32.mrf.mxu0  ;;  %606 = vmatprep.subr.mxu0 %v243_v63 }
 0x2fd   :  { %v451_v4 = vsub.f32 %v445_v2, %v450_v0  ;;  %v242_v0 = vld [vmem:[#allocation5 + $0x200] sm:$0xff]  ;;  %v291_v1 = vld [vmem:[#allocation7 + $0xf8] sm:$0xff]  ;;  %v290_v2 = vld [vmem:[#allocation7 + $0xf0] sm:$0xff] }
 0x2fe   :  { %v2584_v5 = vpop.f32.mrf.mxu0  ;;  %607 = vmatpush2.msra.mxu0 %v242_v0 }
 0x2ff   :  { %v452_v6 = vadd.f32 1e-05, %v451_v4  ;;  %2655 = vmatprep.subr.mxu0 %v3189_v8  ;;  %v289_v4 = vld [vmem:[#allocation7 + $0xe8] sm:$0xff]  ;;  %v288_v5 = vld [vmem:[#allocation7 + $0xe0] sm:$0xff] }
 0x301   :  { %2985 = vrsqrt.f32 %v452_v6  ;;  %v287_v6 = vld [vmem:[#allocation7 + $0xd8] sm:$0xff] }
 0x30e   :  { %v2986_v9 = vpop.eup %2985 }
 0x30f   :  { %v454_v10 = vmul.f32 %v2986_v9, %v449_v7  ;;  %v208_v7 = vld [vmem:[#allocation8] sm:$0xff] }
 0x311   :  { %520 = vmatmul.mubr.f32.vlgmr.msra.gmra.mxu1 %v454_v10  ;;  %v209_v10 = vld [vmem:[#allocation8 + $0x8] sm:$0xff] }
 0x312   :  { %2617 = vmatprep.mubr.msk.f32.mxu1 %vm3190_vm1, %v3189_v8  ;;  %2586 = vmatpush3.msra.mxu1 %v291_v1 }
 0x313   :  { %2587 = vmatprep.subr.mxu1 %v3189_v8 }
 0x314   :  { %2588 = vmatpush3.msra.mxu1 %v290_v2 }
 0x315   :  { %2589 = vmatprep.subr.mxu1 %v3189_v8 }
 0x316   :  { %2590 = vmatpush3.msra.mxu1 %v289_v4  ;;  %v714_v4 = vld [vmem:[#allocation5 + $0x3b8] sm:$0xff] }
 0x317   :  { %2591 = vmatprep.subr.mxu1 %v3189_v8 }
 0x318   :  { %2592 = vmatpush3.msra.mxu1 %v288_v5  ;;  %v713_v5 = vld [vmem:[#allocation5 + $0x3b0] sm:$0xff] }
 0x319   :  { %2593 = vmatprep.subr.mxu1 %v3189_v8 }
 0x31a   :  { %2594 = vmatpush3.msra.mxu1 %v287_v6  ;;  %v712_v6 = vld [vmem:[#allocation5 + $0x3a8] sm:$0xff] }
 0x31b   :  { %2595 = vmatprep.subr.mxu1 %v3189_v8 }
 0x31c   :  { %2596 = vmatpush3.msra.mxu1 %v286_v50  ;;  %v753_v50 = vld [vmem:[#allocation5 + $0x4e0] sm:$0xff] }
 0x31d   :  { %2597 = vmatprep.subr.mxu1 %v3189_v8 }
 0x31e   :  { %2598 = vmatpush3.msra.mxu1 %v285_v51  ;;  %v752_v51 = vld [vmem:[#allocation5 + $0x4d8] sm:$0xff] }
 0x31f   :  { %2599 = vmatprep.subr.mxu1 %v3189_v8 }
 0x320   :  { %2600 = vmatpush3.msra.mxu1 %v284_v52  ;;  %v751_v52 = vld [vmem:[#allocation5 + $0x4d0] sm:$0xff] }
 0x321   :  { %2601 = vmatprep.subr.mxu1 %v3189_v8 }
 0x322   :  { %2602 = vmatpush3.msra.mxu1 %v283_v53  ;;  %v750_v53 = vld [vmem:[#allocation5 + $0x4c8] sm:$0xff] }
 0x323   :  { %2603 = vmatprep.subr.mxu1 %v3189_v8 }
 0x324   :  { %2604 = vmatpush3.msra.mxu1 %v282_v54  ;;  %v749_v54 = vld [vmem:[#allocation5 + $0x4c0] sm:$0xff] }
 0x325   :  { %2605 = vmatprep.subr.mxu1 %v3189_v8 }
 0x326   :  { %2606 = vmatpush3.msra.mxu1 %v281_v55  ;;  %v748_v55 = vld [vmem:[#allocation5 + $0x4b8] sm:$0xff] }
 0x327   :  { %2607 = vmatprep.subr.mxu1 %v3189_v8 }
 0x328   :  { %2608 = vmatpush3.msra.mxu1 %v280_v56  ;;  %v747_v56 = vld [vmem:[#allocation5 + $0x4b0] sm:$0xff] }
 0x329   :  { %2609 = vmatprep.subr.mxu1 %v3189_v8 }
 0x32a   :  { %2610 = vmatpush3.msra.mxu1 %v279_v57  ;;  %v746_v57 = vld [vmem:[#allocation5 + $0x4a8] sm:$0xff] }
 0x32b   :  { %2611 = vmatprep.subr.mxu1 %v3189_v8 }
 0x32c   :  { %2612 = vmatpush3.msra.mxu1 %v278_v58  ;;  %v745_v58 = vld [vmem:[#allocation5 + $0x4a0] sm:$0xff] }
 0x32d   :  { %2613 = vmatprep.subr.mxu1 %v3189_v8 }
 0x32e   :  { %2614 = vmatpush3.msra.mxu1 %v277_v59  ;;  %v744_v59 = vld [vmem:[#allocation5 + $0x498] sm:$0xff] }
 0x32f   :  { %2615 = vmatprep.subr.mxu1 %v3189_v8 }
 0x330   :  { %2616 = vmatpush3.msra.mxu1 %v276_v60  ;;  %v743_v60 = vld [vmem:[#allocation5 + $0x490] sm:$0xff] }
 0x331   :  { %2620 = vmatprep.subr.mxu1 %v3189_v8 }
 0x3d1   :  { %v521_v9 = vpop.f32.mrf.mxu1 }
 0x3d2   :  { %v522_v11 = vadd.f32 %v521_v9, %v208_v7  ;;  %v711_v7 = vld [vmem:[#allocation5 + $0x3a0] sm:$0xff]  ;;  %v710_v9 = vld [vmem:[#allocation5 + $0x398] sm:$0xff] }
 0x3d3   :  { %v523_v12 = vpop.f32.mrf.mxu1 }
 0x3d4   :  { %v526_v13 = vmul.f32 %v522_v11, %v522_v11  ;;  %v524_v14 = vadd.f32 %v523_v12, %v209_v10  ;;  %v709_v10 = vld [vmem:[#allocation5 + $0x390] sm:$0xff]  ;;  %v707_v12 = vld [vmem:[#allocation5 + $0x380] sm:$0xff] }
 0x3d6   :  { %v528_v15 = vmul.f32 %v526_v13, %v522_v11  ;;  %v527_v30 = vmul.f32 %v524_v14, %v524_v14  ;;  %v706_v13 = vld [vmem:[#allocation5 + $0x378] sm:$0xff] }
 0x3d8   :  { %v530_v31 = vmul.f32 0.044715, %v528_v15  ;;  %v529_v32 = vmul.f32 %v527_v30, %v524_v14  ;;  %v704_v15 = vld [vmem:[#allocation5 + $0x368] sm:$0xff]  ;;  %v703_v30 = vld [vmem:[#allocation5 + $0x360] sm:$0xff] }
 0x3da   :  { %v532_v33 = vadd.f32 %v530_v31, %v522_v11  ;;  %v531_v34 = vmul.f32 0.044715, %v529_v32  ;;  %v702_v31 = vld [vmem:[#allocation5 + $0x358] sm:$0xff]  ;;  %v701_v32 = vld [vmem:[#allocation5 + $0x350] sm:$0xff] }
 0x3dc   :  { %v534_v35 = vmul.f32 0.7978846, %v532_v33  ;;  %v533_v36 = vadd.f32 %v531_v34, %v524_v14  ;;  %v700_v33 = vld [vmem:[#allocation5 + $0x348] sm:$0xff]  ;;  %v699_v34 = vld [vmem:[#allocation5 + $0x340] sm:$0xff] }
 0x3de   :  { %2987 = vtanh.f32 %v534_v35  ;;  %v535_v38 = vmul.f32 0.7978846, %v533_v36  ;;  %v698_v35 = vld [vmem:[#allocation5 + $0x338] sm:$0xff]  ;;  %v697_v36 = vld [vmem:[#allocation5 + $0x330] sm:$0xff] }
 0x3e0   :  { %2989 = vtanh.f32 %v535_v38  ;;  %v696_v38 = vld [vmem:[#allocation5 + $0x328] sm:$0xff] }
 0x3eb   :  { %v2988_v39 = vpop.eup %2987 }
 0x3ec   :  { %v538_v42 = vadd.f32 1.0, %v2988_v39  ;;  %v695_v39 = vld [vmem:[#allocation5 + $0x320] sm:$0xff] }
 0x3ed   :  { %v2990_v43 = vpop.eup %2989 }
 0x3ee   :  { %v539_v44 = vadd.f32 1.0, %v2990_v43  ;;  %v540_v46 = vmul.f32 0.5, %v538_v42  ;;  %v694_v42 = vld [vmem:[#allocation5 + $0x318] sm:$0xff]  ;;  %v693_v43 = vld [vmem:[#allocation5 + $0x310] sm:$0xff] }
 0x3f0   :  { %v541_v47 = vmul.f32 0.5, %v539_v44  ;;  %v542_v49 = vmul.f32 %v540_v46, %v522_v11  ;;  %v708_v11 = vld [vmem:[#allocation5 + $0x388] sm:$0xff]  ;;  %v691_v46 = vld [vmem:[#allocation5 + $0x300] sm:$0xff] }
 0x3f1   :  { %v692_v44 = vld [vmem:[#allocation5 + $0x308] sm:$0xff] }
 0x3f2   :  { %v543_v48 = vmul.f32 %v541_v47, %v524_v14  ;;  %v705_v14 = vld [vmem:[#allocation5 + $0x370] sm:$0xff]  ;;  %v756_v47 = vld [vmem:[#allocation5 + $0x4f8] sm:$0xff] }
 0x3f4   :  { %608 = vmatprep.mubr.f32.mxu0 %v543_v48  ;;  %v755_v48 = vld [vmem:[#allocation5 + $0x4f0] sm:$0xff] }
 0x3f5   :  { %609 = vmatmul.mubr.f32.vlgmr.msra.gmra.mxu0 %v542_v49  ;;  %v754_v49 = vld [vmem:[#allocation5 + $0x4e8] sm:$0xff] }
 0x3f6   :  { %2656 = vmatpush3.msra.mxu0 %v3257_v16  ;;  %2687 = vmatprep.mubr.msk.f32.mxu0 %vm3190_vm1, %v3189_v8 }
 0x3f7   :  { %2657 = vmatprep.subr.mxu0 %v3189_v8 }
 0x3f8   :  { %2658 = vmatpush3.msra.mxu0 %v3260_v17 }
 0x3f9   :  { %2659 = vmatprep.subr.mxu0 %v3189_v8 }
 0x3fa   :  { %2660 = vmatpush3.msra.mxu0 %v3264_v18 }
 0x3fb   :  { %2661 = vmatprep.subr.mxu0 %v3189_v8 }
 0x3fc   :  { %2662 = vmatpush3.msra.mxu0 %v3268_v19 }
 0x3fd   :  { %2663 = vmatprep.subr.mxu0 %v3189_v8 }
 0x3fe   :  { %2664 = vmatpush3.msra.mxu0 %v3272_v20 }
 0x3ff   :  { %2665 = vmatprep.subr.mxu0 %v3189_v8 }
 0x400   :  { %2666 = vmatpush3.msra.mxu0 %v3276_v21 }
 0x401   :  { %2667 = vmatprep.subr.mxu0 %v3189_v8 }
 0x402   :  { %2668 = vmatpush3.msra.mxu0 %v3280_v22 }
 0x403   :  { %2669 = vmatprep.subr.mxu0 %v3189_v8 }
 0x404   :  { %2670 = vmatpush3.msra.mxu0 %v3284_v23 }
 0x405   :  { %2671 = vmatprep.subr.mxu0 %v3189_v8 }
 0x406   :  { %2672 = vmatpush3.msra.mxu0 %v3288_v24 }
 0x407   :  { %2673 = vmatprep.subr.mxu0 %v3189_v8 }
 0x408   :  { %2674 = vmatpush3.msra.mxu0 %v3292_v25 }
 0x409   :  { %2675 = vmatprep.subr.mxu0 %v3189_v8 }
 0x40a   :  { %2676 = vmatpush3.msra.mxu0 %v3296_v26 }
 0x40b   :  { %2677 = vmatprep.subr.mxu0 %v3189_v8 }
 0x40c   :  { %2678 = vmatpush3.msra.mxu0 %v3300_v27 }
 0x40d   :  { %2679 = vmatprep.subr.mxu0 %v3189_v8 }
 0x40e   :  { %2680 = vmatpush3.msra.mxu0 %v3304_v28 }
 0x40f   :  { %2681 = vmatprep.subr.mxu0 %v3189_v8 }
 0x410   :  { %2682 = vmatpush3.msra.mxu0 %v3308_v29 }
 0x411   :  { %2683 = vmatprep.subr.mxu0 %v3189_v8 }
 0x412   :  { %2684 = vmatpush3.msra.mxu0 %v3349_v40 }
 0x413   :  { %2685 = vmatprep.subr.mxu0 %v3189_v8 }
 0x414   :  { %2686 = vmatpush3.msra.mxu0 %v3354_v41 }
 0x415   :  { %1043 = vmatprep.subr.mxu0 %v756_v47  ;;  %v770_v47 = vld [vmem:[#allocation5 + $0x568] sm:$0xff] }
 0x4b5   :  { %v610_v61 = vpop.f32.mrf.mxu0 }
 0x4b7   :  { %v612_v63 = vpop.f32.mrf.mxu0 }
 0x4b8   :  { %v613_v0 = vadd.f32 %v612_v63, %v275_v62  ;;  %v741_v62 = vld [vmem:[#allocation5 + $0x480] sm:$0xff]  ;;  %v740_v63 = vld [vmem:[#allocation5 + $0x478] sm:$0xff] }
 0x4ba   :  { %v615_v1 = vmul.f32 1.442695, %v613_v0  ;;  %v739_v0 = vld [vmem:[#allocation5 + $0x470] sm:$0xff] }
 0x4bc   :  { %2991 = vpow2.f32 %v615_v1  ;;  %v738_v1 = vld [vmem:[#allocation5 + $0x468] sm:$0xff] }
 0x4c9   :  { %v2992_v2 = vpop.eup %2991 }
 0x4ca   :  { %2618 = vmatmul.mubr.f32.vlgmr.msra.gmra.mxu1 %v2992_v2 }
 0x4cb   :  { %2621 = vmatpush3.msra.mxu1 %v3257_v16  ;;  %2652 = vmatprep.mubr.msk.f32.mxu1 %vm3190_vm1, %v3189_v8  ;;  %v722_v16 = vld [vmem:[#allocation5 + $0x3f8] sm:$0xff] }
 0x4cc   :  { %2622 = vmatprep.subr.mxu1 %v3189_v8 }
 0x4cd   :  { %2623 = vmatpush3.msra.mxu1 %v3260_v17 }
 0x4ce   :  { %2624 = vmatprep.subr.mxu1 %v3189_v8 }
 0x4cf   :  { %2625 = vmatpush3.msra.mxu1 %v3264_v18 }
 0x4d0   :  { %2626 = vmatprep.subr.mxu1 %v3189_v8 }
 0x4d1   :  { %2627 = vmatpush3.msra.mxu1 %v3268_v19  ;;  %v274_v19 = vld [vmem:[#allocation8 + $0x10] sm:$0xff] }
 0x4d2   :  { %2628 = vmatprep.subr.mxu1 %v3189_v8 }
 0x4d3   :  { %2629 = vmatpush3.msra.mxu1 %v3272_v20 }
 0x4d4   :  { %2630 = vmatprep.subr.mxu1 %v3189_v8 }
 0x4d5   :  { %2631 = vmatpush3.msra.mxu1 %v3276_v21  ;;  %v611_v21 = vadd.f32 %v610_v61, %v274_v19  ;;  %v742_v61 = vld [vmem:[#allocation5 + $0x488] sm:$0xff]  ;;  %v733_v19 = vld [vmem:[#allocation5 + $0x440] sm:$0xff] }
 0x4d6   :  { %2632 = vmatprep.subr.mxu1 %v3189_v8 }
 0x4d7   :  { %2633 = vmatpush3.msra.mxu1 %v3280_v22 }
 0x4d8   :  { %2634 = vmatprep.subr.mxu1 %v3189_v8 }
 0x4d9   :  { %2635 = vmatpush3.msra.mxu1 %v3284_v23 }
 0x4da   :  { %2636 = vmatprep.subr.mxu1 %v3189_v8 }
 0x4db   :  { %2637 = vmatpush3.msra.mxu1 %v3288_v24 }
 0x4dc   :  { %2638 = vmatprep.subr.mxu1 %v3189_v8 }
 0x4dd   :  { %2639 = vmatpush3.msra.mxu1 %v3292_v25  ;;  %v721_v25 = vld [vmem:[#allocation5 + $0x3f0] sm:$0xff] }
 0x4de   :  { %2640 = vmatprep.subr.mxu1 %v3189_v8 }
 0x4df   :  { %2641 = vmatpush3.msra.mxu1 %v3296_v26  ;;  %v720_v26 = vld [vmem:[#allocation5 + $0x3e8] sm:$0xff] }
 0x4e0   :  { %2642 = vmatprep.subr.mxu1 %v3189_v8 }
 0x4e1   :  { %2643 = vmatpush3.msra.mxu1 %v3300_v27 }
 0x4e2   :  { %2644 = vmatprep.subr.mxu1 %v3189_v8 }
 0x4e3   :  { %2645 = vmatpush3.msra.mxu1 %v3304_v28  ;;  %v719_v28 = vld [vmem:[#allocation5 + $0x3e0] sm:$0xff] }
 0x4e4   :  { %2646 = vmatprep.subr.mxu1 %v3189_v8 }
 0x4e5   :  { %2647 = vmatpush3.msra.mxu1 %v3308_v29  ;;  %v718_v29 = vld [vmem:[#allocation5 + $0x3d8] sm:$0xff] }
 0x4e6   :  { %2648 = vmatprep.subr.mxu1 %v3189_v8 }
 0x4e7   :  { %2649 = vmatpush3.msra.mxu1 %v3349_v40  ;;  %v717_v40 = vld [vmem:[#allocation5 + $0x3d0] sm:$0xff] }
 0x4e8   :  { %2650 = vmatprep.subr.mxu1 %v3189_v8 }
 0x4e9   :  { %2651 = vmatpush3.msra.mxu1 %v3354_v41  ;;  %v716_v41 = vld [vmem:[#allocation5 + $0x3c8] sm:$0xff] }
 0x4ea   :  { %954 = vmatprep.subr.mxu1 %v722_v16  ;;  %v736_v16 = vld [vmem:[#allocation5 + $0x458] sm:$0xff] }
 0x58a   :  { %v683_v17 = vpop.f32.mrf.mxu1 }
 0x58b   :  { %2993 = vrcp.f32 %v683_v17  ;;  %v735_v17 = vld [vmem:[#allocation5 + $0x450] sm:$0xff] }
 0x58c   :  { %v2619_v18 = vpop.f32.mrf.mxu1 }
 0x58d   :  { %v734_v18 = vld [vmem:[#allocation5 + $0x448] sm:$0xff] }
 0x598   :  { %v2994_v20 = vpop.eup %2993 }
 0x599   :  { %v688_v22 = vmul.f32 %v2994_v20, %v2992_v2  ;;  %v737_v2 = vld [vmem:[#allocation5 + $0x460] sm:$0xff]  ;;  %v732_v20 = vld [vmem:[#allocation5 + $0x438] sm:$0xff] }
 0x59b   :  { %v689_v23 = vmul.f32 %v688_v22, %v611_v21  ;;  %v731_v21 = vld [vmem:[#allocation5 + $0x430] sm:$0xff]  ;;  %v730_v22 = vld [vmem:[#allocation5 + $0x428] sm:$0xff] }
 0x59d   :  { %v3453_v24 = vadd.f32 %v689_v23, %v3359_v45  ;;  %v715_v45 = vld [vmem:[#allocation5 + $0x3c0] sm:$0xff] }
 0x59e   :  { %v729_v23 = vld [vmem:[#allocation5 + $0x420] sm:$0xff] }
 0x59f   :  { %2653 = vmatmul.mubr.f32.vlgmr.msra.gmra.mxu1 %v3453_v24  ;;  %v877_v27 = vmul.f32 %v3453_v24, %v3453_v24 }
 0x5a0   :  { %955 = vmatpush1.msra.mxu1 %v721_v25  ;;  %1018 = vmatprep.mubr.f32.mxu1 %v3189_v8 }
 0x5a1   :  { %2688 = vmatmul.mubr.f32.vlgmr.msra.gmra.mxu0 %v877_v27  ;;  %956 = vmatprep.subr.mxu1 %v720_v26 }
 0x5a2   :  { %957 = vmatpush1.msra.mxu1 %v719_v28  ;;  %1044 = vmatpush1.msra.mxu0 %v755_v48  ;;  %v769_v48 = vld [vmem:[#allocation5 + $0x560] sm:$0xff] }
 0x5a3   :  { %958 = vmatprep.subr.mxu1 %v718_v29  ;;  %1045 = vmatprep.subr.mxu0 %v754_v49  ;;  %v768_v49 = vld [vmem:[#allocation5 + $0x558] sm:$0xff] }
 0x5a4   :  { %959 = vmatpush1.msra.mxu1 %v717_v40  ;;  %1046 = vmatpush1.msra.mxu0 %v753_v50  ;;  %v767_v50 = vld [vmem:[#allocation5 + $0x550] sm:$0xff] }
 0x5a5   :  { %960 = vmatprep.subr.mxu1 %v716_v41  ;;  %1047 = vmatprep.subr.mxu0 %v752_v51  ;;  %v766_v51 = vld [vmem:[#allocation5 + $0x548] sm:$0xff] }
 0x5a6   :  { %961 = vmatpush1.msra.mxu1 %v715_v45  ;;  %1048 = vmatpush1.msra.mxu0 %v751_v52  ;;  %v765_v52 = vld [vmem:[#allocation5 + $0x540] sm:$0xff] }
 0x5a7   :  { %962 = vmatprep.subr.mxu1 %v714_v4  ;;  %1049 = vmatprep.subr.mxu0 %v750_v53  ;;  %v764_v53 = vld [vmem:[#allocation5 + $0x538] sm:$0xff] }
 0x5a8   :  { %963 = vmatpush1.msra.mxu1 %v713_v5  ;;  %1050 = vmatpush1.msra.mxu0 %v749_v54  ;;  %v763_v54 = vld [vmem:[#allocation5 + $0x530] sm:$0xff] }
 0x5a9   :  { %964 = vmatprep.subr.mxu1 %v712_v6  ;;  %1051 = vmatprep.subr.mxu0 %v748_v55  ;;  %v728_v6 = vld [vmem:[#allocation5 + $0x418] sm:$0xff]  ;;  %v762_v55 = vld [vmem:[#allocation5 + $0x528] sm:$0xff] }
 0x5aa   :  { %965 = vmatpush1.msra.mxu1 %v711_v7  ;;  %1052 = vmatpush1.msra.mxu0 %v747_v56  ;;  %v727_v7 = vld [vmem:[#allocation5 + $0x410] sm:$0xff]  ;;  %v761_v56 = vld [vmem:[#allocation5 + $0x520] sm:$0xff] }
 0x5ab   :  { %966 = vmatprep.subr.mxu1 %v710_v9  ;;  %1053 = vmatprep.subr.mxu0 %v746_v57  ;;  %v726_v9 = vld [vmem:[#allocation5 + $0x408] sm:$0xff]  ;;  %v760_v57 = vld [vmem:[#allocation5 + $0x518] sm:$0xff] }
 0x5ac   :  { %967 = vmatpush1.msra.mxu1 %v709_v10  ;;  %1054 = vmatpush1.msra.mxu0 %v745_v58  ;;  %v725_v10 = vld [vmem:[#allocation5 + $0x400] sm:$0xff]  ;;  %v759_v58 = vld [vmem:[#allocation5 + $0x510] sm:$0xff] }
 0x5ad   :  { %968 = vmatprep.subr.mxu1 %v708_v11  ;;  %1055 = vmatprep.subr.mxu0 %v744_v59  ;;  %v788_v11 = vld [vmem:[#allocation5 + $0x5f8] sm:$0xff]  ;;  %v758_v59 = vld [vmem:[#allocation5 + $0x508] sm:$0xff] }
 0x5ae   :  { %969 = vmatpush1.msra.mxu1 %v707_v12  ;;  %1056 = vmatpush1.msra.mxu0 %v743_v60  ;;  %v787_v12 = vld [vmem:[#allocation5 + $0x5f0] sm:$0xff]  ;;  %v757_v60 = vld [vmem:[#allocation5 + $0x500] sm:$0xff] }
 0x5af   :  { %970 = vmatprep.subr.mxu1 %v706_v13  ;;  %1057 = vmatprep.subr.mxu0 %v742_v61  ;;  %v786_v13 = vld [vmem:[#allocation5 + $0x5e8] sm:$0xff]  ;;  %v806_v61 = vld [vmem:[#allocation7 + $0x178] sm:$0xff] }
 0x5b0   :  { %971 = vmatpush1.msra.mxu1 %v705_v14  ;;  %1058 = vmatpush1.msra.mxu0 %v741_v62  ;;  %v785_v14 = vld [vmem:[#allocation5 + $0x5e0] sm:$0xff]  ;;  %v805_v62 = vld [vmem:[#allocation7 + $0x170] sm:$0xff] }
 0x5b1   :  { %972 = vmatprep.subr.mxu1 %v704_v15  ;;  %1059 = vmatprep.subr.mxu0 %v740_v63  ;;  %v784_v15 = vld [vmem:[#allocation5 + $0x5d8] sm:$0xff]  ;;  %v804_v63 = vld [vmem:[#allocation7 + $0x168] sm:$0xff] }
 0x5b2   :  { %973 = vmatpush1.msra.mxu1 %v703_v30  ;;  %1060 = vmatpush1.msra.mxu0 %v739_v0  ;;  %v783_v30 = vld [vmem:[#allocation5 + $0x5d0] sm:$0xff]  ;;  %v803_v0 = vld [vmem:[#allocation7 + $0x160] sm:$0xff] }
 0x5b3   :  { %974 = vmatprep.subr.mxu1 %v702_v31  ;;  %1061 = vmatprep.subr.mxu0 %v738_v1  ;;  %v782_v31 = vld [vmem:[#allocation5 + $0x5c8] sm:$0xff]  ;;  %v802_v1 = vld [vmem:[#allocation7 + $0x158] sm:$0xff] }
 0x5b4   :  { %975 = vmatpush1.msra.mxu1 %v701_v32  ;;  %1062 = vmatpush1.msra.mxu0 %v737_v2  ;;  %v781_v32 = vld [vmem:[#allocation5 + $0x5c0] sm:$0xff] }
 0x5b5   :  { %976 = vmatprep.subr.mxu1 %v700_v33  ;;  %1063 = vmatprep.subr.mxu0 %v736_v16  ;;  %v780_v33 = vld [vmem:[#allocation5 + $0x5b8] sm:$0xff]  ;;  %v723_v2 = vld [vmem:[#allocation8 + $0x20] sm:$0xff] }
 0x5b6   :  { %977 = vmatpush1.msra.mxu1 %v699_v34  ;;  %1064 = vmatpush1.msra.mxu0 %v735_v17  ;;  %v779_v34 = vld [vmem:[#allocation5 + $0x5b0] sm:$0xff]  ;;  %v724_v17 = vld [vmem:[#allocation8 + $0x28] sm:$0xff] }
 0x5b7   :  { %978 = vmatprep.subr.mxu1 %v698_v35  ;;  %1065 = vmatprep.subr.mxu0 %v734_v18  ;;  %v778_v35 = vld [vmem:[#allocation5 + $0x5a8] sm:$0xff] }
 0x5b8   :  { %979 = vmatpush1.msra.mxu1 %v697_v36  ;;  %1066 = vmatpush1.msra.mxu0 %v733_v19  ;;  %v777_v36 = vld [vmem:[#allocation5 + $0x5a0] sm:$0xff] }
 0x5b9   :  { %980 = vmatprep.subr.mxu1 %v696_v38  ;;  %1067 = vmatprep.subr.mxu0 %v732_v20  ;;  %v776_v38 = vld [vmem:[#allocation5 + $0x598] sm:$0xff] }
 0x5ba   :  { %981 = vmatpush1.msra.mxu1 %v695_v39  ;;  %1068 = vmatpush1.msra.mxu0 %v731_v21  ;;  %v775_v39 = vld [vmem:[#allocation5 + $0x590] sm:$0xff] }
 0x5bb   :  { %982 = vmatprep.subr.mxu1 %v694_v42  ;;  %1069 = vmatprep.subr.mxu0 %v730_v22  ;;  %v774_v42 = vld [vmem:[#allocation5 + $0x588] sm:$0xff] }
 0x5bc   :  { %983 = vmatpush1.msra.mxu1 %v693_v43  ;;  %1070 = vmatpush1.msra.mxu0 %v729_v23  ;;  %v773_v43 = vld [vmem:[#allocation5 + $0x580] sm:$0xff] }
 0x5bd   :  { %984 = vmatprep.subr.mxu1 %v692_v44  ;;  %1071 = vmatprep.subr.mxu0 %v728_v6  ;;  %v772_v44 = vld [vmem:[#allocation5 + $0x578] sm:$0xff] }
 0x5be   :  { %985 = vmatpush1.msra.mxu1 %v691_v46  ;;  %1072 = vmatpush1.msra.mxu0 %v727_v7  ;;  %v771_v46 = vld [vmem:[#allocation5 + $0x570] sm:$0xff] }
 0x5bf   :  { %2690 = vmatprep.subr.mxu1 %v3189_v8  ;;  %1073 = vmatprep.subr.mxu0 %v726_v9 }
 0x5c0   :  { %1074 = vmatpush1.msra.mxu0 %v725_v10 }
 0x5c1   :  { %1075 = vmatprep.subr.mxu0 %v788_v11 }
 0x5c2   :  { %1076 = vmatpush2.msra.mxu0 %v787_v12  ;;  %v3469_v12 = vld [vmem:[#allocation7 + $0x78] sm:$0xff] }
 0x5c3   :  { %1077 = vmatprep.subr.mxu0 %v786_v13  ;;  %v3475_v13 = vld [vmem:[#allocation7 + $0x70] sm:$0xff] }
 0x5c4   :  { %1078 = vmatpush2.msra.mxu0 %v785_v14  ;;  %v3479_v14 = vld [vmem:[#allocation7 + $0x68] sm:$0xff] }
 0x5c5   :  { %1079 = vmatprep.subr.mxu0 %v784_v15  ;;  %v3483_v15 = vld [vmem:[#allocation7 + $0x60] sm:$0xff] }
 0x5c6   :  { %1080 = vmatpush2.msra.mxu0 %v783_v30  ;;  %v3487_v30 = vld [vmem:[#allocation7 + $0x58] sm:$0xff] }
 0x5c7   :  { %1081 = vmatprep.subr.mxu0 %v782_v31  ;;  %v3491_v31 = vld [vmem:[#allocation7 + $0x50] sm:$0xff] }
 0x5c8   :  { %1082 = vmatpush2.msra.mxu0 %v781_v32  ;;  %v3495_v32 = vld [vmem:[#allocation7 + $0x48] sm:$0xff] }
 0x5c9   :  { %1083 = vmatprep.subr.mxu0 %v780_v33  ;;  %v3499_v33 = vld [vmem:[#allocation7 + $0x40] sm:$0xff] }
 0x5ca   :  { %1084 = vmatpush2.msra.mxu0 %v779_v34  ;;  %v3503_v34 = vld [vmem:[#allocation7 + $0x38] sm:$0xff] }
 0x5cb   :  { %1085 = vmatprep.subr.mxu0 %v778_v35  ;;  %v3507_v35 = vld [vmem:[#allocation7 + $0x30] sm:$0xff] }
 0x5cc   :  { %1086 = vmatpush2.msra.mxu0 %v777_v36  ;;  %v3511_v36 = vld [vmem:[#allocation7 + $0x28] sm:$0xff] }
 0x5cd   :  { %1087 = vmatprep.subr.mxu0 %v776_v38  ;;  %v3515_v38 = vld [vmem:[#allocation7 + $0x20] sm:$0xff] }
 0x5ce   :  { %1088 = vmatpush2.msra.mxu0 %v775_v39  ;;  %v3519_v39 = vld [vmem:[#allocation7 + $0x18] sm:$0xff] }
 0x5cf   :  { %1089 = vmatprep.subr.mxu0 %v774_v42  ;;  %v3523_v42 = vld [vmem:[#allocation7 + $0x10] sm:$0xff] }
 0x5d0   :  { %1090 = vmatpush2.msra.mxu0 %v773_v43  ;;  %v3527_v43 = vld [vmem:[#allocation7 + $0x8] sm:$0xff] }
 0x5d1   :  { %1091 = vmatprep.subr.mxu0 %v772_v44  ;;  %v3531_v44 = vld [vmem:[#allocation7] sm:$0xff] }
 0x5d2   :  { %1092 = vmatpush2.msra.mxu0 %v771_v46  ;;  %v801_v46 = vld [vmem:[#allocation7 + $0x150] sm:$0xff] }
 0x5d3   :  { %1093 = vmatprep.subr.mxu0 %v770_v47  ;;  %v800_v47 = vld [vmem:[#allocation7 + $0x148] sm:$0xff] }
 0x5d4   :  { %1094 = vmatpush2.msra.mxu0 %v769_v48  ;;  %v799_v48 = vld [vmem:[#allocation7 + $0x140] sm:$0xff] }
 0x5d5   :  { %1095 = vmatprep.subr.mxu0 %v768_v49  ;;  %v798_v49 = vld [vmem:[#allocation7 + $0x138] sm:$0xff] }
 0x5d6   :  { %1096 = vmatpush2.msra.mxu0 %v767_v50  ;;  %v797_v50 = vld [vmem:[#allocation7 + $0x130] sm:$0xff] }
 0x5d7   :  { %1097 = vmatprep.subr.mxu0 %v766_v51  ;;  %v796_v51 = vld [vmem:[#allocation7 + $0x128] sm:$0xff] }
 0x5d8   :  { %1098 = vmatpush2.msra.mxu0 %v765_v52  ;;  %v795_v52 = vld [vmem:[#allocation7 + $0x120] sm:$0xff] }
 0x5d9   :  { %1099 = vmatprep.subr.mxu0 %v764_v53  ;;  %v794_v53 = vld [vmem:[#allocation7 + $0x118] sm:$0xff] }
 0x5da   :  { %1100 = vmatpush2.msra.mxu0 %v763_v54  ;;  %v793_v54 = vld [vmem:[#allocation7 + $0x110] sm:$0xff] }
 0x5db   :  { %1101 = vmatprep.subr.mxu0 %v762_v55  ;;  %v792_v55 = vld [vmem:[#allocation7 + $0x108] sm:$0xff] }
 0x5dc   :  { %1102 = vmatpush2.msra.mxu0 %v761_v56  ;;  %v791_v56 = vld [vmem:[#allocation7 + $0x100] sm:$0xff] }
 0x5dd   :  { %1103 = vmatprep.subr.mxu0 %v760_v57 }
 0x5de   :  { %1104 = vmatpush2.msra.mxu0 %v759_v58  ;;  %v790_v58 = vld [vmem:[#allocation8 + $0x38] sm:$0xff] }
 0x5df   :  { %1105 = vmatprep.subr.mxu0 %v758_v59 }
 0x5e0   :  { %1106 = vmatpush2.msra.mxu0 %v757_v60 }
 0x5e1   :  { %2760 = vmatprep.subr.mxu0 %v3189_v8 }
 0x65f   :  { %v873_v25 = vpop.f32.mrf.mxu1 }
 0x660   :  { %v949_v26 = vmul.f32 %v873_v25, %v873_v25  ;;  %v948_v45 = vsub.f32 %v3453_v24, %v873_v25 }
 0x661   :  { %v2654_v27 = vpop.f32.mrf.mxu1  ;;  %v944_v28 = vpop.f32.mrf.mxu0 }
 0x662   :  { %v950_v29 = vsub.f32 %v944_v28, %v949_v26 }
 0x663   :  { %v2689_v40 = vpop.f32.mrf.mxu0 }
 0x664   :  { %v951_v41 = vadd.f32 1e-05, %v950_v29 }
 0x666   :  { %2995 = vrsqrt.f32 %v951_v41 }
 0x673   :  { %v2996_v4 = vpop.eup %2995 }
 0x674   :  { %v953_v5 = vmul.f32 %v2996_v4, %v948_v45 }
 0x676   :  { %1019 = vmatmul.mubr.f32.vlgmr.msra.gmra.mxu1 %v953_v5 }
 0x677   :  { %2722 = vmatprep.mubr.msk.f32.mxu1 %vm3190_vm1, %v3189_v8  ;;  %2691 = vmatpush3.msra.mxu1 %v806_v61 }
 0x678   :  { %2692 = vmatprep.subr.mxu1 %v3189_v8 }
 0x679   :  { %2693 = vmatpush3.msra.mxu1 %v805_v62 }
 0x67a   :  { %2694 = vmatprep.subr.mxu1 %v3189_v8 }
 0x67b   :  { %2695 = vmatpush3.msra.mxu1 %v804_v63  ;;  %v1221_v63 = vld [vmem:[#allocation5 + $0x6f8] sm:$0xff] }
 0x67c   :  { %2696 = vmatprep.subr.mxu1 %v3189_v8 }
 0x67d   :  { %2697 = vmatpush3.msra.mxu1 %v803_v0 }
 0x67e   :  { %2698 = vmatprep.subr.mxu1 %v3189_v8 }
 0x67f   :  { %2699 = vmatpush3.msra.mxu1 %v802_v1 }
 0x680   :  { %2700 = vmatprep.subr.mxu1 %v3189_v8 }
 0x681   :  { %2701 = vmatpush3.msra.mxu1 %v801_v46  ;;  %v1202_v46 = vld [vmem:[#allocation5 + $0x660] sm:$0xff] }
 0x682   :  { %2702 = vmatprep.subr.mxu1 %v3189_v8 }
 0x683   :  { %2703 = vmatpush3.msra.mxu1 %v800_v47  ;;  %v1201_v47 = vld [vmem:[#allocation5 + $0x658] sm:$0xff] }
 0x684   :  { %2704 = vmatprep.subr.mxu1 %v3189_v8 }
 0x685   :  { %2705 = vmatpush3.msra.mxu1 %v799_v48  ;;  %v1200_v48 = vld [vmem:[#allocation5 + $0x650] sm:$0xff] }
 0x686   :  { %2706 = vmatprep.subr.mxu1 %v3189_v8 }
 0x687   :  { %2707 = vmatpush3.msra.mxu1 %v798_v49  ;;  %v1199_v49 = vld [vmem:[#allocation5 + $0x648] sm:$0xff] }
 0x688   :  { %2708 = vmatprep.subr.mxu1 %v3189_v8 }
 0x689   :  { %2709 = vmatpush3.msra.mxu1 %v797_v50  ;;  %v1198_v50 = vld [vmem:[#allocation5 + $0x640] sm:$0xff] }
 0x68a   :  { %2710 = vmatprep.subr.mxu1 %v3189_v8 }
 0x68b   :  { %2711 = vmatpush3.msra.mxu1 %v796_v51  ;;  %v1197_v51 = vld [vmem:[#allocation5 + $0x638] sm:$0xff] }
 0x68c   :  { %2712 = vmatprep.subr.mxu1 %v3189_v8 }
 0x68d   :  { %2713 = vmatpush3.msra.mxu1 %v795_v52  ;;  %v1196_v52 = vld [vmem:[#allocation5 + $0x630] sm:$0xff] }
 0x68e   :  { %2714 = vmatprep.subr.mxu1 %v3189_v8 }
 0x68f   :  { %2715 = vmatpush3.msra.mxu1 %v794_v53  ;;  %v1195_v53 = vld [vmem:[#allocation5 + $0x628] sm:$0xff] }
 0x690   :  { %2716 = vmatprep.subr.mxu1 %v3189_v8 }
 0x691   :  { %2717 = vmatpush3.msra.mxu1 %v793_v54  ;;  %v1194_v54 = vld [vmem:[#allocation5 + $0x620] sm:$0xff] }
 0x692   :  { %2718 = vmatprep.subr.mxu1 %v3189_v8 }
 0x693   :  { %2719 = vmatpush3.msra.mxu1 %v792_v55  ;;  %v1193_v55 = vld [vmem:[#allocation5 + $0x618] sm:$0xff] }
 0x694   :  { %2720 = vmatprep.subr.mxu1 %v3189_v8 }
 0x695   :  { %2721 = vmatpush3.msra.mxu1 %v791_v56  ;;  %v1192_v56 = vld [vmem:[#allocation5 + $0x610] sm:$0xff] }
 0x696   :  { %2725 = vmatprep.subr.mxu1 %v3189_v8 }
 0x736   :  { %v1020_v16 = vpop.f32.mrf.mxu1 }
 0x737   :  { %v1021_v18 = vadd.f32 %v1020_v16, %v723_v2  ;;  %v789_v2 = vld [vmem:[#allocation8 + $0x30] sm:$0xff] }
 0x738   :  { %v1022_v19 = vpop.f32.mrf.mxu1 }
 0x739   :  { %v1025_v20 = vmul.f32 %v1021_v18, %v1021_v18  ;;  %v1023_v21 = vadd.f32 %v1022_v19, %v724_v17 }
 0x73b   :  { %v1027_v22 = vmul.f32 %v1025_v20, %v1021_v18  ;;  %v1026_v23 = vmul.f32 %v1023_v21, %v1023_v21 }
 0x73d   :  { %v1029_v25 = vmul.f32 0.044715, %v1027_v22  ;;  %v1028_v26 = vmul.f32 %v1026_v23, %v1023_v21  ;;  %v1219_v22 = vld [vmem:[#allocation5 + $0x6e8] sm:$0xff] }
 0x73f   :  { %v1031_v27 = vadd.f32 %v1029_v25, %v1021_v18  ;;  %v1030_v28 = vmul.f32 0.044715, %v1028_v26  ;;  %v1218_v25 = vld [vmem:[#allocation5 + $0x6e0] sm:$0xff]  ;;  %v1217_v26 = vld [vmem:[#allocation5 + $0x6d8] sm:$0xff] }
 0x741   :  { %v1033_v29 = vmul.f32 0.7978846, %v1031_v27  ;;  %v1032_v40 = vadd.f32 %v1030_v28, %v1023_v21  ;;  %v1216_v27 = vld [vmem:[#allocation5 + $0x6d0] sm:$0xff]  ;;  %v1215_v28 = vld [vmem:[#allocation5 + $0x6c8] sm:$0xff] }
 0x743   :  { %2997 = vtanh.f32 %v1033_v29  ;;  %v1034_v41 = vmul.f32 0.7978846, %v1032_v40  ;;  %v1213_v29 = vld [vmem:[#allocation5 + $0x6b8] sm:$0xff]  ;;  %v1212_v40 = vld [vmem:[#allocation5 + $0x6b0] sm:$0xff] }
 0x745   :  { %2999 = vtanh.f32 %v1034_v41  ;;  %v1211_v41 = vld [vmem:[#allocation5 + $0x6a8] sm:$0xff] }
 0x750   :  { %v2998_v45 = vpop.eup %2997 }
 0x751   :  { %v1037_v4 = vadd.f32 1.0, %v2998_v45  ;;  %v1210_v45 = vld [vmem:[#allocation5 + $0x6a0] sm:$0xff] }
 0x752   :  { %v3000_v5 = vpop.eup %2999 }
 0x753   :  { %v1038_v6 = vadd.f32 1.0, %v3000_v5  ;;  %v1039_v7 = vmul.f32 0.5, %v1037_v4  ;;  %v1209_v4 = vld [vmem:[#allocation5 + $0x698] sm:$0xff]  ;;  %v1208_v5 = vld [vmem:[#allocation5 + $0x690] sm:$0xff] }
 0x755   :  { %v1040_v9 = vmul.f32 0.5, %v1038_v6  ;;  %v1041_v11 = vmul.f32 %v1039_v7, %v1021_v18  ;;  %v1207_v6 = vld [vmem:[#allocation5 + $0x688] sm:$0xff]  ;;  %v1206_v7 = vld [vmem:[#allocation5 + $0x680] sm:$0xff] }
 0x757   :  { %v1042_v10 = vmul.f32 %v1040_v9, %v1023_v21  ;;  %v1220_v21 = vld [vmem:[#allocation5 + $0x6f0] sm:$0xff]  ;;  %v1205_v9 = vld [vmem:[#allocation5 + $0x678] sm:$0xff] }
 0x759   :  { %1107 = vmatprep.mubr.f32.mxu0 %v1042_v10  ;;  %v1204_v10 = vld [vmem:[#allocation5 + $0x670] sm:$0xff] }
 0x75a   :  { %1108 = vmatmul.mubr.f32.vlgmr.msra.gmra.mxu0 %v1041_v11  ;;  %v1203_v11 = vld [vmem:[#allocation5 + $0x668] sm:$0xff] }
 0x75b   :  { %2761 = vmatpush3.msra.mxu0 %v3469_v12  ;;  %2792 = vmatprep.mubr.msk.f32.mxu0 %vm3190_vm1, %v3189_v8 }
 0x75c   :  { %2762 = vmatprep.subr.mxu0 %v3189_v8 }
 0x75d   :  { %2763 = vmatpush3.msra.mxu0 %v3475_v13 }
 0x75e   :  { %2764 = vmatprep.subr.mxu0 %v3189_v8 }
 0x75f   :  { %2765 = vmatpush3.msra.mxu0 %v3479_v14 }
 0x760   :  { %2766 = vmatprep.subr.mxu0 %v3189_v8 }
 0x761   :  { %2767 = vmatpush3.msra.mxu0 %v3483_v15 }
 0x762   :  { %2768 = vmatprep.subr.mxu0 %v3189_v8 }
 0x763   :  { %2769 = vmatpush3.msra.mxu0 %v3487_v30 }
 0x764   :  { %2770 = vmatprep.subr.mxu0 %v3189_v8 }
 0x765   :  { %2771 = vmatpush3.msra.mxu0 %v3491_v31 }
 0x766   :  { %2772 = vmatprep.subr.mxu0 %v3189_v8 }
 0x767   :  { %2773 = vmatpush3.msra.mxu0 %v3495_v32 }
 0x768   :  { %2774 = vmatprep.subr.mxu0 %v3189_v8 }
 0x769   :  { %2775 = vmatpush3.msra.mxu0 %v3499_v33 }
 0x76a   :  { %2776 = vmatprep.subr.mxu0 %v3189_v8 }
 0x76b   :  { %2777 = vmatpush3.msra.mxu0 %v3503_v34 }
 0x76c   :  { %2778 = vmatprep.subr.mxu0 %v3189_v8 }
 0x76d   :  { %2779 = vmatpush3.msra.mxu0 %v3507_v35 }
 0x76e   :  { %2780 = vmatprep.subr.mxu0 %v3189_v8 }
 0x76f   :  { %2781 = vmatpush3.msra.mxu0 %v3511_v36 }
 0x770   :  { %2782 = vmatprep.subr.mxu0 %v3189_v8 }
 0x771   :  { %2783 = vmatpush3.msra.mxu0 %v3515_v38 }
 0x772   :  { %2784 = vmatprep.subr.mxu0 %v3189_v8 }
 0x773   :  { %2785 = vmatpush3.msra.mxu0 %v3519_v39 }
 0x774   :  { %2786 = vmatprep.subr.mxu0 %v3189_v8 }
 0x775   :  { %2787 = vmatpush3.msra.mxu0 %v3523_v42 }
 0x776   :  { %2788 = vmatprep.subr.mxu0 %v3189_v8 }
 0x777   :  { %2789 = vmatpush3.msra.mxu0 %v3527_v43 }
 0x778   :  { %2790 = vmatprep.subr.mxu0 %v3189_v8 }
 0x779   :  { %2791 = vmatpush3.msra.mxu0 %v3531_v44 }
 0x81a   :  { %v1109_v57 = vpop.f32.mrf.mxu0 }
 0x81b   :  { %v1110_v17 = vadd.f32 %v1109_v57, %v789_v2  ;;  %v1191_v57 = vld [vmem:[#allocation5 + $0x608] sm:$0xff]  ;;  %v1248_v2 = vld [vmem:[#allocation5 + $0x7c0] sm:$0xff] }
 0x81c   :  { %v1111_v59 = vpop.f32.mrf.mxu0 }
 0x81d   :  { %v1112_v60 = vadd.f32 %v1111_v59, %v790_v58  ;;  %v1190_v58 = vld [vmem:[#allocation5 + $0x600] sm:$0xff]  ;;  %v1255_v59 = vld [vmem:[#allocation5 + $0x7f8] sm:$0xff] }
 0x81e   :  { %1526 = vmatprep.subr.mxu0 %v1255_v59  ;;  %v3047_v59 = vld [vmem:[#allocation7 + $0xc8] sm:$0xff] }
 0x81f   :  { %v1114_v61 = vmul.f32 1.442695, %v1112_v60  ;;  %v1254_v60 = vld [vmem:[#allocation5 + $0x7f0] sm:$0xff] }
 0x821   :  { %3001 = vpow2.f32 %v1114_v61  ;;  %v1253_v61 = vld [vmem:[#allocation5 + $0x7e8] sm:$0xff] }
 0x82e   :  { %v3002_v62 = vpop.eup %3001 }
 0x82f   :  { %2723 = vmatmul.mubr.f32.vlgmr.msra.gmra.mxu1 %v3002_v62 }
 0x830   :  { %2726 = vmatpush3.msra.mxu1 %v3469_v12  ;;  %2757 = vmatprep.mubr.msk.f32.mxu1 %vm3190_vm1, %v3189_v8 }
 0x831   :  { %2727 = vmatprep.subr.mxu1 %v3189_v8 }
 0x832   :  { %2728 = vmatpush3.msra.mxu1 %v3475_v13 }
 0x833   :  { %2729 = vmatprep.subr.mxu1 %v3189_v8 }
 0x834   :  { %2730 = vmatpush3.msra.mxu1 %v3479_v14 }
 0x835   :  { %2731 = vmatprep.subr.mxu1 %v3189_v8 }
 0x836   :  { %2732 = vmatpush3.msra.mxu1 %v3483_v15 }
 0x837   :  { %2733 = vmatprep.subr.mxu1 %v3189_v8 }
 0x838   :  { %2734 = vmatpush3.msra.mxu1 %v3487_v30 }
 0x839   :  { %2735 = vmatprep.subr.mxu1 %v3189_v8 }
 0x83a   :  { %2736 = vmatpush3.msra.mxu1 %v3491_v31 }
 0x83b   :  { %2737 = vmatprep.subr.mxu1 %v3189_v8 }
 0x83c   :  { %2738 = vmatpush3.msra.mxu1 %v3495_v32 }
 0x83d   :  { %2739 = vmatprep.subr.mxu1 %v3189_v8 }
 0x83e   :  { %2740 = vmatpush3.msra.mxu1 %v3499_v33 }
 0x83f   :  { %2741 = vmatprep.subr.mxu1 %v3189_v8 }
 0x840   :  { %2742 = vmatpush3.msra.mxu1 %v3503_v34 }
 0x841   :  { %2743 = vmatprep.subr.mxu1 %v3189_v8 }
 0x842   :  { %2744 = vmatpush3.msra.mxu1 %v3507_v35 }
 0x843   :  { %2745 = vmatprep.subr.mxu1 %v3189_v8 }
 0x844   :  { %2746 = vmatpush3.msra.mxu1 %v3511_v36 }
 0x845   :  { %2747 = vmatprep.subr.mxu1 %v3189_v8 }
 0x846   :  { %2748 = vmatpush3.msra.mxu1 %v3515_v38 }
 0x847   :  { %2749 = vmatprep.subr.mxu1 %v3189_v8 }
 0x848   :  { %2750 = vmatpush3.msra.mxu1 %v3519_v39 }
 0x849   :  { %2751 = vmatprep.subr.mxu1 %v3189_v8 }
 0x84a   :  { %2752 = vmatpush3.msra.mxu1 %v3523_v42 }
 0x84b   :  { %2753 = vmatprep.subr.mxu1 %v3189_v8 }
 0x84c   :  { %2754 = vmatpush3.msra.mxu1 %v3527_v43 }
 0x84d   :  { %2755 = vmatprep.subr.mxu1 %v3189_v8 }
 0x84e   :  { %2756 = vmatpush3.msra.mxu1 %v3531_v44 }
 0x84f   :  { %1437 = vmatprep.subr.mxu1 %v1221_v63  ;;  %v1251_v63 = vld [vmem:[#allocation5 + $0x7d8] sm:$0xff] }
 0x8ef   :  { %v1182_v0 = vpop.f32.mrf.mxu1 }
 0x8f0   :  { %3003 = vrcp.f32 %v1182_v0  ;;  %v1250_v0 = vld [vmem:[#allocation5 + $0x7d0] sm:$0xff] }
 0x8f1   :  { %v2724_v1 = vpop.f32.mrf.mxu1 }
 0x8f2   :  { %v1249_v1 = vld [vmem:[#allocation5 + $0x7c8] sm:$0xff] }
 0x8fd   :  { %v3004_v16 = vpop.eup %3003 }
 0x8fe   :  { %v1187_v18 = vmul.f32 %v3004_v16, %v3002_v62  ;;  %v1252_v62 = vld [vmem:[#allocation5 + $0x7e0] sm:$0xff]  ;;  %v1247_v16 = vld [vmem:[#allocation5 + $0x7b8] sm:$0xff] }
 0x900   :  { %v1188_v19 = vmul.f32 %v1187_v18, %v1110_v17  ;;  %v1246_v17 = vld [vmem:[#allocation5 + $0x7b0] sm:$0xff]  ;;  %v1245_v18 = vld [vmem:[#allocation5 + $0x7a8] sm:$0xff] }
 0x902   :  { %v3579_v20 = vadd.f32 %v1188_v19, %v3453_v24  ;;  %v1214_v24 = vld [vmem:[#allocation5 + $0x6c0] sm:$0xff] }
 0x903   :  { %v1244_v19 = vld [vmem:[#allocation5 + $0x7a0] sm:$0xff] }
 0x904   :  { %2758 = vmatmul.mubr.f32.vlgmr.msra.gmra.mxu1 %v3579_v20  ;;  %v1360_v23 = vmul.f32 %v3579_v20, %v3579_v20 }
 0x905   :  { %1438 = vmatpush1.msra.mxu1 %v1220_v21  ;;  %1501 = vmatprep.mubr.f32.mxu1 %v3189_v8  ;;  %v1243_v21 = vld [vmem:[#allocation5 + $0x798] sm:$0xff] }
 0x906   :  { %2793 = vmatmul.mubr.f32.vlgmr.msra.gmra.mxu0 %v1360_v23  ;;  %1439 = vmatprep.subr.mxu1 %v1219_v22  ;;  %v1242_v22 = vld [vmem:[#allocation5 + $0x790] sm:$0xff]  ;;  %v1241_v23 = vld [vmem:[#allocation5 + $0x788] sm:$0xff] }
 0x907   :  { %1440 = vmatpush1.msra.mxu1 %v1218_v25  ;;  %1527 = vmatpush1.msra.mxu0 %v1254_v60  ;;  %v1240_v25 = vld [vmem:[#allocation5 + $0x780] sm:$0xff] }
 0x908   :  { %1441 = vmatprep.subr.mxu1 %v1217_v26  ;;  %1528 = vmatprep.subr.mxu0 %v1253_v61  ;;  %v1239_v26 = vld [vmem:[#allocation5 + $0x778] sm:$0xff]  ;;  %v3048_v60 = vld [vmem:[#allocation7 + $0xc0] sm:$0xff] }
 0x909   :  { %1442 = vmatpush1.msra.mxu1 %v1216_v27  ;;  %1529 = vmatpush1.msra.mxu0 %v1252_v62  ;;  %v1238_v27 = vld [vmem:[#allocation5 + $0x770] sm:$0xff]  ;;  %v3049_v61 = vld [vmem:[#allocation7 + $0xb8] sm:$0xff] }
 0x90a   :  { %1443 = vmatprep.subr.mxu1 %v1215_v28  ;;  %1530 = vmatprep.subr.mxu0 %v1251_v63  ;;  %v1237_v28 = vld [vmem:[#allocation5 + $0x768] sm:$0xff]  ;;  %v3050_v62 = vld [vmem:[#allocation7 + $0xb0] sm:$0xff] }
 0x90b   :  { %1444 = vmatpush1.msra.mxu1 %v1214_v24  ;;  %1531 = vmatpush1.msra.mxu0 %v1250_v0  ;;  %v1236_v24 = vld [vmem:[#allocation5 + $0x760] sm:$0xff]  ;;  %v3051_v63 = vld [vmem:[#allocation7 + $0xa8] sm:$0xff] }
 0x90c   :  { %1445 = vmatprep.subr.mxu1 %v1213_v29  ;;  %1532 = vmatprep.subr.mxu0 %v1249_v1  ;;  %v1235_v29 = vld [vmem:[#allocation5 + $0x758] sm:$0xff]  ;;  %v3052_v0 = vld [vmem:[#allocation7 + $0xa0] sm:$0xff] }
 0x90d   :  { %1446 = vmatpush1.msra.mxu1 %v1212_v40  ;;  %1533 = vmatpush1.msra.mxu0 %v1248_v2  ;;  %v1234_v40 = vld [vmem:[#allocation5 + $0x750] sm:$0xff]  ;;  %v3053_v1 = vld [vmem:[#allocation7 + $0x98] sm:$0xff] }
 0x90e   :  { %1447 = vmatprep.subr.mxu1 %v1211_v41  ;;  %1534 = vmatprep.subr.mxu0 %v1247_v16  ;;  %v1233_v41 = vld [vmem:[#allocation5 + $0x748] sm:$0xff]  ;;  %v3054_v2 = vld [vmem:[#allocation7 + $0x90] sm:$0xff] }
 0x90f   :  { %1448 = vmatpush1.msra.mxu1 %v1210_v45  ;;  %1535 = vmatpush1.msra.mxu0 %v1246_v17  ;;  %v1232_v45 = vld [vmem:[#allocation5 + $0x740] sm:$0xff]  ;;  %v3055_v16 = vld [vmem:[#allocation7 + $0x88] sm:$0xff] }
 0x910   :  { %1449 = vmatprep.subr.mxu1 %v1209_v4  ;;  %1536 = vmatprep.subr.mxu0 %v1245_v18  ;;  %v1231_v4 = vld [vmem:[#allocation5 + $0x738] sm:$0xff]  ;;  %v3056_v17 = vld [vmem:[#allocation7 + $0x80] sm:$0xff] }
 0x911   :  { %1450 = vmatpush1.msra.mxu1 %v1208_v5  ;;  %1537 = vmatpush1.msra.mxu0 %v1244_v19  ;;  %v1230_v5 = vld [vmem:[#allocation5 + $0x730] sm:$0xff]  ;;  %v1227_v18 = vld [vmem:[#allocation5 + $0x718] sm:$0xff] }
 0x912   :  { %1451 = vmatprep.subr.mxu1 %v1207_v6  ;;  %1538 = vmatprep.subr.mxu0 %v1243_v21  ;;  %v1229_v6 = vld [vmem:[#allocation5 + $0x728] sm:$0xff]  ;;  %v1226_v19 = vld [vmem:[#allocation5 + $0x710] sm:$0xff] }
 0x913   :  { %1452 = vmatpush1.msra.mxu1 %v1206_v7  ;;  %1539 = vmatpush1.msra.mxu0 %v1242_v22  ;;  %v1228_v7 = vld [vmem:[#allocation5 + $0x720] sm:$0xff]  ;;  %v1225_v21 = vld [vmem:[#allocation5 + $0x708] sm:$0xff] }
 0x914   :  { %1453 = vmatprep.subr.mxu1 %v1205_v9  ;;  %1540 = vmatprep.subr.mxu0 %v1241_v23  ;;  %v1224_v22 = vld [vmem:[#allocation5 + $0x700] sm:$0xff]  ;;  %v1287_v23 = vld [vmem:[#allocation5 + $0x8f8] sm:$0xff] }
 0x915   :  { %1454 = vmatpush1.msra.mxu1 %v1204_v10  ;;  %1541 = vmatpush1.msra.mxu0 %v1240_v25  ;;  %v1286_v25 = vld [vmem:[#allocation5 + $0x8f0] sm:$0xff] }
 0x916   :  { %1455 = vmatprep.subr.mxu1 %v1203_v11  ;;  %1542 = vmatprep.subr.mxu0 %v1239_v26  ;;  %v1285_v26 = vld [vmem:[#allocation5 + $0x8e8] sm:$0xff] }
 0x917   :  { %1456 = vmatpush1.msra.mxu1 %v1202_v46  ;;  %1543 = vmatpush1.msra.mxu0 %v1238_v27  ;;  %v1284_v27 = vld [vmem:[#allocation5 + $0x8e0] sm:$0xff] }
 0x918   :  { %1457 = vmatprep.subr.mxu1 %v1201_v47  ;;  %1544 = vmatprep.subr.mxu0 %v1237_v28  ;;  %v1283_v28 = vld [vmem:[#allocation5 + $0x8d8] sm:$0xff] }
 0x919   :  { %1458 = vmatpush1.msra.mxu1 %v1200_v48  ;;  %1545 = vmatpush1.msra.mxu0 %v1236_v24  ;;  %v1282_v24 = vld [vmem:[#allocation5 + $0x8d0] sm:$0xff] }
 0x91a   :  { %1459 = vmatprep.subr.mxu1 %v1199_v49  ;;  %1546 = vmatprep.subr.mxu0 %v1235_v29  ;;  %v1281_v29 = vld [vmem:[#allocation5 + $0x8c8] sm:$0xff] }
 0x91b   :  { %1460 = vmatpush1.msra.mxu1 %v1198_v50  ;;  %1547 = vmatpush1.msra.mxu0 %v1234_v40  ;;  %v1280_v40 = vld [vmem:[#allocation5 + $0x8c0] sm:$0xff] }
 0x91c   :  { %1461 = vmatprep.subr.mxu1 %v1197_v51  ;;  %1548 = vmatprep.subr.mxu0 %v1233_v41  ;;  %v1279_v41 = vld [vmem:[#allocation5 + $0x8b8] sm:$0xff] }
 0x91d   :  { %1462 = vmatpush1.msra.mxu1 %v1196_v52  ;;  %1549 = vmatpush1.msra.mxu0 %v1232_v45  ;;  %v1278_v45 = vld [vmem:[#allocation5 + $0x8b0] sm:$0xff] }
 0x91e   :  { %1463 = vmatprep.subr.mxu1 %v1195_v53  ;;  %1550 = vmatprep.subr.mxu0 %v1231_v4  ;;  %v3041_v53 = vld [vmem:[#allocation7 + $0xf8] sm:$0xff]  ;;  %v1277_v4 = vld [vmem:[#allocation5 + $0x8a8] sm:$0xff] }
 0x91f   :  { %1464 = vmatpush1.msra.mxu1 %v1194_v54  ;;  %1551 = vmatpush1.msra.mxu0 %v1230_v5  ;;  %v3042_v54 = vld [vmem:[#allocation7 + $0xf0] sm:$0xff]  ;;  %v1276_v5 = vld [vmem:[#allocation5 + $0x8a0] sm:$0xff] }
 0x920   :  { %1465 = vmatprep.subr.mxu1 %v1193_v55  ;;  %1552 = vmatprep.subr.mxu0 %v1229_v6  ;;  %v3043_v55 = vld [vmem:[#allocation7 + $0xe8] sm:$0xff]  ;;  %v1275_v6 = vld [vmem:[#allocation5 + $0x898] sm:$0xff] }
 0x921   :  { %1466 = vmatpush1.msra.mxu1 %v1192_v56  ;;  %1553 = vmatpush1.msra.mxu0 %v1228_v7  ;;  %v3044_v56 = vld [vmem:[#allocation7 + $0xe0] sm:$0xff]  ;;  %v1274_v7 = vld [vmem:[#allocation5 + $0x890] sm:$0xff] }
 0x922   :  { %1467 = vmatprep.subr.mxu1 %v1191_v57  ;;  %v3045_v57 = vld [vmem:[#allocation7 + $0xd8] sm:$0xff]  ;;  %1554 = vmatprep.subr.mxu0 %v1227_v18 }
 0x923   :  { %1468 = vmatpush1.msra.mxu1 %v1190_v58  ;;  %v3046_v58 = vld [vmem:[#allocation7 + $0xd0] sm:$0xff]  ;;  %1555 = vmatpush1.msra.mxu0 %v1226_v19 }
 0x924   :  { %2795 = vmatprep.subr.mxu1 %v3189_v8  ;;  %1556 = vmatprep.subr.mxu0 %v1225_v21 }
 0x925   :  { %1557 = vmatpush1.msra.mxu0 %v1224_v22 }
 0x926   :  { %1558 = vmatprep.subr.mxu0 %v1287_v23 }
 0x927   :  { %1559 = vmatpush2.msra.mxu0 %v1286_v25 }
 0x928   :  { %1560 = vmatprep.subr.mxu0 %v1285_v26 }
 0x929   :  { %1561 = vmatpush2.msra.mxu0 %v1284_v27 }
 0x92a   :  { %1562 = vmatprep.subr.mxu0 %v1283_v28 }
 0x92b   :  { %1563 = vmatpush2.msra.mxu0 %v1282_v24 }
 0x92c   :  { %1564 = vmatprep.subr.mxu0 %v1281_v29 }
 0x92d   :  { %1565 = vmatpush2.msra.mxu0 %v1280_v40 }
 0x92e   :  { %1566 = vmatprep.subr.mxu0 %v1279_v41 }
 0x92f   :  { %1567 = vmatpush2.msra.mxu0 %v1278_v45 }
 0x930   :  { %1568 = vmatprep.subr.mxu0 %v1277_v4 }
 0x931   :  { %1569 = vmatpush2.msra.mxu0 %v1276_v5 }
 0x932   :  { %1570 = vmatprep.subr.mxu0 %v1275_v6 }
 0x933   :  { %1571 = vmatpush2.msra.mxu0 %v1274_v7  ;;  %v1289_v7 = vld [vmem:[#allocation8 + $0x58] sm:$0xff] }
 0x9c4   :  { %v1356_v9 = vpop.f32.mrf.mxu1 }
 0x9c5   :  { %v1432_v10 = vmul.f32 %v1356_v9, %v1356_v9  ;;  %v1431_v50 = vsub.f32 %v3579_v20, %v1356_v9  ;;  %v1273_v9 = vld [vmem:[#allocation5 + $0x888] sm:$0xff] }
 0x9c6   :  { %v2759_v11 = vpop.f32.mrf.mxu1  ;;  %v1427_v46 = vpop.f32.mrf.mxu0  ;;  %1572 = vmatprep.subr.mxu0 %v1273_v9 }
 0x9c7   :  { %v1433_v47 = vsub.f32 %v1427_v46, %v1432_v10  ;;  %v1272_v10 = vld [vmem:[#allocation5 + $0x880] sm:$0xff]  ;;  %v1271_v11 = vld [vmem:[#allocation5 + $0x878] sm:$0xff]  ;;  %v1270_v46 = vld [vmem:[#allocation5 + $0x870] sm:$0xff] }
 0x9c8   :  { %v2794_v48 = vpop.f32.mrf.mxu0  ;;  %1573 = vmatpush2.msra.mxu0 %v1272_v10 }
 0x9c9   :  { %v1434_v49 = vadd.f32 1e-05, %v1433_v47  ;;  %v1269_v47 = vld [vmem:[#allocation5 + $0x868] sm:$0xff]  ;;  %1574 = vmatprep.subr.mxu0 %v1271_v11  ;;  %v1268_v48 = vld [vmem:[#allocation5 + $0x860] sm:$0xff] }
 0x9ca   :  { %1575 = vmatpush2.msra.mxu0 %v1270_v46 }
 0x9cb   :  { %3005 = vrsqrt.f32 %v1434_v49  ;;  %v1267_v49 = vld [vmem:[#allocation5 + $0x858] sm:$0xff]  ;;  %1576 = vmatprep.subr.mxu0 %v1269_v47 }
 0x9cc   :  { %1577 = vmatpush2.msra.mxu0 %v1268_v48  ;;  %v1696_v47 = vld [vmem:[#allocation5 + $0x9b8] sm:$0xff]  ;;  %v1695_v48 = vld [vmem:[#allocation5 + $0x9b0] sm:$0xff] }
 0x9cd   :  { %1578 = vmatprep.subr.mxu0 %v1267_v49  ;;  %v1694_v49 = vld [vmem:[#allocation5 + $0x9a8] sm:$0xff] }
 0x9d8   :  { %v3006_v51 = vpop.eup %3005 }
 0x9d9   :  { %v1436_v52 = vmul.f32 %v3006_v51, %v1431_v50  ;;  %v1266_v50 = vld [vmem:[#allocation5 + $0x850] sm:$0xff]  ;;  %v1265_v51 = vld [vmem:[#allocation5 + $0x848] sm:$0xff] }
 0x9da   :  { %1579 = vmatpush2.msra.mxu0 %v1266_v50  ;;  %v1693_v50 = vld [vmem:[#allocation5 + $0x9a0] sm:$0xff] }
 0x9db   :  { %1502 = vmatmul.mubr.f32.vlgmr.msra.gmra.mxu1 %v1436_v52  ;;  %v1264_v52 = vld [vmem:[#allocation5 + $0x840] sm:$0xff]  ;;  %1580 = vmatprep.subr.mxu0 %v1265_v51  ;;  %v1692_v51 = vld [vmem:[#allocation5 + $0x998] sm:$0xff] }
 0x9dc   :  { %2796 = vmatpush3.msra.mxu1 %v3041_v53  ;;  %2827 = vmatprep.mubr.msk.f32.mxu1 %vm3190_vm1, %v3189_v8  ;;  %v1263_v53 = vld [vmem:[#allocation5 + $0x838] sm:$0xff] }
 0x9dd   :  { %2797 = vmatprep.subr.mxu1 %v3189_v8  ;;  %1581 = vmatpush2.msra.mxu0 %v1264_v52  ;;  %v1691_v52 = vld [vmem:[#allocation5 + $0x990] sm:$0xff] }
 0x9de   :  { %2798 = vmatpush3.msra.mxu1 %v3042_v54  ;;  %v1262_v54 = vld [vmem:[#allocation5 + $0x830] sm:$0xff]  ;;  %1582 = vmatprep.subr.mxu0 %v1263_v53  ;;  %v1690_v53 = vld [vmem:[#allocation5 + $0x988] sm:$0xff] }
 0x9df   :  { %2799 = vmatprep.subr.mxu1 %v3189_v8  ;;  %1583 = vmatpush2.msra.mxu0 %v1262_v54  ;;  %v1689_v54 = vld [vmem:[#allocation5 + $0x980] sm:$0xff] }
 0x9e0   :  { %2800 = vmatpush3.msra.mxu1 %v3043_v55  ;;  %v1261_v55 = vld [vmem:[#allocation5 + $0x828] sm:$0xff] }
 0x9e1   :  { %2801 = vmatprep.subr.mxu1 %v3189_v8  ;;  %1584 = vmatprep.subr.mxu0 %v1261_v55  ;;  %v1688_v55 = vld [vmem:[#allocation5 + $0x978] sm:$0xff] }
 0x9e2   :  { %2802 = vmatpush3.msra.mxu1 %v3044_v56  ;;  %v1260_v56 = vld [vmem:[#allocation5 + $0x820] sm:$0xff] }
 0x9e3   :  { %2803 = vmatprep.subr.mxu1 %v3189_v8  ;;  %1585 = vmatpush2.msra.mxu0 %v1260_v56  ;;  %v1687_v56 = vld [vmem:[#allocation5 + $0x970] sm:$0xff] }
 0x9e4   :  { %2804 = vmatpush3.msra.mxu1 %v3045_v57  ;;  %v1259_v57 = vld [vmem:[#allocation5 + $0x818] sm:$0xff] }
 0x9e5   :  { %2805 = vmatprep.subr.mxu1 %v3189_v8  ;;  %1586 = vmatprep.subr.mxu0 %v1259_v57  ;;  %v1686_v57 = vld [vmem:[#allocation5 + $0x968] sm:$0xff] }
 0x9e6   :  { %2806 = vmatpush3.msra.mxu1 %v3046_v58  ;;  %v1258_v58 = vld [vmem:[#allocation5 + $0x810] sm:$0xff] }
 0x9e7   :  { %2807 = vmatprep.subr.mxu1 %v3189_v8  ;;  %1587 = vmatpush2.msra.mxu0 %v1258_v58  ;;  %v1685_v58 = vld [vmem:[#allocation5 + $0x960] sm:$0xff] }
 0x9e8   :  { %2808 = vmatpush3.msra.mxu1 %v3047_v59  ;;  %v1257_v59 = vld [vmem:[#allocation5 + $0x808] sm:$0xff] }
 0x9e9   :  { %2809 = vmatprep.subr.mxu1 %v3189_v8  ;;  %1588 = vmatprep.subr.mxu0 %v1257_v59  ;;  %v1684_v59 = vld [vmem:[#allocation5 + $0x958] sm:$0xff] }
 0x9ea   :  { %2810 = vmatpush3.msra.mxu1 %v3048_v60  ;;  %v1256_v60 = vld [vmem:[#allocation5 + $0x800] sm:$0xff] }
 0x9eb   :  { %2811 = vmatprep.subr.mxu1 %v3189_v8  ;;  %1589 = vmatpush2.msra.mxu0 %v1256_v60  ;;  %v1683_v60 = vld [vmem:[#allocation5 + $0x950] sm:$0xff] }
 0x9ec   :  { %2812 = vmatpush3.msra.mxu1 %v3049_v61  ;;  %2865 = vmatprep.subr.mxu0 %v3189_v8  ;;  %v1222_v61 = vld [vmem:[#allocation8 + $0x40] sm:$0xff] }
 0x9ed   :  { %2813 = vmatprep.subr.mxu1 %v3189_v8 }
 0x9ee   :  { %2814 = vmatpush3.msra.mxu1 %v3050_v62 }
 0x9ef   :  { %2815 = vmatprep.subr.mxu1 %v3189_v8 }
 0x9f0   :  { %2816 = vmatpush3.msra.mxu1 %v3051_v63  ;;  %v1223_v63 = vld [vmem:[#allocation8 + $0x48] sm:$0xff] }
 0x9f1   :  { %2817 = vmatprep.subr.mxu1 %v3189_v8 }
 0x9f2   :  { %2818 = vmatpush3.msra.mxu1 %v3052_v0 }
 0x9f3   :  { %2819 = vmatprep.subr.mxu1 %v3189_v8 }
 0x9f4   :  { %2820 = vmatpush3.msra.mxu1 %v3053_v1 }
 0x9f5   :  { %2821 = vmatprep.subr.mxu1 %v3189_v8 }
 0x9f6   :  { %2822 = vmatpush3.msra.mxu1 %v3054_v2 }
 0x9f7   :  { %2823 = vmatprep.subr.mxu1 %v3189_v8 }
 0x9f8   :  { %2824 = vmatpush3.msra.mxu1 %v3055_v16 }
 0x9f9   :  { %2825 = vmatprep.subr.mxu1 %v3189_v8 }
 0x9fa   :  { %2826 = vmatpush3.msra.mxu1 %v3056_v17 }
 0x9fb   :  { %2830 = vmatprep.subr.mxu1 %v3189_v8 }
 0xa9b   :  { %v1503_v62 = vpop.f32.mrf.mxu1 }
 0xa9c   :  { %v1504_v0 = vadd.f32 %v1503_v62, %v1222_v61  ;;  %v1682_v61 = vld [vmem:[#allocation5 + $0x948] sm:$0xff]  ;;  %v1681_v62 = vld [vmem:[#allocation5 + $0x940] sm:$0xff] }
 0xa9d   :  { %v1505_v1 = vpop.f32.mrf.mxu1 }
 0xa9e   :  { %v1508_v2 = vmul.f32 %v1504_v0, %v1504_v0  ;;  %v1506_v16 = vadd.f32 %v1505_v1, %v1223_v63  ;;  %v1680_v63 = vld [vmem:[#allocation5 + $0x938] sm:$0xff]  ;;  %v1678_v1 = vld [vmem:[#allocation5 + $0x928] sm:$0xff] }
 0xaa0   :  { %v1510_v17 = vmul.f32 %v1508_v2, %v1504_v0  ;;  %v1509_v18 = vmul.f32 %v1506_v16, %v1506_v16  ;;  %v1677_v2 = vld [vmem:[#allocation5 + $0x920] sm:$0xff] }
 0xaa2   :  { %v1512_v19 = vmul.f32 0.044715, %v1510_v17  ;;  %v1511_v21 = vmul.f32 %v1509_v18, %v1506_v16  ;;  %v1675_v17 = vld [vmem:[#allocation5 + $0x910] sm:$0xff]  ;;  %v1674_v18 = vld [vmem:[#allocation5 + $0x908] sm:$0xff] }
 0xaa4   :  { %v1514_v22 = vadd.f32 %v1512_v19, %v1504_v0  ;;  %v1513_v23 = vmul.f32 0.044715, %v1511_v21  ;;  %v1673_v19 = vld [vmem:[#allocation5 + $0x900] sm:$0xff]  ;;  %v1738_v21 = vld [vmem:[#allocation5 + $0xaf8] sm:$0xff] }
 0xaa6   :  { %v1516_v25 = vmul.f32 0.7978846, %v1514_v22  ;;  %v1515_v26 = vadd.f32 %v1513_v23, %v1506_v16  ;;  %v1737_v22 = vld [vmem:[#allocation5 + $0xaf0] sm:$0xff]  ;;  %v1736_v23 = vld [vmem:[#allocation5 + $0xae8] sm:$0xff] }
 0xaa8   :  { %3007 = vtanh.f32 %v1516_v25  ;;  %v1517_v27 = vmul.f32 0.7978846, %v1515_v26  ;;  %v1735_v25 = vld [vmem:[#allocation5 + $0xae0] sm:$0xff]  ;;  %v1734_v26 = vld [vmem:[#allocation5 + $0xad8] sm:$0xff] }
 0xaaa   :  { %3009 = vtanh.f32 %v1517_v27  ;;  %v1733_v27 = vld [vmem:[#allocation5 + $0xad0] sm:$0xff] }
 0xab5   :  { %v3008_v28 = vpop.eup %3007 }
 0xab6   :  { %v1520_v24 = vadd.f32 1.0, %v3008_v28  ;;  %v1732_v28 = vld [vmem:[#allocation5 + $0xac8] sm:$0xff] }
 0xab7   :  { %v3010_v29 = vpop.eup %3009 }
 0xab8   :  { %v1521_v40 = vadd.f32 1.0, %v3010_v29  ;;  %v1522_v41 = vmul.f32 0.5, %v1520_v24  ;;  %v1731_v24 = vld [vmem:[#allocation5 + $0xac0] sm:$0xff]  ;;  %v1730_v29 = vld [vmem:[#allocation5 + $0xab8] sm:$0xff] }
 0xaba   :  { %v1523_v45 = vmul.f32 0.5, %v1521_v40  ;;  %v1524_v5 = vmul.f32 %v1522_v41, %v1504_v0  ;;  %v1679_v0 = vld [vmem:[#allocation5 + $0x930] sm:$0xff]  ;;  %v1728_v41 = vld [vmem:[#allocation5 + $0xaa8] sm:$0xff] }
 0xabb   :  { %v1729_v40 = vld [vmem:[#allocation5 + $0xab0] sm:$0xff] }
 0xabc   :  { %v1525_v4 = vmul.f32 %v1523_v45, %v1506_v16  ;;  %v1676_v16 = vld [vmem:[#allocation5 + $0x918] sm:$0xff]  ;;  %v1727_v45 = vld [vmem:[#allocation5 + $0xaa0] sm:$0xff] }
 0xabe   :  { %1590 = vmatprep.mubr.f32.mxu0 %v1525_v4  ;;  %v1726_v4 = vld [vmem:[#allocation5 + $0xa98] sm:$0xff] }
 0xabf   :  { %1591 = vmatmul.mubr.f32.vlgmr.msra.gmra.mxu0 %v1524_v5  ;;  %v1725_v5 = vld [vmem:[#allocation5 + $0xa90] sm:$0xff] }
 0xac0   :  { %2866 = vmatpush3.msra.mxu0 %v3469_v12  ;;  %2897 = vmatprep.mubr.msk.f32.mxu0 %vm3190_vm1, %v3189_v8 }
 0xac1   :  { %2867 = vmatprep.subr.mxu0 %v3189_v8 }
 0xac2   :  { %2868 = vmatpush3.msra.mxu0 %v3475_v13 }
 0xac3   :  { %2869 = vmatprep.subr.mxu0 %v3189_v8 }
 0xac4   :  { %2870 = vmatpush3.msra.mxu0 %v3479_v14 }
 0xac5   :  { %2871 = vmatprep.subr.mxu0 %v3189_v8 }
 0xac6   :  { %2872 = vmatpush3.msra.mxu0 %v3483_v15 }
 0xac7   :  { %2873 = vmatprep.subr.mxu0 %v3189_v8 }
 0xac8   :  { %2874 = vmatpush3.msra.mxu0 %v3487_v30 }
 0xac9   :  { %2875 = vmatprep.subr.mxu0 %v3189_v8 }
 0xaca   :  { %2876 = vmatpush3.msra.mxu0 %v3491_v31 }
 0xacb   :  { %2877 = vmatprep.subr.mxu0 %v3189_v8 }
 0xacc   :  { %2878 = vmatpush3.msra.mxu0 %v3495_v32 }
 0xacd   :  { %2879 = vmatprep.subr.mxu0 %v3189_v8 }
 0xace   :  { %2880 = vmatpush3.msra.mxu0 %v3499_v33 }
 0xacf   :  { %2881 = vmatprep.subr.mxu0 %v3189_v8 }
 0xad0   :  { %2882 = vmatpush3.msra.mxu0 %v3503_v34 }
 0xad1   :  { %2883 = vmatprep.subr.mxu0 %v3189_v8 }
 0xad2   :  { %2884 = vmatpush3.msra.mxu0 %v3507_v35 }
 0xad3   :  { %2885 = vmatprep.subr.mxu0 %v3189_v8 }
 0xad4   :  { %2886 = vmatpush3.msra.mxu0 %v3511_v36 }
 0xad5   :  { %2887 = vmatprep.subr.mxu0 %v3189_v8 }
 0xad6   :  { %2888 = vmatpush3.msra.mxu0 %v3515_v38 }
 0xad7   :  { %2889 = vmatprep.subr.mxu0 %v3189_v8 }
 0xad8   :  { %2890 = vmatpush3.msra.mxu0 %v3519_v39 }
 0xad9   :  { %2891 = vmatprep.subr.mxu0 %v3189_v8 }
 0xada   :  { %2892 = vmatpush3.msra.mxu0 %v3523_v42 }
 0xadb   :  { %2893 = vmatprep.subr.mxu0 %v3189_v8 }
 0xadc   :  { %2894 = vmatpush3.msra.mxu0 %v3527_v43 }
 0xadd   :  { %2895 = vmatprep.subr.mxu0 %v3189_v8 }
 0xade   :  { %2896 = vmatpush3.msra.mxu0 %v3531_v44 }
 0xadf   :  { %2009 = vmatprep.subr.mxu0 %v1738_v21  ;;  %v1768_v21 = vld [vmem:[#allocation5 + $0xbe8] sm:$0xff] }
 0xb7f   :  { %v1592_v6 = vpop.f32.mrf.mxu0 }
 0xb81   :  { %v1594_v9 = vpop.f32.mrf.mxu0 }
 0xb82   :  { %v1595_v10 = vadd.f32 %v1594_v9, %v1289_v7  ;;  %v1723_v7 = vld [vmem:[#allocation5 + $0xa80] sm:$0xff]  ;;  %v1722_v9 = vld [vmem:[#allocation5 + $0xa78] sm:$0xff] }
 0xb84   :  { %v1597_v11 = vmul.f32 1.442695, %v1595_v10  ;;  %v1721_v10 = vld [vmem:[#allocation5 + $0xa70] sm:$0xff] }
 0xb86   :  { %3011 = vpow2.f32 %v1597_v11  ;;  %v1720_v11 = vld [vmem:[#allocation5 + $0xa68] sm:$0xff] }
 0xb93   :  { %v3012_v46 = vpop.eup %3011 }
 0xb94   :  { %2828 = vmatmul.mubr.f32.vlgmr.msra.gmra.mxu1 %v3012_v46 }
 0xb95   :  { %2831 = vmatpush3.msra.mxu1 %v3469_v12  ;;  %2862 = vmatprep.mubr.msk.f32.mxu1 %vm3190_vm1, %v3189_v8  ;;  %v1704_v12 = vld [vmem:[#allocation5 + $0x9f8] sm:$0xff] }
 0xb96   :  { %2832 = vmatprep.subr.mxu1 %v3189_v8 }
 0xb97   :  { %2833 = vmatpush3.msra.mxu1 %v3475_v13 }
 0xb98   :  { %2834 = vmatprep.subr.mxu1 %v3189_v8 }
 0xb99   :  { %2835 = vmatpush3.msra.mxu1 %v3479_v14 }
 0xb9a   :  { %2836 = vmatprep.subr.mxu1 %v3189_v8 }
 0xb9b   :  { %2837 = vmatpush3.msra.mxu1 %v3483_v15  ;;  %v1288_v15 = vld [vmem:[#allocation8 + $0x50] sm:$0xff] }
 0xb9c   :  { %2838 = vmatprep.subr.mxu1 %v3189_v8 }
 0xb9d   :  { %2839 = vmatpush3.msra.mxu1 %v3487_v30 }
 0xb9e   :  { %2840 = vmatprep.subr.mxu1 %v3189_v8 }
 0xb9f   :  { %2841 = vmatpush3.msra.mxu1 %v3491_v31  ;;  %v1593_v31 = vadd.f32 %v1592_v6, %v1288_v15  ;;  %v1724_v6 = vld [vmem:[#allocation5 + $0xa88] sm:$0xff]  ;;  %v1715_v15 = vld [vmem:[#allocation5 + $0xa40] sm:$0xff] }
 0xba0   :  { %2842 = vmatprep.subr.mxu1 %v3189_v8 }
 0xba1   :  { %2843 = vmatpush3.msra.mxu1 %v3495_v32 }
 0xba2   :  { %2844 = vmatprep.subr.mxu1 %v3189_v8 }
 0xba3   :  { %2845 = vmatpush3.msra.mxu1 %v3499_v33 }
 0xba4   :  { %2846 = vmatprep.subr.mxu1 %v3189_v8 }
 0xba5   :  { %2847 = vmatpush3.msra.mxu1 %v3503_v34 }
 0xba6   :  { %2848 = vmatprep.subr.mxu1 %v3189_v8 }
 0xba7   :  { %2849 = vmatpush3.msra.mxu1 %v3507_v35  ;;  %v1703_v35 = vld [vmem:[#allocation5 + $0x9f0] sm:$0xff] }
 0xba8   :  { %2850 = vmatprep.subr.mxu1 %v3189_v8 }
 0xba9   :  { %2851 = vmatpush3.msra.mxu1 %v3511_v36  ;;  %v1702_v36 = vld [vmem:[#allocation5 + $0x9e8] sm:$0xff] }
 0xbaa   :  { %2852 = vmatprep.subr.mxu1 %v3189_v8 }
 0xbab   :  { %2853 = vmatpush3.msra.mxu1 %v3515_v38 }
 0xbac   :  { %2854 = vmatprep.subr.mxu1 %v3189_v8 }
 0xbad   :  { %2855 = vmatpush3.msra.mxu1 %v3519_v39  ;;  %v1701_v39 = vld [vmem:[#allocation5 + $0x9e0] sm:$0xff] }
 0xbae   :  { %2856 = vmatprep.subr.mxu1 %v3189_v8 }
 0xbaf   :  { %2857 = vmatpush3.msra.mxu1 %v3523_v42  ;;  %v1700_v42 = vld [vmem:[#allocation5 + $0x9d8] sm:$0xff] }
 0xbb0   :  { %2858 = vmatprep.subr.mxu1 %v3189_v8 }
 0xbb1   :  { %2859 = vmatpush3.msra.mxu1 %v3527_v43  ;;  %v1699_v43 = vld [vmem:[#allocation5 + $0x9d0] sm:$0xff] }
 0xbb2   :  { %2860 = vmatprep.subr.mxu1 %v3189_v8 }
 0xbb3   :  { %2861 = vmatpush3.msra.mxu1 %v3531_v44  ;;  %v1698_v44 = vld [vmem:[#allocation5 + $0x9c8] sm:$0xff] }
 0xbb4   :  { %1920 = vmatprep.subr.mxu1 %v1704_v12  ;;  %v1718_v12 = vld [vmem:[#allocation5 + $0xa58] sm:$0xff] }
 0xc54   :  { %v1665_v13 = vpop.f32.mrf.mxu1 }
 0xc55   :  { %3013 = vrcp.f32 %v1665_v13  ;;  %v1717_v13 = vld [vmem:[#allocation5 + $0xa50] sm:$0xff] }
 0xc56   :  { %v2829_v14 = vpop.f32.mrf.mxu1 }
 0xc57   :  { %v1716_v14 = vld [vmem:[#allocation5 + $0xa48] sm:$0xff] }
 0xc62   :  { %v3014_v30 = vpop.eup %3013 }
 0xc63   :  { %v1670_v32 = vmul.f32 %v3014_v30, %v3012_v46  ;;  %v1719_v46 = vld [vmem:[#allocation5 + $0xa60] sm:$0xff]  ;;  %v1714_v30 = vld [vmem:[#allocation5 + $0xa38] sm:$0xff] }
 0xc65   :  { %v1671_v33 = vmul.f32 %v1670_v32, %v1593_v31  ;;  %v1713_v31 = vld [vmem:[#allocation5 + $0xa30] sm:$0xff]  ;;  %v1712_v32 = vld [vmem:[#allocation5 + $0xa28] sm:$0xff] }
 0xc67   :  { %v3673_v34 = vadd.f32 %v1671_v33, %v3579_v20  ;;  %v1697_v20 = vld [vmem:[#allocation5 + $0x9c0] sm:$0xff] }
 0xc68   :  { %v1711_v33 = vld [vmem:[#allocation5 + $0xa20] sm:$0xff] }
 0xc69   :  { %2863 = vmatmul.mubr.f32.vlgmr.msra.gmra.mxu1 %v3673_v34  ;;  %v1843_v38 = vmul.f32 %v3673_v34, %v3673_v34 }
 0xc6a   :  { %1921 = vmatpush1.msra.mxu1 %v1703_v35  ;;  %1984 = vmatprep.mubr.f32.mxu1 %v3189_v8 }
 0xc6b   :  { %2898 = vmatmul.mubr.f32.vlgmr.msra.gmra.mxu0 %v1843_v38  ;;  %1922 = vmatprep.subr.mxu1 %v1702_v36 }
 0xc6c   :  { %1923 = vmatpush1.msra.mxu1 %v1701_v39  ;;  %2010 = vmatpush1.msra.mxu0 %v1737_v22  ;;  %v1767_v22 = vld [vmem:[#allocation5 + $0xbe0] sm:$0xff] }
 0xc6d   :  { %1924 = vmatprep.subr.mxu1 %v1700_v42  ;;  %2011 = vmatprep.subr.mxu0 %v1736_v23  ;;  %v1766_v23 = vld [vmem:[#allocation5 + $0xbd8] sm:$0xff] }
 0xc6e   :  { %1925 = vmatpush1.msra.mxu1 %v1699_v43  ;;  %2012 = vmatpush1.msra.mxu0 %v1735_v25  ;;  %v1765_v25 = vld [vmem:[#allocation5 + $0xbd0] sm:$0xff] }
 0xc6f   :  { %1926 = vmatprep.subr.mxu1 %v1698_v44  ;;  %2013 = vmatprep.subr.mxu0 %v1734_v26  ;;  %v1764_v26 = vld [vmem:[#allocation5 + $0xbc8] sm:$0xff] }
 0xc70   :  { %1927 = vmatpush1.msra.mxu1 %v1697_v20  ;;  %2014 = vmatpush1.msra.mxu0 %v1733_v27  ;;  %v1763_v27 = vld [vmem:[#allocation5 + $0xbc0] sm:$0xff] }
 0xc71   :  { %1928 = vmatprep.subr.mxu1 %v1696_v47  ;;  %2015 = vmatprep.subr.mxu0 %v1732_v28  ;;  %v1762_v28 = vld [vmem:[#allocation5 + $0xbb8] sm:$0xff] }
 0xc72   :  { %1929 = vmatpush1.msra.mxu1 %v1695_v48  ;;  %2016 = vmatpush1.msra.mxu0 %v1731_v24  ;;  %v1761_v24 = vld [vmem:[#allocation5 + $0xbb0] sm:$0xff] }
 0xc73   :  { %1930 = vmatprep.subr.mxu1 %v1694_v49  ;;  %2017 = vmatprep.subr.mxu0 %v1730_v29  ;;  %v3057_v49 = vld [vmem:[#allocation7 + $0x178] sm:$0xff]  ;;  %v1760_v29 = vld [vmem:[#allocation5 + $0xba8] sm:$0xff] }
 0xc74   :  { %1931 = vmatpush1.msra.mxu1 %v1693_v50  ;;  %2018 = vmatpush1.msra.mxu0 %v1729_v40  ;;  %v3058_v50 = vld [vmem:[#allocation7 + $0x170] sm:$0xff]  ;;  %v1759_v40 = vld [vmem:[#allocation5 + $0xba0] sm:$0xff] }
 0xc75   :  { %1932 = vmatprep.subr.mxu1 %v1692_v51  ;;  %2019 = vmatprep.subr.mxu0 %v1728_v41  ;;  %v3059_v51 = vld [vmem:[#allocation7 + $0x168] sm:$0xff]  ;;  %v1758_v41 = vld [vmem:[#allocation5 + $0xb98] sm:$0xff] }
 0xc76   :  { %1933 = vmatpush1.msra.mxu1 %v1691_v52  ;;  %2020 = vmatpush1.msra.mxu0 %v1727_v45  ;;  %v3060_v52 = vld [vmem:[#allocation7 + $0x160] sm:$0xff]  ;;  %v1757_v45 = vld [vmem:[#allocation5 + $0xb90] sm:$0xff] }
 0xc77   :  { %1934 = vmatprep.subr.mxu1 %v1690_v53  ;;  %2021 = vmatprep.subr.mxu0 %v1726_v4  ;;  %v3061_v53 = vld [vmem:[#allocation7 + $0x158] sm:$0xff]  ;;  %v1756_v4 = vld [vmem:[#allocation5 + $0xb88] sm:$0xff] }
 0xc78   :  { %1935 = vmatpush1.msra.mxu1 %v1689_v54  ;;  %2022 = vmatpush1.msra.mxu0 %v1725_v5  ;;  %v3062_v54 = vld [vmem:[#allocation7 + $0x150] sm:$0xff]  ;;  %v1755_v5 = vld [vmem:[#allocation5 + $0xb80] sm:$0xff] }
 0xc79   :  { %1936 = vmatprep.subr.mxu1 %v1688_v55  ;;  %2023 = vmatprep.subr.mxu0 %v1724_v6  ;;  %v3063_v55 = vld [vmem:[#allocation7 + $0x148] sm:$0xff]  ;;  %v1754_v6 = vld [vmem:[#allocation5 + $0xb78] sm:$0xff] }
 0xc7a   :  { %1937 = vmatpush1.msra.mxu1 %v1687_v56  ;;  %2024 = vmatpush1.msra.mxu0 %v1723_v7  ;;  %v3064_v56 = vld [vmem:[#allocation7 + $0x140] sm:$0xff]  ;;  %v1753_v7 = vld [vmem:[#allocation5 + $0xb70] sm:$0xff] }
 0xc7b   :  { %1938 = vmatprep.subr.mxu1 %v1686_v57  ;;  %2025 = vmatprep.subr.mxu0 %v1722_v9  ;;  %v3065_v57 = vld [vmem:[#allocation7 + $0x138] sm:$0xff]  ;;  %v1752_v9 = vld [vmem:[#allocation5 + $0xb68] sm:$0xff] }
 0xc7c   :  { %1939 = vmatpush1.msra.mxu1 %v1685_v58  ;;  %2026 = vmatpush1.msra.mxu0 %v1721_v10  ;;  %v3066_v58 = vld [vmem:[#allocation7 + $0x130] sm:$0xff]  ;;  %v1751_v10 = vld [vmem:[#allocation5 + $0xb60] sm:$0xff] }
 0xc7d   :  { %1940 = vmatprep.subr.mxu1 %v1684_v59  ;;  %2027 = vmatprep.subr.mxu0 %v1720_v11  ;;  %v3067_v59 = vld [vmem:[#allocation7 + $0x128] sm:$0xff]  ;;  %v1750_v11 = vld [vmem:[#allocation5 + $0xb58] sm:$0xff] }
 0xc7e   :  { %1941 = vmatpush1.msra.mxu1 %v1683_v60  ;;  %2028 = vmatpush1.msra.mxu0 %v1719_v46  ;;  %v3068_v60 = vld [vmem:[#allocation7 + $0x120] sm:$0xff]  ;;  %v1749_v46 = vld [vmem:[#allocation5 + $0xb50] sm:$0xff] }
 0xc7f   :  { %1942 = vmatprep.subr.mxu1 %v1682_v61  ;;  %2029 = vmatprep.subr.mxu0 %v1718_v12  ;;  %v3069_v61 = vld [vmem:[#allocation7 + $0x118] sm:$0xff]  ;;  %v1748_v12 = vld [vmem:[#allocation5 + $0xb48] sm:$0xff] }
 0xc80   :  { %1943 = vmatpush1.msra.mxu1 %v1681_v62  ;;  %2030 = vmatpush1.msra.mxu0 %v1717_v13  ;;  %v3070_v62 = vld [vmem:[#allocation7 + $0x110] sm:$0xff]  ;;  %v1747_v13 = vld [vmem:[#allocation5 + $0xb40] sm:$0xff] }
 0xc81   :  { %1944 = vmatprep.subr.mxu1 %v1680_v63  ;;  %2031 = vmatprep.subr.mxu0 %v1716_v14  ;;  %v3071_v63 = vld [vmem:[#allocation7 + $0x108] sm:$0xff]  ;;  %v1746_v14 = vld [vmem:[#allocation5 + $0xb38] sm:$0xff] }
 0xc82   :  { %1945 = vmatpush1.msra.mxu1 %v1679_v0  ;;  %2032 = vmatpush1.msra.mxu0 %v1715_v15  ;;  %v3072_v0 = vld [vmem:[#allocation7 + $0x100] sm:$0xff]  ;;  %v1745_v15 = vld [vmem:[#allocation5 + $0xb30] sm:$0xff] }
 0xc83   :  { %1946 = vmatprep.subr.mxu1 %v1678_v1  ;;  %2033 = vmatprep.subr.mxu0 %v1714_v30  ;;  %v1710_v1 = vld [vmem:[#allocation5 + $0xa18] sm:$0xff]  ;;  %v1744_v30 = vld [vmem:[#allocation5 + $0xb28] sm:$0xff] }
 0xc84   :  { %1947 = vmatpush1.msra.mxu1 %v1677_v2  ;;  %2034 = vmatpush1.msra.mxu0 %v1713_v31  ;;  %v1709_v2 = vld [vmem:[#allocation5 + $0xa10] sm:$0xff]  ;;  %v1743_v31 = vld [vmem:[#allocation5 + $0xb20] sm:$0xff] }
 0xc85   :  { %1948 = vmatprep.subr.mxu1 %v1676_v16  ;;  %2035 = vmatprep.subr.mxu0 %v1712_v32  ;;  %v1708_v16 = vld [vmem:[#allocation5 + $0xa08] sm:$0xff]  ;;  %v1742_v32 = vld [vmem:[#allocation5 + $0xb18] sm:$0xff] }
 0xc86   :  { %1949 = vmatpush1.msra.mxu1 %v1675_v17  ;;  %2036 = vmatpush1.msra.mxu0 %v1711_v33  ;;  %v1707_v17 = vld [vmem:[#allocation5 + $0xa00] sm:$0xff]  ;;  %v1741_v33 = vld [vmem:[#allocation5 + $0xb10] sm:$0xff] }
 0xc87   :  { %1950 = vmatprep.subr.mxu1 %v1674_v18  ;;  %2037 = vmatprep.subr.mxu0 %v1710_v1  ;;  %v1770_v18 = vld [vmem:[#allocation5 + $0xbf8] sm:$0xff] }
 0xc88   :  { %1951 = vmatpush1.msra.mxu1 %v1673_v19  ;;  %2038 = vmatpush1.msra.mxu0 %v1709_v2  ;;  %v1769_v19 = vld [vmem:[#allocation5 + $0xbf0] sm:$0xff]  ;;  %v1772_v2 = vld [vmem:[#allocation8 + $0x78] sm:$0xff] }
 0xc89   :  { %2900 = vmatprep.subr.mxu1 %v3189_v8  ;;  %2039 = vmatprep.subr.mxu0 %v1708_v16 }
 0xc8a   :  { %2040 = vmatpush1.msra.mxu0 %v1707_v17 }
 0xc8b   :  { %2041 = vmatprep.subr.mxu0 %v1770_v18 }
 0xc8c   :  { %2042 = vmatpush2.msra.mxu0 %v1769_v19  ;;  %v2171_v19 = vld [vmem:[#allocation7 + $0x238] sm:$0xff] }
 0xc8d   :  { %2043 = vmatprep.subr.mxu0 %v1768_v21 }
 0xc8e   :  { %2044 = vmatpush2.msra.mxu0 %v1767_v22  ;;  %v2170_v22 = vld [vmem:[#allocation7 + $0x230] sm:$0xff] }
 0xc8f   :  { %2045 = vmatprep.subr.mxu0 %v1766_v23  ;;  %v2169_v23 = vld [vmem:[#allocation7 + $0x228] sm:$0xff] }
 0xc90   :  { %2046 = vmatpush2.msra.mxu0 %v1765_v25  ;;  %v2168_v25 = vld [vmem:[#allocation7 + $0x220] sm:$0xff] }
 0xc91   :  { %2047 = vmatprep.subr.mxu0 %v1764_v26  ;;  %v2167_v26 = vld [vmem:[#allocation7 + $0x218] sm:$0xff] }
 0xc92   :  { %2048 = vmatpush2.msra.mxu0 %v1763_v27  ;;  %v2166_v27 = vld [vmem:[#allocation7 + $0x210] sm:$0xff] }
 0xc93   :  { %2049 = vmatprep.subr.mxu0 %v1762_v28  ;;  %v2165_v28 = vld [vmem:[#allocation7 + $0x208] sm:$0xff] }
 0xc94   :  { %2050 = vmatpush2.msra.mxu0 %v1761_v24  ;;  %v2164_v24 = vld [vmem:[#allocation7 + $0x200] sm:$0xff] }
 0xc95   :  { %2051 = vmatprep.subr.mxu0 %v1760_v29  ;;  %v2163_v29 = vld [vmem:[#allocation7 + $0x1f8] sm:$0xff] }
 0xc96   :  { %2052 = vmatpush2.msra.mxu0 %v1759_v40  ;;  %v2162_v40 = vld [vmem:[#allocation7 + $0x1f0] sm:$0xff] }
 0xc97   :  { %2053 = vmatprep.subr.mxu0 %v1758_v41  ;;  %v2161_v41 = vld [vmem:[#allocation7 + $0x1e8] sm:$0xff] }
 0xc98   :  { %2054 = vmatpush2.msra.mxu0 %v1757_v45  ;;  %v2160_v45 = vld [vmem:[#allocation7 + $0x1e0] sm:$0xff] }
 0xc99   :  { %2055 = vmatprep.subr.mxu0 %v1756_v4  ;;  %v2159_v4 = vld [vmem:[#allocation7 + $0x1d8] sm:$0xff] }
 0xc9a   :  { %2056 = vmatpush2.msra.mxu0 %v1755_v5  ;;  %v2158_v5 = vld [vmem:[#allocation7 + $0x1d0] sm:$0xff] }
 0xc9b   :  { %2057 = vmatprep.subr.mxu0 %v1754_v6  ;;  %v2157_v6 = vld [vmem:[#allocation7 + $0x1c8] sm:$0xff] }
 0xc9c   :  { %2058 = vmatpush2.msra.mxu0 %v1753_v7  ;;  %v2156_v7 = vld [vmem:[#allocation7 + $0x1c0] sm:$0xff] }
 0xc9d   :  { %2059 = vmatprep.subr.mxu0 %v1752_v9 }
 0xc9e   :  { %2060 = vmatpush2.msra.mxu0 %v1751_v10 }
 0xc9f   :  { %2061 = vmatprep.subr.mxu0 %v1750_v11  ;;  %v1771_v11 = vld [vmem:[#allocation8 + $0x70] sm:$0xff] }
 0xca0   :  { %2062 = vmatpush2.msra.mxu0 %v1749_v46 }
 0xca1   :  { %2063 = vmatprep.subr.mxu0 %v1748_v12 }
 0xca2   :  { %2064 = vmatpush2.msra.mxu0 %v1747_v13 }
 0xca3   :  { %2065 = vmatprep.subr.mxu0 %v1746_v14 }
 0xca4   :  { %2066 = vmatpush2.msra.mxu0 %v1745_v15 }
 0xca5   :  { %2067 = vmatprep.subr.mxu0 %v1744_v30  ;;  %v2242_v30 = vld [vmem:[#allocation8 + $0x90] sm:$0xff] }
 0xca6   :  { %2068 = vmatpush2.msra.mxu0 %v1743_v31 }
 0xca7   :  { %2069 = vmatprep.subr.mxu0 %v1742_v32 }
 0xca8   :  { %2070 = vmatpush2.msra.mxu0 %v1741_v33 }
 0xd29   :  { %v1839_v35 = vpop.f32.mrf.mxu1 }
 0xd2a   :  { %v1915_v36 = vmul.f32 %v1839_v35, %v1839_v35  ;;  %v1914_v20 = vsub.f32 %v3673_v34, %v1839_v35  ;;  %v1740_v35 = vld [vmem:[#allocation5 + $0xb08] sm:$0xff] }
 0xd2b   :  { %v2864_v38 = vpop.f32.mrf.mxu1  ;;  %v1910_v39 = vpop.f32.mrf.mxu0  ;;  %2071 = vmatprep.subr.mxu0 %v1740_v35 }
 0xd2c   :  { %v1916_v42 = vsub.f32 %v1910_v39, %v1915_v36  ;;  %v1739_v36 = vld [vmem:[#allocation5 + $0xb00] sm:$0xff] }
 0xd2d   :  { %v2899_v43 = vpop.f32.mrf.mxu0  ;;  %2072 = vmatpush2.msra.mxu0 %v1739_v36  ;;  %v1705_v38 = vld [vmem:[#allocation8 + $0x60] sm:$0xff] }
 0xd2e   :  { %v1917_v44 = vadd.f32 1e-05, %v1916_v42  ;;  %v1706_v42 = vld [vmem:[#allocation8 + $0x68] sm:$0xff] }
 0xd30   :  { %3015 = vrsqrt.f32 %v1917_v44 }
 0xd3d   :  { %v3016_v47 = vpop.eup %3015 }
 0xd3e   :  { %v1919_v48 = vmul.f32 %v3016_v47, %v1914_v20 }
 0xd40   :  { %1985 = vmatmul.mubr.f32.vlgmr.msra.gmra.mxu1 %v1919_v48 }
 0xd41   :  { %2901 = vmatpush3.msra.mxu1 %v3057_v49  ;;  %2932 = vmatprep.mubr.msk.f32.mxu1 %vm3190_vm1, %v3189_v8 }
 0xd42   :  { %2902 = vmatprep.subr.mxu1 %v3189_v8 }
 0xd43   :  { %2903 = vmatpush3.msra.mxu1 %v3058_v50 }
 0xd44   :  { %2904 = vmatprep.subr.mxu1 %v3189_v8 }
 0xd45   :  { %2905 = vmatpush3.msra.mxu1 %v3059_v51 }
 0xd46   :  { %2906 = vmatprep.subr.mxu1 %v3189_v8 }
 0xd47   :  { %2907 = vmatpush3.msra.mxu1 %v3060_v52 }
 0xd48   :  { %2908 = vmatprep.subr.mxu1 %v3189_v8 }
 0xd49   :  { %2909 = vmatpush3.msra.mxu1 %v3061_v53 }
 0xd4a   :  { %2910 = vmatprep.subr.mxu1 %v3189_v8 }
 0xd4b   :  { %2911 = vmatpush3.msra.mxu1 %v3062_v54 }
 0xd4c   :  { %2912 = vmatprep.subr.mxu1 %v3189_v8 }
 0xd4d   :  { %2913 = vmatpush3.msra.mxu1 %v3063_v55 }
 0xd4e   :  { %2914 = vmatprep.subr.mxu1 %v3189_v8 }
 0xd4f   :  { %2915 = vmatpush3.msra.mxu1 %v3064_v56 }
 0xd50   :  { %2916 = vmatprep.subr.mxu1 %v3189_v8 }
 0xd51   :  { %2917 = vmatpush3.msra.mxu1 %v3065_v57 }
 0xd52   :  { %2918 = vmatprep.subr.mxu1 %v3189_v8 }
 0xd53   :  { %2919 = vmatpush3.msra.mxu1 %v3066_v58 }
 0xd54   :  { %2920 = vmatprep.subr.mxu1 %v3189_v8 }
 0xd55   :  { %2921 = vmatpush3.msra.mxu1 %v3067_v59 }
 0xd56   :  { %2922 = vmatprep.subr.mxu1 %v3189_v8 }
 0xd57   :  { %2923 = vmatpush3.msra.mxu1 %v3068_v60 }
 0xd58   :  { %2924 = vmatprep.subr.mxu1 %v3189_v8 }
 0xd59   :  { %2925 = vmatpush3.msra.mxu1 %v3069_v61 }
 0xd5a   :  { %2926 = vmatprep.subr.mxu1 %v3189_v8 }
 0xd5b   :  { %2927 = vmatpush3.msra.mxu1 %v3070_v62 }
 0xd5c   :  { %2928 = vmatprep.subr.mxu1 %v3189_v8 }
 0xd5d   :  { %2929 = vmatpush3.msra.mxu1 %v3071_v63 }
 0xd5e   :  { %2930 = vmatprep.subr.mxu1 %v3189_v8 }
 0xd5f   :  { %2931 = vmatpush3.msra.mxu1 %v3072_v0 }
 0xd60   :  { %2935 = vmatprep.subr.mxu1 %v3189_v8 }
 0xe00   :  { %v1986_v39 = vpop.f32.mrf.mxu1 }
 0xe01   :  { %v1987_v43 = vadd.f32 %v1986_v39, %v1705_v38 }
 0xe02   :  { %v1988_v44 = vpop.f32.mrf.mxu1 }
 0xe03   :  { %v1991_v20 = vmul.f32 %v1987_v43, %v1987_v43  ;;  %v1989_v47 = vadd.f32 %v1988_v44, %v1706_v42 }
 0xe05   :  { %v1993_v48 = vmul.f32 %v1991_v20, %v1987_v43  ;;  %v1992_v49 = vmul.f32 %v1989_v47, %v1989_v47 }
 0xe07   :  { %v1995_v50 = vmul.f32 0.044715, %v1993_v48  ;;  %v1994_v51 = vmul.f32 %v1992_v49, %v1989_v47 }
 0xe09   :  { %v1997_v52 = vadd.f32 %v1995_v50, %v1987_v43  ;;  %v1996_v53 = vmul.f32 0.044715, %v1994_v51 }
 0xe0b   :  { %v1999_v54 = vmul.f32 0.7978846, %v1997_v52  ;;  %v1998_v55 = vadd.f32 %v1996_v53, %v1989_v47 }
 0xe0d   :  { %3017 = vtanh.f32 %v1999_v54  ;;  %v2000_v56 = vmul.f32 0.7978846, %v1998_v55 }
 0xe0f   :  { %3019 = vtanh.f32 %v2000_v56 }
 0xe1a   :  { %v3018_v57 = vpop.eup %3017 }
 0xe1b   :  { %v2003_v58 = vadd.f32 1.0, %v3018_v57 }
 0xe1c   :  { %v3020_v59 = vpop.eup %3019 }
 0xe1d   :  { %v2004_v60 = vadd.f32 1.0, %v3020_v59  ;;  %v2005_v61 = vmul.f32 0.5, %v2003_v58 }
 0xe1f   :  { %v2006_v62 = vmul.f32 0.5, %v2004_v60  ;;  %v2007_v0 = vmul.f32 %v2005_v61, %v1987_v43 }
 0xe21   :  { %v2008_v63 = vmul.f32 %v2006_v62, %v1989_v47 }
 0xe23   :  { %2073 = vmatprep.mubr.f32.mxu0 %v2008_v63 }
 0xe24   :  { %2074 = vmatmul.mubr.f32.vlgmr.msra.gmra.mxu0 %v2007_v0 }
 0xee4   :  { %v2075_v1 = vpop.f32.mrf.mxu0 }
 0xee5   :  { %v2076_v12 = vadd.f32 %v2075_v1, %v1771_v11 }
 0xee6   :  { %v2077_v16 = vpop.f32.mrf.mxu0 }
 0xee7   :  { %v2078_v17 = vadd.f32 %v2077_v16, %v1772_v2 }
 0xee9   :  { %v2080_v18 = vmul.f32 1.442695, %v2078_v17 }
 0xeeb   :  { %3021 = vpow2.f32 %v2080_v18 }
 0xef8   :  { %v3022_v21 = vpop.eup %3021 }
 0xef9   :  { %2933 = vmatmul.mubr.f32.vlgmr.msra.gmra.mxu1 %v3022_v21 }
 0xefa   :  { %2936 = vmatpush3.msra.mxu1 %v2171_v19  ;;  %2967 = vmatprep.mubr.msk.f32.mxu1 %vm3190_vm1, %v3189_v8 }
 0xefb   :  { %2937 = vmatprep.subr.mxu1 %v3189_v8 }
 0xefc   :  { %2938 = vmatpush3.msra.mxu1 %v2170_v22 }
 0xefd   :  { %2939 = vmatprep.subr.mxu1 %v3189_v8 }
 0xefe   :  { %2940 = vmatpush3.msra.mxu1 %v2169_v23 }
 0xeff   :  { %2941 = vmatprep.subr.mxu1 %v3189_v8 }
 0xf00   :  { %2942 = vmatpush3.msra.mxu1 %v2168_v25 }
 0xf01   :  { %2943 = vmatprep.subr.mxu1 %v3189_v8 }
 0xf02   :  { %2944 = vmatpush3.msra.mxu1 %v2167_v26 }
 0xf03   :  { %2945 = vmatprep.subr.mxu1 %v3189_v8 }
 0xf04   :  { %2946 = vmatpush3.msra.mxu1 %v2166_v27 }
 0xf05   :  { %2947 = vmatprep.subr.mxu1 %v3189_v8 }
 0xf06   :  { %2948 = vmatpush3.msra.mxu1 %v2165_v28 }
 0xf07   :  { %2949 = vmatprep.subr.mxu1 %v3189_v8 }
 0xf08   :  { %2950 = vmatpush3.msra.mxu1 %v2164_v24 }
 0xf09   :  { %2951 = vmatprep.subr.mxu1 %v3189_v8 }
 0xf0a   :  { %2952 = vmatpush3.msra.mxu1 %v2163_v29 }
 0xf0b   :  { %2953 = vmatprep.subr.mxu1 %v3189_v8 }
 0xf0c   :  { %2954 = vmatpush3.msra.mxu1 %v2162_v40 }
 0xf0d   :  { %2955 = vmatprep.subr.mxu1 %v3189_v8 }
 0xf0e   :  { %2956 = vmatpush3.msra.mxu1 %v2161_v41 }
 0xf0f   :  { %2957 = vmatprep.subr.mxu1 %v3189_v8 }
 0xf10   :  { %2958 = vmatpush3.msra.mxu1 %v2160_v45 }
 0xf11   :  { %2959 = vmatprep.subr.mxu1 %v3189_v8 }
 0xf12   :  { %2960 = vmatpush3.msra.mxu1 %v2159_v4 }
 0xf13   :  { %2961 = vmatprep.subr.mxu1 %v3189_v8 }
 0xf14   :  { %2962 = vmatpush3.msra.mxu1 %v2158_v5 }
 0xf15   :  { %2963 = vmatprep.subr.mxu1 %v3189_v8 }
 0xf16   :  { %2964 = vmatpush3.msra.mxu1 %v2157_v6 }
 0xf17   :  { %2965 = vmatprep.subr.mxu1 %v3189_v8 }
 0xf18   :  { %2966 = vmatpush3.msra.mxu1 %v2156_v7 }
 0xfb9   :  { %v2148_v9 = vpop.f32.mrf.mxu1 }
 0xfba   :  { %3023 = vrcp.f32 %v2148_v9 }
 0xfbb   :  { %v2934_v10 = vpop.f32.mrf.mxu1 }
 0xfc7   :  { %v3024_v46 = vpop.eup %3023 }
 0xfc8   :  { %v2153_v13 = vmul.f32 %v3024_v46, %v3022_v21 }
 0xfca   :  { %v2154_v14 = vmul.f32 %v2153_v13, %v2076_v12 }
 0xfcc   :  { %v2155_v15 = vadd.f32 %v2154_v14, %v3673_v34 }
 0xfce   :  { %2968 = vmatmul.mubr.f32.vlgmr.msra.gmra.mxu1 %v2155_v15 }
0x108e   :  { %v2238_v31 = vpop.f32.mrf.mxu1 }
0x108f   :  { %v2243_v32 = vadd.f32 %v2242_v30, %v2238_v31 }
0x1090   :  { %v2969_v33 = vpop.f32.mrf.mxu1 }
0x1091   :  { %v2244_v8 = vmul.f32 %v2243_v32, %v3314_v37 }
0x1093   :  { %v2245_v35 = vadd.f32 %v2244_v8, %v3236_v3 }
0x1095   :  { %2247 = vst.msk [vmem:[#allocation10] sm:$0xff] %vm2246_vm4, %v2245_v35 }
0x1096   :  { %3164 = shalt.err (!%p3161_p10)
}
0x1097   :  { %2257 = dma.vmem_to_hbm [thread:$0]  %s2255_s3, 128, %s3726_s4, [#allocation4]  }
0x1098   :  { %3179 = dma.done.wait [#allocation4], 128  }
0x1099   :  { %3180 = vsyncadd [#allocation4], 4294967168 }
0x109a   :  { %2261 = vsyncpa [#allocation3], 1 }
0x109b   :  { %2262 = vsyncpa [#allocation6], 1 }
0x109c   :  { %2263 = vsyncpa [#allocation9], 1 }
0x109d   :  { %2264 = vsyncpa [#allocation4], 1 }

</bundles_post_ra>
